<compile_context>
chip_gen: v5e
topology: v5e:2x2
jax: 0.10.0
libtpu: 0.0.40
codegen_flags: <defaults>
</compile_context>

<pallas_src>
import jax
import jax.numpy as jnp
from jax.experimental import pallas as pl
from jax.experimental.pallas import tpu as pltpu


def bn_relu_conv1x1_kernel(x_ref, ss_ref, w_ref, o_ref):
    # x_ref : (C, HW)    one image's activations, channels on sublanes, pixels on lanes
    # ss_ref: (C, 2)     f32   column 0 = folded BN scale, column 1 = folded BN shift
    # w_ref : (Cout, C)  bf16  1x1-conv weight in native PyTorch (Cout, Cin) layout, unpadded
    # o_ref : (Cout, HW) f32
    x = x_ref[...].astype(jnp.float32)            # f32 elementwise math (v5e VPU has no bf16)
    scale = ss_ref[:, 0:1]                        # (C, 1), broadcast across lanes
    shift = ss_ref[:, 1:2]
    y = jnp.maximum(x * scale + shift, 0.0)       # folded BN + ReLU on the VPU

    # bf16 MXU operands, f32 accumulation.  K = C stays unpadded: Mosaic masks the ragged
    # contraction tail, so no concat/copy of y and no padded weight columns are needed.
    y = y.astype(w_ref.dtype)
    o_ref[...] = jnp.dot(w_ref[...], y, preferred_element_type=jnp.float32)


def fold_bn_conv_params(gamma, beta, running_mean, running_var, weight,
                        eps=1e-5, matmul_dtype=jnp.bfloat16):
    """One-time prep (hoisted out of the per-call path).

    Folds eval-mode BatchNorm into per-channel scale/shift and casts the 1x1-conv weight to
    the MXU operand dtype.  No padding: the kernel consumes the native (Cout, C) layout.
    """
    # TODO(synk): PyTorch's module defaults to training mode (batch statistics + running-stat
    # updates); this implements eval-mode BN with running stats (standard fused-inference form).
    Cout, C = weight.shape[0], weight.shape[1]
    inv_std = jax.lax.rsqrt(running_var.astype(jnp.float32) + eps)
    scale = gamma.astype(jnp.float32) * inv_std
    shift = beta.astype(jnp.float32) - running_mean.astype(jnp.float32) * scale
    scale_shift = jnp.stack([scale, shift], axis=1)             # (C, 2) f32
    w2d = weight.reshape(Cout, C).astype(matmul_dtype)          # (Cout, C) bf16
    return scale_shift, w2d


@jax.jit
def bn_relu_conv1x1(x_nchw, scale_shift, w):
    """x_nchw: (N, C, H, W); scale_shift: (C, 2) f32; w: (Cout, C) from fold_bn_conv_params."""
    N, C, H, W = x_nchw.shape
    Cout = w.shape[0]
    HW = H * W

    # Free view: no transpose for any N (the grid handles the batch axis).
    x3 = x_nchw.reshape(N, C, HW)

    flops = 2 * N * Cout * C * HW
    bytes_accessed = (x3.size * x3.dtype.itemsize
                      + w.size * w.dtype.itemsize
                      + scale_shift.size * scale_shift.dtype.itemsize
                      + N * Cout * HW * 4)

    out3 = pl.pallas_call(
        bn_relu_conv1x1_kernel,
        out_shape=jax.ShapeDtypeStruct((N, Cout, HW), jnp.float32),
        grid=(N,),
        in_specs=[
            # Per-image block; last two dims equal the full array dims (exempt from 8x128).
            pl.BlockSpec((None, C, HW), lambda n: (n, 0, 0)),
            # Params: index_map independent of n -> stay resident across the grid.
            pl.BlockSpec((C, 2), lambda n: (0, 0)),
            pl.BlockSpec((Cout, C), lambda n: (0, 0)),
        ],
        out_specs=pl.BlockSpec((None, Cout, HW), lambda n: (n, 0, 0)),
        compiler_params=pltpu.CompilerParams(
            dimension_semantics=("parallel",),
        ),
        cost_estimate=pl.CostEstimate(
            flops=flops, transcendentals=0, bytes_accessed=bytes_accessed),
    )(x3, scale_shift, w)

    return out3.reshape(N, Cout, H, W)


def _reference(x_nchw, gamma, beta, running_mean, running_var, weight, eps=1e-5):
    inv_std = 1.0 / jnp.sqrt(running_var + eps)
    scale = gamma * inv_std
    shift = beta - running_mean * scale
    y = x_nchw * scale[None, :, None, None] + shift[None, :, None, None]
    y = jnp.maximum(y, 0.0)
    # 1x1 conv == per-pixel matmul over channels
    return jnp.einsum("nchw,kc->nkhw", y, weight.reshape(weight.shape[0], weight.shape[1]))


if __name__ == "__main__":
    # Shapes implied by the module: x [1, 1696, 7, 7], BN(1696), Conv 1696 -> 128, kernel 1x1.
    N, C, H, W, Cout = 1, 1696, 7, 7, 128

    key = jax.random.PRNGKey(0)
    kx, kg, kb, km, kv, kw = jax.random.split(key, 6)

    x = jax.random.normal(kx, (N, C, H, W), dtype=jnp.float32)

    # Deterministic synthetic parameters (shapes from M.__init__).
    gamma = 1.0 + 0.1 * jax.random.normal(kg, (C,), dtype=jnp.float32)
    beta = 0.1 * jax.random.normal(kb, (C,), dtype=jnp.float32)
    running_mean = 0.1 * jax.random.normal(km, (C,), dtype=jnp.float32)
    running_var = 1.0 + 0.1 * jax.random.uniform(kv, (C,), dtype=jnp.float32)
    weight = 0.05 * jax.random.normal(kw, (Cout, C, 1, 1), dtype=jnp.float32)

    # One-time parameter prep (BN fold + weight cast), hoisted out of the call path.
    scale_shift, w2d = fold_bn_conv_params(gamma, beta, running_mean, running_var, weight)
    scale_shift, w2d = jax.block_until_ready((scale_shift, w2d))

    out = bn_relu_conv1x1(x, scale_shift, w2d)
    out = jax.block_until_ready(out)

    assert out.shape == (N, Cout, H, W), out.shape

    ref = _reference(x, gamma, beta, running_mean, running_var, weight)
    # bf16 MXU operands with f32 accumulation over C=1696: observed max abs error is well
    # below ~1e-2 at |out| ~ O(1), so 2e-2 rtol/atol comfortably bounds operand-rounding noise.
    assert jnp.allclose(out, ref, rtol=2e-2, atol=2e-2), float(jnp.max(jnp.abs(out - ref)))

    print("KERNEL_OK")
</pallas_src>

<mosaic_0001>
module attributes {stable_mosaic.version = 11 : i64} {
  func.func @bn_relu_conv1x1_kernel(%arg0: i32, %arg1: memref<1x1696x49xf32, #tpu.memory_space<vmem>>, %arg2: memref<1696x2xf32, #tpu.memory_space<vmem>>, %arg3: memref<128x1696xbf16, #tpu.memory_space<vmem>>, %arg4: memref<1x128x49xf32, #tpu.memory_space<vmem>>) attributes {dimension_semantics = [#tpu.dimension_semantics<parallel>], iteration_bounds = array<i64: 1>, scalar_prefetch = 0 : i64, scratch_operands = 0 : i64, tpu.core_type = #tpu.core_type<tc>, window_params = [{transform_indices = @transform_0, window_bounds = array<i64: 1, 1696, 49>}, {pipeline_mode = #tpu.pipeline_mode<synchronous>, transform_indices = @transform_1, window_bounds = array<i64: 1696, 2>}, {pipeline_mode = #tpu.pipeline_mode<synchronous>, transform_indices = @transform_2, window_bounds = array<i64: 128, 1696>}, {transform_indices = @transform_3, window_bounds = array<i64: 1, 128, 49>}]} {
    %c0 = arith.constant 0 : index
    %c0_0 = arith.constant 0 : index
    %c0_1 = arith.constant 0 : index
    %0 = vector.load %arg1[%c0, %c0_0, %c0_1] : memref<1x1696x49xf32, #tpu.memory_space<vmem>>, vector<1x1696x49xf32>
    %1 = vector.shape_cast %0 : vector<1x1696x49xf32> to vector<1696x49xf32>
    %c0_2 = arith.constant 0 : index
    %c0_3 = arith.constant 0 : index
    %2 = vector.load %arg2[%c0_2, %c0_3] : memref<1696x2xf32, #tpu.memory_space<vmem>>, vector<1696x1xf32>
    %c0_4 = arith.constant 0 : index
    %c1 = arith.constant 1 : index
    %3 = vector.load %arg2[%c0_4, %c1] : memref<1696x2xf32, #tpu.memory_space<vmem>>, vector<1696x1xf32>
    %4 = vector.broadcast %2 : vector<1696x1xf32> to vector<1696x49xf32>
    %5 = arith.mulf %1, %4 : vector<1696x49xf32>
    %6 = vector.broadcast %3 : vector<1696x1xf32> to vector<1696x49xf32>
    %7 = arith.addf %5, %6 : vector<1696x49xf32>
    %cst = arith.constant 0.000000e+00 : f32
    %8 = vector.broadcast %cst : f32 to vector<1696x49xf32>
    %9 = arith.maximumf %7, %8 : vector<1696x49xf32>
    %10 = arith.truncf %9 : vector<1696x49xf32> to vector<1696x49xbf16>
    %c0_5 = arith.constant 0 : index
    %c0_6 = arith.constant 0 : index
    %11 = vector.load %arg3[%c0_5, %c0_6] : memref<128x1696xbf16, #tpu.memory_space<vmem>>, vector<128x1696xbf16>
    %cst_7 = arith.constant dense<0.000000e+00> : vector<128x49xf32>
    %12 = tpu.matmul %11, %10, %cst_7 {dimension_numbers = #tpu.dot_dimension_numbers<[1], [0], [0], [1], [0, 0, 1, 1], [], []>} : vector<128x1696xbf16>, vector<1696x49xbf16>, vector<128x49xf32> -> vector<128x49xf32>
    %c0_8 = arith.constant 0 : index
    %c0_9 = arith.constant 0 : index
    %c0_10 = arith.constant 0 : index
    %13 = vector.load %arg4[%c0_8, %c0_9, %c0_10] : memref<1x128x49xf32, #tpu.memory_space<vmem>>, vector<1x128x49xf32>
    %14 = vector.shape_cast %13 : vector<1x128x49xf32> to vector<128x49xf32>
    %15 = vector.shape_cast %12 : vector<128x49xf32> to vector<1x128x49xf32>
    tpu.vector_store %arg4[%c0_8, %c0_9, %c0_10], %15 {strides = array<i32>} : memref<1x128x49xf32, #tpu.memory_space<vmem>>, vector<1x128x49xf32>,
    return
  }
  func.func @transform_0(%arg0: i32) -> (i32, i32, i32) {
    %c0_i32 = arith.constant 0 : i32
    %c0_i32_0 = arith.constant 0 : i32
    %c0_i32_1 = arith.constant 0 : i32
    return %arg0, %c0_i32, %c0_i32_0 : i32, i32, i32
  }
  func.func @transform_1(%arg0: i32) -> (i32, i32) {
    %c0_i32 = arith.constant 0 : i32
    %c0_i32_0 = arith.constant 0 : i32
    %c0_i32_1 = arith.constant 0 : i32
    return %c0_i32, %c0_i32_0 : i32, i32
  }
  func.func @transform_2(%arg0: i32) -> (i32, i32) {
    %c0_i32 = arith.constant 0 : i32
    %c0_i32_0 = arith.constant 0 : i32
    %c0_i32_1 = arith.constant 0 : i32
    return %c0_i32, %c0_i32_0 : i32, i32
  }
  func.func @transform_3(%arg0: i32) -> (i32, i32, i32) {
    %c0_i32 = arith.constant 0 : i32
    %c0_i32_0 = arith.constant 0 : i32
    %c0_i32_1 = arith.constant 0 : i32
    return %arg0, %c0_i32, %c0_i32_0 : i32, i32, i32
  }
}

</mosaic_0001>

<bundles_post_ra>
// kernel: bn_relu_conv1x1.1
= control target key start
LH: loop header
LB: loop body
LE: loop exit
PB: predicated region body
PF: predicated region fallthrough
CT: control target
= control target key end

     0   :  { %v5289_v0 = vmov 0   ;;  %vm3753_vm0 = vcmask 261120   ;;  %vm4464_vm1 = vcmask 400384   ;;  %s9409_s1 = inlined_call_operand.vmem [shape: f32[1696,2], index: 1, kind: input, shape index: {}]   ;;  %s9410_s0 = inlined_call_operand.vmem [shape: f32[1,1696,49], index: 0, kind: input, shape index: {}]   ;;  %s9411_s2 = inlined_call_operand.vmem [shape: bf16[128,1696], index: 2, kind: input, shape index: {}]   ;;  %s9412_s3 = inlined_call_operand.vmem [shape: f32[1,128,49], index: 3, kind: output, shape index: {}]  }
   0x1   :  { %5073 = vset.pattern.permute.xlu2 %v5289_v0  ;;  %5072 = vset.pattern.permute.xlu1 %v5289_v0  ;;  %v231_v1 = vld [vmem:[%s9409_s1 + $0x20] sm:$0xff]  ;;  %v229_v2 = vld [vmem:[%s9409_s1 + $0x10] sm:$0xff]  ;;  %v232_v4 = vld [vmem:[%s9409_s1 + $0x28] sm:$0xff] }
   0x2   :  { %v227_v3 = vld [vmem:[%s9409_s1] sm:$0xff]  ;;  %5071 = vset.pattern.permute.xlu0 %v5289_v0  ;;  %461 = vperm.xlu2 %5073, %v231_v1   ;;  %v230_v5 = vld [vmem:[%s9409_s1 + $0x18] sm:$0xff]  ;;  %v228_v6 = vld [vmem:[%s9409_s1 + $0x8] sm:$0xff] }
   0x3   :  { %451 = vperm.xlu1 %5072, %v229_v2   ;;  %441 = vperm.xlu0 %5071, %v227_v3   ;;  %v235_v7 = vld [vmem:[%s9409_s1 + $0x40] sm:$0xff]  ;;  %v234_v8 = vld [vmem:[%s9409_s1 + $0x38] sm:$0xff]  ;;  %v233_v9 = vld [vmem:[%s9409_s1 + $0x30] sm:$0xff] }
   0x4   :  { %v238_v10 = vld [vmem:[%s9409_s1 + $0x58] sm:$0xff]  ;;  %v237_v11 = vld [vmem:[%s9409_s1 + $0x50] sm:$0xff]  ;;  %v236_v12 = vld [vmem:[%s9409_s1 + $0x48] sm:$0xff] }
   0x5   :  { %v241_v13 = vld [vmem:[%s9409_s1 + $0x70] sm:$0xff]  ;;  %v240_v14 = vld [vmem:[%s9409_s1 + $0x68] sm:$0xff]  ;;  %v239_v15 = vld [vmem:[%s9409_s1 + $0x60] sm:$0xff] }
   0x6   :  { %v244_v16 = vld [vmem:[%s9409_s1 + $0x88] sm:$0xff]  ;;  %v243_v17 = vld [vmem:[%s9409_s1 + $0x80] sm:$0xff]  ;;  %v242_v18 = vld [vmem:[%s9409_s1 + $0x78] sm:$0xff] }
   0x7   :  { %v247_v19 = vld [vmem:[%s9409_s1 + $0xa0] sm:$0xff]  ;;  %v246_v20 = vld [vmem:[%s9409_s1 + $0x98] sm:$0xff]  ;;  %v245_v21 = vld [vmem:[%s9409_s1 + $0x90] sm:$0xff] }
   0x8   :  { %v250_v22 = vld [vmem:[%s9409_s1 + $0xb8] sm:$0xff]  ;;  %v249_v23 = vld [vmem:[%s9409_s1 + $0xb0] sm:$0xff]  ;;  %v248_v24 = vld [vmem:[%s9409_s1 + $0xa8] sm:$0xff] }
   0x9   :  { %v253_v25 = vld [vmem:[%s9409_s1 + $0xd0] sm:$0xff]  ;;  %v252_v26 = vld [vmem:[%s9409_s1 + $0xc8] sm:$0xff]  ;;  %v251_v27 = vld [vmem:[%s9409_s1 + $0xc0] sm:$0xff] }
   0xa   :  { %466 = vperm.xlu2 %5073, %v232_v4   ;;  %v256_v28 = vld [vmem:[%s9409_s1 + $0xe8] sm:$0xff]  ;;  %v255_v29 = vld [vmem:[%s9409_s1 + $0xe0] sm:$0xff]  ;;  %v254_v30 = vld [vmem:[%s9409_s1 + $0xd8] sm:$0xff] }
   0xb   :  { %456 = vperm.xlu1 %5072, %v230_v5   ;;  %446 = vperm.xlu0 %5071, %v228_v6   ;;  %v259_v31 = vld [vmem:[%s9409_s1 + $0x100] sm:$0xff]  ;;  %v258_v32 = vld [vmem:[%s9409_s1 + $0xf8] sm:$0xff]  ;;  %v257_v33 = vld [vmem:[%s9409_s1 + $0xf0] sm:$0xff] }
   0xc   :  { %v262_v34 = vld [vmem:[%s9409_s1 + $0x118] sm:$0xff]  ;;  %v261_v35 = vld [vmem:[%s9409_s1 + $0x110] sm:$0xff]  ;;  %v260_v36 = vld [vmem:[%s9409_s1 + $0x108] sm:$0xff] }
   0xd   :  { %v265_v38 = vld [vmem:[%s9409_s1 + $0x130] sm:$0xff]  ;;  %v264_v39 = vld [vmem:[%s9409_s1 + $0x128] sm:$0xff]  ;;  %v263_v40 = vld [vmem:[%s9409_s1 + $0x120] sm:$0xff] }
   0xe   :  { %v268_v42 = vld [vmem:[%s9409_s1 + $0x148] sm:$0xff]  ;;  %v267_v43 = vld [vmem:[%s9409_s1 + $0x140] sm:$0xff]  ;;  %v266_v44 = vld [vmem:[%s9409_s1 + $0x138] sm:$0xff] }
   0xf   :  { %v271_v46 = vld [vmem:[%s9409_s1 + $0x160] sm:$0xff]  ;;  %v270_v47 = vld [vmem:[%s9409_s1 + $0x158] sm:$0xff]  ;;  %v269_v48 = vld [vmem:[%s9409_s1 + $0x150] sm:$0xff] }
  0x10   :  { %v274_v52 = vld [vmem:[%s9409_s1 + $0x178] sm:$0xff]  ;;  %v273_v53 = vld [vmem:[%s9409_s1 + $0x170] sm:$0xff]  ;;  %v272_v54 = vld [vmem:[%s9409_s1 + $0x168] sm:$0xff] }
  0x11   :  { %v277_v58 = vld [vmem:[%s9409_s1 + $0x190] sm:$0xff]  ;;  %v276_v59 = vld [vmem:[%s9409_s1 + $0x188] sm:$0xff]  ;;  %v275_v60 = vld [vmem:[%s9409_s1 + $0x180] sm:$0xff] }
  0x12   :  { %481 = vperm.xlu2 %5073, %v235_v7   ;;  %v280_v0 = vld [vmem:[%s9409_s1 + $0x1a8] sm:$0xff]  ;;  %v279_v1 = vld [vmem:[%s9409_s1 + $0x1a0] sm:$0xff]  ;;  %v278_v2 = vld [vmem:[%s9409_s1 + $0x198] sm:$0xff] }
  0x13   :  { %476 = vperm.xlu1 %5072, %v234_v8   ;;  %471 = vperm.xlu0 %5071, %v233_v9   ;;  %v283_v6 = vld [vmem:[%s9409_s1 + $0x1c0] sm:$0xff]  ;;  %v282_v7 = vld [vmem:[%s9409_s1 + $0x1b8] sm:$0xff]  ;;  %v281_v8 = vld [vmem:[%s9409_s1 + $0x1b0] sm:$0xff] }
  0x1a   :  { %496 = vperm.xlu2 %5073, %v238_v10  }
  0x1b   :  { %491 = vperm.xlu1 %5072, %v237_v11   ;;  %486 = vperm.xlu0 %5071, %v236_v12   ;;  %v286_v12 = vld [vmem:[%s9409_s1 + $0x1d8] sm:$0xff] }
  0x22   :  { %511 = vperm.xlu2 %5073, %v241_v13   ;;  %v285_v13 = vld [vmem:[%s9409_s1 + $0x1d0] sm:$0xff] }
  0x23   :  { %506 = vperm.xlu1 %5072, %v240_v14   ;;  %501 = vperm.xlu0 %5071, %v239_v15   ;;  %v284_v14 = vld [vmem:[%s9409_s1 + $0x1c8] sm:$0xff] }
  0x2a   :  { %526 = vperm.xlu2 %5073, %v244_v16  }
  0x2b   :  { %521 = vperm.xlu1 %5072, %v243_v17   ;;  %516 = vperm.xlu0 %5071, %v242_v18   ;;  %v289_v18 = vld [vmem:[%s9409_s1 + $0x1f0] sm:$0xff] }
  0x32   :  { %541 = vperm.xlu2 %5073, %v247_v19   ;;  %v288_v19 = vld [vmem:[%s9409_s1 + $0x1e8] sm:$0xff] }
  0x33   :  { %536 = vperm.xlu1 %5072, %v246_v20   ;;  %531 = vperm.xlu0 %5071, %v245_v21   ;;  %v287_v20 = vld [vmem:[%s9409_s1 + $0x1e0] sm:$0xff] }
  0x3a   :  { %556 = vperm.xlu2 %5073, %v250_v22  }
  0x3b   :  { %551 = vperm.xlu1 %5072, %v249_v23   ;;  %546 = vperm.xlu0 %5071, %v248_v24   ;;  %v292_v24 = vld [vmem:[%s9409_s1 + $0x208] sm:$0xff] }
  0x42   :  { %571 = vperm.xlu2 %5073, %v253_v25   ;;  %v291_v25 = vld [vmem:[%s9409_s1 + $0x200] sm:$0xff] }
  0x43   :  { %566 = vperm.xlu1 %5072, %v252_v26   ;;  %561 = vperm.xlu0 %5071, %v251_v27   ;;  %v290_v26 = vld [vmem:[%s9409_s1 + $0x1f8] sm:$0xff] }
  0x4a   :  { %586 = vperm.xlu2 %5073, %v256_v28  }
  0x4b   :  { %581 = vperm.xlu1 %5072, %v255_v29   ;;  %576 = vperm.xlu0 %5071, %v254_v30   ;;  %v295_v30 = vld [vmem:[%s9409_s1 + $0x220] sm:$0xff] }
  0x52   :  { %601 = vperm.xlu2 %5073, %v259_v31   ;;  %v294_v31 = vld [vmem:[%s9409_s1 + $0x218] sm:$0xff] }
  0x53   :  { %596 = vperm.xlu1 %5072, %v258_v32   ;;  %591 = vperm.xlu0 %5071, %v257_v33   ;;  %v293_v32 = vld [vmem:[%s9409_s1 + $0x210] sm:$0xff] }
  0x5a   :  { %616 = vperm.xlu2 %5073, %v262_v34  }
  0x5b   :  { %611 = vperm.xlu1 %5072, %v261_v35   ;;  %606 = vperm.xlu0 %5071, %v260_v36   ;;  %v298_v36 = vld [vmem:[%s9409_s1 + $0x238] sm:$0xff] }
  0x5c   :  { %v5419_v37 = vpop.permute.xlu2 %461 }
  0x62   :  { %631 = vperm.xlu2 %5073, %v265_v38   ;;  %v297_v38 = vld [vmem:[%s9409_s1 + $0x230] sm:$0xff] }
  0x63   :  { %626 = vperm.xlu1 %5072, %v264_v39   ;;  %621 = vperm.xlu0 %5071, %v263_v40   ;;  %v296_v39 = vld [vmem:[%s9409_s1 + $0x228] sm:$0xff] }
  0x64   :  { %v5430_v41 = vpop.permute.xlu2 %466 }
  0x6a   :  { %646 = vperm.xlu2 %5073, %v268_v42  }
  0x6b   :  { %641 = vperm.xlu1 %5072, %v267_v43   ;;  %636 = vperm.xlu0 %5071, %v266_v44   ;;  %v301_v44 = vld [vmem:[%s9409_s1 + $0x250] sm:$0xff] }
  0x6c   :  { %v5441_v45 = vpop.permute.xlu2 %481 }
  0x72   :  { %661 = vperm.xlu2 %5073, %v271_v46   ;;  %v300_v46 = vld [vmem:[%s9409_s1 + $0x248] sm:$0xff] }
  0x73   :  { %656 = vperm.xlu1 %5072, %v270_v47   ;;  %651 = vperm.xlu0 %5071, %v269_v48   ;;  %v299_v47 = vld [vmem:[%s9409_s1 + $0x240] sm:$0xff] }
  0x74   :  { %v5452_v49 = vpop.permute.xlu2 %496 }
  0x75   :  { %v5454_v50 = vpop.permute.xlu1 %451  ;;  %v5456_v51 = vpop.permute.xlu0 %441 }
  0x7a   :  { %676 = vperm.xlu2 %5073, %v274_v52  }
  0x7b   :  { %671 = vperm.xlu1 %5072, %v273_v53   ;;  %666 = vperm.xlu0 %5071, %v272_v54   ;;  %v304_v54 = vld [vmem:[%s9409_s1 + $0x268] sm:$0xff] }
  0x7c   :  { %v5467_v55 = vpop.permute.xlu2 %511 }
  0x7d   :  { %v5469_v56 = vpop.permute.xlu1 %456  ;;  %v5471_v57 = vpop.permute.xlu0 %446 }
  0x82   :  { %691 = vperm.xlu2 %5073, %v277_v58   ;;  %v303_v58 = vld [vmem:[%s9409_s1 + $0x260] sm:$0xff] }
  0x83   :  { %686 = vperm.xlu1 %5072, %v276_v59   ;;  %681 = vperm.xlu0 %5071, %v275_v60   ;;  %v302_v59 = vld [vmem:[%s9409_s1 + $0x258] sm:$0xff] }
  0x84   :  { %v5482_v61 = vpop.permute.xlu2 %526 }
  0x85   :  { %v5484_v62 = vpop.permute.xlu1 %476  ;;  %v5486_v63 = vpop.permute.xlu0 %471 }
  0x8a   :  { %706 = vperm.xlu2 %5073, %v280_v0  }
  0x8b   :  { %701 = vperm.xlu1 %5072, %v279_v1   ;;  %696 = vperm.xlu0 %5071, %v278_v2   ;;  %v307_v2 = vld [vmem:[%s9409_s1 + $0x280] sm:$0xff] }
  0x8c   :  { %v5497_v3 = vpop.permute.xlu2 %541 }
  0x8d   :  { %v5499_v4 = vpop.permute.xlu1 %491  ;;  %v5501_v5 = vpop.permute.xlu0 %486 }
  0x92   :  { %721 = vperm.xlu2 %5073, %v283_v6   ;;  %v306_v6 = vld [vmem:[%s9409_s1 + $0x278] sm:$0xff] }
  0x93   :  { %716 = vperm.xlu1 %5072, %v282_v7   ;;  %711 = vperm.xlu0 %5071, %v281_v8   ;;  %v305_v7 = vld [vmem:[%s9409_s1 + $0x270] sm:$0xff] }
  0x94   :  { %v5512_v9 = vpop.permute.xlu2 %556 }
  0x95   :  { %v5514_v10 = vpop.permute.xlu1 %506  ;;  %v5516_v11 = vpop.permute.xlu0 %501 }
  0x9a   :  { %736 = vperm.xlu2 %5073, %v286_v12  }
  0x9b   :  { %731 = vperm.xlu1 %5072, %v285_v13   ;;  %726 = vperm.xlu0 %5071, %v284_v14   ;;  %v310_v14 = vld [vmem:[%s9409_s1 + $0x298] sm:$0xff] }
  0x9c   :  { %v5527_v15 = vpop.permute.xlu2 %571 }
  0x9d   :  { %v5529_v16 = vpop.permute.xlu1 %521  ;;  %v5531_v17 = vpop.permute.xlu0 %516 }
  0xa2   :  { %751 = vperm.xlu2 %5073, %v289_v18   ;;  %v309_v18 = vld [vmem:[%s9409_s1 + $0x290] sm:$0xff] }
  0xa3   :  { %746 = vperm.xlu1 %5072, %v288_v19   ;;  %741 = vperm.xlu0 %5071, %v287_v20   ;;  %v308_v19 = vld [vmem:[%s9409_s1 + $0x288] sm:$0xff] }
  0xa4   :  { %v5542_v21 = vpop.permute.xlu2 %586 }
  0xa5   :  { %v5544_v22 = vpop.permute.xlu1 %536  ;;  %v5546_v23 = vpop.permute.xlu0 %531 }
  0xaa   :  { %766 = vperm.xlu2 %5073, %v292_v24  }
  0xab   :  { %761 = vperm.xlu1 %5072, %v291_v25   ;;  %756 = vperm.xlu0 %5071, %v290_v26   ;;  %v313_v26 = vld [vmem:[%s9409_s1 + $0x2b0] sm:$0xff] }
  0xac   :  { %v5557_v27 = vpop.permute.xlu2 %601 }
  0xad   :  { %9413 = vst [vmem:[#allocation2_spill] sm:$0xff] %v5557_v27  ;;  %v5559_v28 = vpop.permute.xlu1 %551  ;;  %v5561_v29 = vpop.permute.xlu0 %546  ;;  %v5129_v27 = vld [vmem:[%s9409_s1 + $0x1a0] sm:$0xff] }
  0xb2   :  { %781 = vperm.xlu2 %5073, %v295_v30   ;;  %v312_v30 = vld [vmem:[%s9409_s1 + $0x2a8] sm:$0xff] }
  0xb3   :  { %776 = vperm.xlu1 %5072, %v294_v31   ;;  %771 = vperm.xlu0 %5071, %v293_v32   ;;  %v311_v31 = vld [vmem:[%s9409_s1 + $0x2a0] sm:$0xff] }
  0xb4   :  { %v5572_v33 = vpop.permute.xlu2 %616 }
  0xb5   :  { %9414 = vst [vmem:[#allocation3_spill] sm:$0xff] %v5572_v33  ;;  %v5574_v34 = vpop.permute.xlu1 %566  ;;  %v5576_v35 = vpop.permute.xlu0 %561 }
  0xba   :  { %796 = vperm.xlu2 %5073, %v298_v36  }
  0xbb   :  { %791 = vperm.xlu1 %5072, %v297_v38   ;;  %786 = vperm.xlu0 %5071, %v296_v39   ;;  %v316_v39 = vld [vmem:[%s9409_s1 + $0x2c8] sm:$0xff] }
  0xbc   :  { %v5587_v40 = vpop.permute.xlu2 %631 }
  0xbd   :  { %9415 = vst [vmem:[#allocation4_spill] sm:$0xff] %v5587_v40  ;;  %v5589_v42 = vpop.permute.xlu1 %581  ;;  %v5591_v43 = vpop.permute.xlu0 %576  ;;  %v27_v40 = vld [vmem:[%s9410_s0 + $0x60] sm:$0xff] }
  0xc2   :  { %811 = vperm.xlu2 %5073, %v301_v44   ;;  %v315_v44 = vld [vmem:[%s9409_s1 + $0x2c0] sm:$0xff] }
  0xc3   :  { %806 = vperm.xlu1 %5072, %v300_v46   ;;  %801 = vperm.xlu0 %5071, %v299_v47   ;;  %v314_v46 = vld [vmem:[%s9409_s1 + $0x2b8] sm:$0xff] }
  0xc4   :  { %v5602_v48 = vpop.permute.xlu2 %646 }
  0xc5   :  { %9416 = vst [vmem:[#allocation5_spill] sm:$0xff] %v5602_v48  ;;  %v5604_v52 = vpop.permute.xlu1 %596  ;;  %v5606_v53 = vpop.permute.xlu0 %591 }
  0xca   :  { %826 = vperm.xlu2 %5073, %v304_v54  }
  0xcb   :  { %821 = vperm.xlu1 %5072, %v303_v58   ;;  %816 = vperm.xlu0 %5071, %v302_v59   ;;  %v319_v59 = vld [vmem:[%s9409_s1 + $0x2e0] sm:$0xff] }
  0xcc   :  { %v5617_v60 = vpop.permute.xlu2 %661 }
  0xcd   :  { %9417 = vst [vmem:[#allocation6_spill] sm:$0xff] %v5617_v60  ;;  %v5619_v0 = vpop.permute.xlu1 %611  ;;  %v5621_v1 = vpop.permute.xlu0 %606 }
  0xce   :  { %9418 = vst [vmem:[#allocation7_spill] sm:$0xff] %v5619_v0  ;;  %v29_v0 = vld [vmem:[%s9410_s0 + $0x70] sm:$0xff] }
  0xcf   :  { %9419 = vst [vmem:[#allocation8_spill] sm:$0xff] %v5621_v1 }
  0xd2   :  { %841 = vperm.xlu2 %5073, %v307_v2   ;;  %v318_v2 = vld [vmem:[%s9409_s1 + $0x2d8] sm:$0xff] }
  0xd3   :  { %836 = vperm.xlu1 %5072, %v306_v6   ;;  %831 = vperm.xlu0 %5071, %v305_v7   ;;  %v317_v6 = vld [vmem:[%s9409_s1 + $0x2d0] sm:$0xff] }
  0xd4   :  { %v5632_v8 = vpop.permute.xlu2 %676 }
  0xd5   :  { %9420 = vst [vmem:[#allocation9_spill] sm:$0xff] %v5632_v8  ;;  %v5634_v12 = vpop.permute.xlu1 %626  ;;  %v5636_v13 = vpop.permute.xlu0 %621 }
  0xd6   :  { %9421 = vst [vmem:[#allocation10_spill] sm:$0xff] %v5634_v12  ;;  %v5133_v12 = vld [vmem:[%s9409_s1 + $0x1c0] sm:$0xff] }
  0xd7   :  { %9422 = vst [vmem:[#allocation11_spill] sm:$0xff] %v5636_v13  ;;  %v1513_v13 = vmul.f32 %v5467_v55, %v29_v0 }
  0xda   :  { %856 = vperm.xlu2 %5073, %v310_v14  }
  0xdb   :  { %851 = vperm.xlu1 %5072, %v309_v18   ;;  %846 = vperm.xlu0 %5071, %v308_v19   ;;  %v322_v19 = vld [vmem:[%s9409_s1 + $0x2f8] sm:$0xff] }
  0xdc   :  { %v5647_v20 = vpop.permute.xlu2 %691 }
  0xdd   :  { %9423 = vst [vmem:[#allocation12_spill] sm:$0xff] %v5647_v20  ;;  %v5649_v24 = vpop.permute.xlu1 %641  ;;  %v5651_v25 = vpop.permute.xlu0 %636  ;;  %v330_v20 = vld [vmem:[%s9409_s1 + $0x338] sm:$0xff] }
  0xde   :  { %9424 = vst [vmem:[#allocation13_spill] sm:$0xff] %v5649_v24 }
  0xdf   :  { %9425 = vst [vmem:[#allocation14_spill] sm:$0xff] %v5651_v25  ;;  %v5134_v25 = vld [vmem:[%s9409_s1 + $0x1c8] sm:$0xff] }
  0xe2   :  { %871 = vperm.xlu2 %5073, %v313_v26   ;;  %v321_v26 = vld [vmem:[%s9409_s1 + $0x2f0] sm:$0xff] }
  0xe3   :  { %866 = vperm.xlu1 %5072, %v312_v30   ;;  %861 = vperm.xlu0 %5071, %v311_v31   ;;  %v320_v30 = vld [vmem:[%s9409_s1 + $0x2e8] sm:$0xff] }
  0xe4   :  { %v5662_v32 = vpop.permute.xlu2 %706 }
  0xe5   :  { %9426 = vst [vmem:[#allocation15_spill] sm:$0xff] %v5662_v32  ;;  %v5664_v36 = vpop.permute.xlu1 %656  ;;  %v5666_v38 = vpop.permute.xlu0 %651  ;;  %v333_v32 = vld [vmem:[%s9409_s1 + $0x350] sm:$0xff] }
  0xe6   :  { %9427 = vst [vmem:[#allocation16_spill] sm:$0xff] %v5664_v36  ;;  %v1511_v36 = vmul.f32 %v5516_v11, %v27_v40  ;;  %v5135_v11 = vld [vmem:[%s9409_s1 + $0x1d0] sm:$0xff]  ;;  %v23_v40 = vld [vmem:[%s9410_s0 + $0x40] sm:$0xff] }
  0xe7   :  { %9428 = vst [vmem:[#allocation17_spill] sm:$0xff] %v5666_v38 }
  0xea   :  { %886 = vperm.xlu2 %5073, %v316_v39  }
  0xeb   :  { %881 = vperm.xlu1 %5072, %v315_v44   ;;  %876 = vperm.xlu0 %5071, %v314_v46   ;;  %v325_v46 = vld [vmem:[%s9409_s1 + $0x310] sm:$0xff] }
  0xec   :  { %v5677_v47 = vpop.permute.xlu2 %721 }
  0xed   :  { %9429 = vst [vmem:[#allocation18_spill] sm:$0xff] %v5677_v47  ;;  %v5679_v54 = vpop.permute.xlu1 %671  ;;  %v5681_v58 = vpop.permute.xlu0 %666  ;;  %v5290_v47 = vmov 1  }
  0xee   :  { %9430 = vst [vmem:[#allocation19_spill] sm:$0xff] %v5679_v54 }
  0xef   :  { %9431 = vst [vmem:[#allocation20_spill] sm:$0xff] %v5681_v58 }
  0xf2   :  { %901 = vperm.xlu2 %5073, %v319_v59   ;;  %v324_v59 = vld [vmem:[%s9409_s1 + $0x308] sm:$0xff] }
  0xf3   :  { %896 = vperm.xlu1 %5072, %v318_v2   ;;  %891 = vperm.xlu0 %5071, %v317_v6   ;;  %v323_v2 = vld [vmem:[%s9409_s1 + $0x300] sm:$0xff] }
  0xf4   :  { %v5692_v7 = vpop.permute.xlu2 %736 }
  0xf5   :  { %9432 = vst [vmem:[#allocation21_spill] sm:$0xff] %v5692_v7  ;;  %v5694_v14 = vpop.permute.xlu1 %686  ;;  %v5696_v18 = vpop.permute.xlu0 %681 }
  0xf6   :  { %9433 = vst [vmem:[#allocation22_spill] sm:$0xff] %v5694_v14  ;;  %v331_v14 = vld [vmem:[%s9409_s1 + $0x340] sm:$0xff] }
  0xf7   :  { %9434 = vst [vmem:[#allocation23_spill] sm:$0xff] %v5696_v18  ;;  %v327_v18 = vld [vmem:[%s9409_s1 + $0x320] sm:$0xff] }
  0xfa   :  { %916 = vperm.xlu2 %5073, %v322_v19  }
  0xfb   :  { %911 = vperm.xlu1 %5072, %v321_v26   ;;  %906 = vperm.xlu0 %5071, %v320_v30   ;;  %v328_v30 = vld [vmem:[%s9409_s1 + $0x328] sm:$0xff] }
  0xfc   :  { %v5707_v31 = vpop.permute.xlu2 %751 }
  0xfd   :  { %9435 = vst [vmem:[#allocation24_spill] sm:$0xff] %v5707_v31  ;;  %v5709_v39 = vpop.permute.xlu1 %701  ;;  %v5711_v44 = vpop.permute.xlu0 %696 }
  0xfe   :  { %9436 = vst [vmem:[#allocation25_spill] sm:$0xff] %v5709_v39  ;;  %v337_v39 = vld [vmem:[%s9409_s1 + $0x370] sm:$0xff] }
  0xff   :  { %9437 = vst [vmem:[#allocation26_spill] sm:$0xff] %v5711_v44  ;;  %v334_v44 = vld [vmem:[%s9409_s1 + $0x358] sm:$0xff] }
 0x102   :  { %931 = vperm.xlu2 %5073, %v325_v46   ;;  %v326_v46 = vld [vmem:[%s9409_s1 + $0x318] sm:$0xff] }
 0x103   :  { %926 = vperm.xlu1 %5072, %v324_v59   ;;  %921 = vperm.xlu0 %5071, %v323_v2  }
 0x104   :  { %v5722_v6 = vpop.permute.xlu2 %766 }
 0x105   :  { %9438 = vst [vmem:[#allocation27_spill] sm:$0xff] %v5722_v6  ;;  %v5724_v19 = vpop.permute.xlu1 %716  ;;  %v5726_v26 = vpop.permute.xlu0 %711 }
 0x106   :  { %9439 = vst [vmem:[#allocation28_spill] sm:$0xff] %v5724_v19  ;;  %v339_v19 = vld [vmem:[%s9409_s1 + $0x380] sm:$0xff] }
 0x107   :  { %9440 = vst [vmem:[#allocation29_spill] sm:$0xff] %v5726_v26  ;;  %v336_v26 = vld [vmem:[%s9409_s1 + $0x368] sm:$0xff] }
 0x10a   :  { %946 = vperm.xlu2 %5073, %v328_v30   ;;  %v329_v30 = vld [vmem:[%s9409_s1 + $0x330] sm:$0xff] }
 0x10b   :  { %941 = vperm.xlu1 %5072, %v327_v18   ;;  %936 = vperm.xlu0 %5071, %v326_v46  }
 0x10c   :  { %v5737_v59 = vpop.permute.xlu2 %781 }
 0x10d   :  { %9441 = vst [vmem:[#allocation30_spill] sm:$0xff] %v5737_v59  ;;  %v5739_v2 = vpop.permute.xlu1 %731  ;;  %v5741_v6 = vpop.permute.xlu0 %726 }
 0x10e   :  { %9442 = vst [vmem:[#allocation31_spill] sm:$0xff] %v5739_v2 }
 0x10f   :  { %9443 = vst [vmem:[#allocation32_spill] sm:$0xff] %v5741_v6 }
 0x112   :  { %961 = vperm.xlu2 %5073, %v331_v14   ;;  %v332_v14 = vld [vmem:[%s9409_s1 + $0x348] sm:$0xff] }
 0x113   :  { %956 = vperm.xlu1 %5072, %v330_v20   ;;  %951 = vperm.xlu0 %5071, %v329_v30  }
 0x114   :  { %v5752_v18 = vpop.permute.xlu2 %796 }
 0x115   :  { %9444 = vst [vmem:[#allocation33_spill] sm:$0xff] %v5752_v18  ;;  %v5754_v46 = vpop.permute.xlu1 %746  ;;  %v5756_v59 = vpop.permute.xlu0 %741 }
 0x116   :  { %9445 = vst [vmem:[#allocation34_spill] sm:$0xff] %v5754_v46 }
 0x117   :  { %9446 = vst [vmem:[#allocation35_spill] sm:$0xff] %v5756_v59 }
 0x11a   :  { %976 = vperm.xlu2 %5073, %v334_v44   ;;  %v335_v44 = vld [vmem:[%s9409_s1 + $0x360] sm:$0xff] }
 0x11b   :  { %971 = vperm.xlu1 %5072, %v333_v32   ;;  %966 = vperm.xlu0 %5071, %v332_v14  }
 0x11c   :  { %v5767_v20 = vpop.permute.xlu2 %811 }
 0x11d   :  { %9447 = vst [vmem:[#allocation36_spill] sm:$0xff] %v5767_v20  ;;  %v5769_v30 = vpop.permute.xlu1 %761  ;;  %v5771_v18 = vpop.permute.xlu0 %756  ;;  %v340_v20 = vld [vmem:[%s9409_s1 + $0x388] sm:$0xff] }
 0x11e   :  { %9448 = vst [vmem:[#allocation37_spill] sm:$0xff] %v5769_v30 }
 0x11f   :  { %9449 = vst [vmem:[#allocation38_spill] sm:$0xff] %v5771_v18  ;;  %v5126_v18 = vld [vmem:[%s9409_s1 + $0x188] sm:$0xff] }
 0x122   :  { %991 = vperm.xlu2 %5073, %v337_v39   ;;  %v338_v39 = vld [vmem:[%s9409_s1 + $0x378] sm:$0xff] }
 0x123   :  { %986 = vperm.xlu1 %5072, %v336_v26   ;;  %981 = vperm.xlu0 %5071, %v335_v44  }
 0x124   :  { %v5782_v32 = vpop.permute.xlu2 %826 }
 0x125   :  { %9450 = vst [vmem:[#allocation39_spill] sm:$0xff] %v5782_v32  ;;  %v5784_v14 = vpop.permute.xlu1 %776  ;;  %v5786_v30 = vpop.permute.xlu0 %771  ;;  %v342_v32 = vld [vmem:[%s9409_s1 + $0x398] sm:$0xff] }
 0x126   :  { %9451 = vst [vmem:[#allocation40_spill] sm:$0xff] %v5784_v14  ;;  %v343_v14 = vld [vmem:[%s9409_s1 + $0x3a0] sm:$0xff] }
 0x127   :  { %9452 = vst [vmem:[#allocation41_spill] sm:$0xff] %v5786_v30 }
 0x12a   :  { %1006 = vperm.xlu2 %5073, %v340_v20   ;;  %v341_v20 = vld [vmem:[%s9409_s1 + $0x390] sm:$0xff] }
 0x12b   :  { %1001 = vperm.xlu1 %5072, %v339_v19   ;;  %996 = vperm.xlu0 %5071, %v338_v39  }
 0x12c   :  { %v5797_v26 = vpop.permute.xlu2 %841 }
 0x12d   :  { %9453 = vst [vmem:[#allocation42_spill] sm:$0xff] %v5797_v26  ;;  %v5799_v44 = vpop.permute.xlu1 %791  ;;  %v5801_v30 = vpop.permute.xlu0 %786  ;;  %v345_v26 = vld [vmem:[%s9409_s1 + $0x3b0] sm:$0xff] }
 0x12e   :  { %9454 = vst [vmem:[#allocation43_spill] sm:$0xff] %v5799_v44  ;;  %v346_v44 = vld [vmem:[%s9409_s1 + $0x3b8] sm:$0xff] }
 0x12f   :  { %9455 = vst [vmem:[#allocation44_spill] sm:$0xff] %v5801_v30 }
 0x132   :  { %1021 = vperm.xlu2 %5073, %v343_v14   ;;  %v344_v14 = vld [vmem:[%s9409_s1 + $0x3a8] sm:$0xff] }
 0x133   :  { %1016 = vperm.xlu1 %5072, %v342_v32   ;;  %1011 = vperm.xlu0 %5071, %v341_v20  }
 0x134   :  { %v5812_v19 = vpop.permute.xlu2 %856 }
 0x135   :  { %9456 = vst [vmem:[#allocation45_spill] sm:$0xff] %v5812_v19  ;;  %v5814_v39 = vpop.permute.xlu1 %806  ;;  %v5816_v30 = vpop.permute.xlu0 %801 }
 0x136   :  { %9457 = vst [vmem:[#allocation46_spill] sm:$0xff] %v5814_v39  ;;  %v348_v39 = vld [vmem:[%s9409_s1 + $0x3c8] sm:$0xff] }
 0x137   :  { %9458 = vst [vmem:[#allocation47_spill] sm:$0xff] %v5816_v30  ;;  %v349_v30 = vld [vmem:[%s9409_s1 + $0x3d0] sm:$0xff] }
 0x13a   :  { %1036 = vperm.xlu2 %5073, %v346_v44   ;;  %v347_v44 = vld [vmem:[%s9409_s1 + $0x3c0] sm:$0xff] }
 0x13b   :  { %1031 = vperm.xlu1 %5072, %v345_v26   ;;  %1026 = vperm.xlu0 %5071, %v344_v14  }
 0x13c   :  { %v5827_v32 = vpop.permute.xlu2 %871 }
 0x13d   :  { %9459 = vst [vmem:[#allocation48_spill] sm:$0xff] %v5827_v32  ;;  %v5829_v20 = vpop.permute.xlu1 %821  ;;  %v5831_v19 = vpop.permute.xlu0 %816 }
 0x13e   :  { %9460 = vst [vmem:[#allocation49_spill] sm:$0xff] %v5829_v20  ;;  %v351_v20 = vld [vmem:[%s9409_s1 + $0x3e0] sm:$0xff] }
 0x13f   :  { %9461 = vst [vmem:[#allocation50_spill] sm:$0xff] %v5831_v19  ;;  %v352_v19 = vld [vmem:[%s9409_s1 + $0x3e8] sm:$0xff] }
 0x142   :  { %1051 = vperm.xlu2 %5073, %v349_v30   ;;  %v350_v30 = vld [vmem:[%s9409_s1 + $0x3d8] sm:$0xff] }
 0x143   :  { %1046 = vperm.xlu1 %5072, %v348_v39   ;;  %1041 = vperm.xlu0 %5071, %v347_v44  }
 0x144   :  { %v5842_v26 = vpop.permute.xlu2 %886 }
 0x145   :  { %9462 = vst [vmem:[#allocation51_spill] sm:$0xff] %v5842_v26  ;;  %v5844_v14 = vpop.permute.xlu1 %836  ;;  %v5846_v32 = vpop.permute.xlu0 %831 }
 0x146   :  { %9463 = vst [vmem:[#allocation52_spill] sm:$0xff] %v5844_v14  ;;  %v355_v14 = vld [vmem:[%s9409_s1 + $0x400] sm:$0xff] }
 0x147   :  { %9464 = vst [vmem:[#allocation53_spill] sm:$0xff] %v5846_v32  ;;  %v354_v32 = vld [vmem:[%s9409_s1 + $0x3f8] sm:$0xff] }
 0x14a   :  { %1066 = vperm.xlu2 %5073, %v352_v19   ;;  %v353_v19 = vld [vmem:[%s9409_s1 + $0x3f0] sm:$0xff] }
 0x14b   :  { %1061 = vperm.xlu1 %5072, %v351_v20   ;;  %1056 = vperm.xlu0 %5071, %v350_v30  }
 0x14c   :  { %v5857_v39 = vpop.permute.xlu2 %901 }
 0x14d   :  { %9465 = vst [vmem:[#allocation54_spill] sm:$0xff] %v5857_v39  ;;  %v5859_v44 = vpop.permute.xlu1 %851  ;;  %v5861_v26 = vpop.permute.xlu0 %846  ;;  %v358_v39 = vld [vmem:[%s9409_s1 + $0x418] sm:$0xff] }
 0x14e   :  { %9466 = vst [vmem:[#allocation55_spill] sm:$0xff] %v5859_v44 }
 0x14f   :  { %9467 = vst [vmem:[#allocation56_spill] sm:$0xff] %v5861_v26  ;;  %v357_v26 = vld [vmem:[%s9409_s1 + $0x410] sm:$0xff] }
 0x152   :  { %1081 = vperm.xlu2 %5073, %v355_v14   ;;  %v356_v14 = vld [vmem:[%s9409_s1 + $0x408] sm:$0xff] }
 0x153   :  { %1076 = vperm.xlu1 %5072, %v354_v32   ;;  %1071 = vperm.xlu0 %5071, %v353_v19  }
 0x154   :  { %v5872_v20 = vpop.permute.xlu2 %916 }
 0x155   :  { %9468 = vst [vmem:[#allocation57_spill] sm:$0xff] %v5872_v20  ;;  %v5874_v30 = vpop.permute.xlu1 %866  ;;  %v5876_v44 = vpop.permute.xlu0 %861  ;;  %v360_v20 = vld [vmem:[%s9409_s1 + $0x428] sm:$0xff] }
 0x156   :  { %9469 = vst [vmem:[#allocation58_spill] sm:$0xff] %v5874_v30  ;;  %v361_v30 = vld [vmem:[%s9409_s1 + $0x430] sm:$0xff] }
 0x157   :  { %9470 = vst [vmem:[#allocation59_spill] sm:$0xff] %v5876_v44 }
 0x15a   :  { %1096 = vperm.xlu2 %5073, %v358_v39   ;;  %v359_v39 = vld [vmem:[%s9409_s1 + $0x420] sm:$0xff] }
 0x15b   :  { %1091 = vperm.xlu1 %5072, %v357_v26   ;;  %1086 = vperm.xlu0 %5071, %v356_v14  }
 0x15c   :  { %v5887_v32 = vpop.permute.xlu2 %931 }
 0x15d   :  { %9471 = vst [vmem:[#allocation60_spill] sm:$0xff] %v5887_v32  ;;  %v5889_v19 = vpop.permute.xlu1 %881  ;;  %v5891_v44 = vpop.permute.xlu0 %876 }
 0x15e   :  { %9472 = vst [vmem:[#allocation61_spill] sm:$0xff] %v5889_v19  ;;  %v363_v19 = vld [vmem:[%s9409_s1 + $0x440] sm:$0xff] }
 0x15f   :  { %9473 = vst [vmem:[#allocation62_spill] sm:$0xff] %v5891_v44  ;;  %v364_v44 = vld [vmem:[%s9409_s1 + $0x448] sm:$0xff] }
 0x162   :  { %1111 = vperm.xlu2 %5073, %v361_v30   ;;  %v362_v30 = vld [vmem:[%s9409_s1 + $0x438] sm:$0xff] }
 0x163   :  { %1106 = vperm.xlu1 %5072, %v360_v20   ;;  %1101 = vperm.xlu0 %5071, %v359_v39  }
 0x164   :  { %v5902_v26 = vpop.permute.xlu2 %946 }
 0x165   :  { %9474 = vst [vmem:[#allocation63_spill] sm:$0xff] %v5902_v26  ;;  %v5904_v14 = vpop.permute.xlu1 %896  ;;  %v5906_v32 = vpop.permute.xlu0 %891 }
 0x166   :  { %9475 = vst [vmem:[#allocation64_spill] sm:$0xff] %v5904_v14  ;;  %v366_v14 = vld [vmem:[%s9409_s1 + $0x458] sm:$0xff] }
 0x167   :  { %9476 = vst [vmem:[#allocation65_spill] sm:$0xff] %v5906_v32  ;;  %v367_v32 = vld [vmem:[%s9409_s1 + $0x460] sm:$0xff] }
 0x16a   :  { %1126 = vperm.xlu2 %5073, %v364_v44   ;;  %v365_v44 = vld [vmem:[%s9409_s1 + $0x450] sm:$0xff] }
 0x16b   :  { %1121 = vperm.xlu1 %5072, %v363_v19   ;;  %1116 = vperm.xlu0 %5071, %v362_v30  }
 0x16c   :  { %v5917_v20 = vpop.permute.xlu2 %961 }
 0x16d   :  { %9477 = vst [vmem:[#allocation66_spill] sm:$0xff] %v5917_v20  ;;  %v5919_v39 = vpop.permute.xlu1 %911  ;;  %v5921_v26 = vpop.permute.xlu0 %906 }
 0x16e   :  { %9478 = vst [vmem:[#allocation67_spill] sm:$0xff] %v5919_v39  ;;  %v369_v39 = vld [vmem:[%s9409_s1 + $0x470] sm:$0xff] }
 0x16f   :  { %9479 = vst [vmem:[#allocation68_spill] sm:$0xff] %v5921_v26  ;;  %v370_v26 = vld [vmem:[%s9409_s1 + $0x478] sm:$0xff] }
 0x172   :  { %1141 = vperm.xlu2 %5073, %v367_v32   ;;  %v368_v32 = vld [vmem:[%s9409_s1 + $0x468] sm:$0xff] }
 0x173   :  { %1136 = vperm.xlu1 %5072, %v366_v14   ;;  %1131 = vperm.xlu0 %5071, %v365_v44  }
 0x174   :  { %v5932_v19 = vpop.permute.xlu2 %976 }
 0x175   :  { %9480 = vst [vmem:[#allocation69_spill] sm:$0xff] %v5932_v19  ;;  %v5934_v30 = vpop.permute.xlu1 %926  ;;  %v5936_v20 = vpop.permute.xlu0 %921  ;;  %v372_v19 = vld [vmem:[%s9409_s1 + $0x488] sm:$0xff] }
 0x176   :  { %9481 = vst [vmem:[#allocation70_spill] sm:$0xff] %v5934_v30  ;;  %v373_v30 = vld [vmem:[%s9409_s1 + $0x490] sm:$0xff] }
 0x177   :  { %9482 = vst [vmem:[#allocation71_spill] sm:$0xff] %v5936_v20 }
 0x17a   :  { %1156 = vperm.xlu2 %5073, %v370_v26   ;;  %v371_v26 = vld [vmem:[%s9409_s1 + $0x480] sm:$0xff] }
 0x17b   :  { %1151 = vperm.xlu1 %5072, %v369_v39   ;;  %1146 = vperm.xlu0 %5071, %v368_v32  }
 0x17c   :  { %v5947_v14 = vpop.permute.xlu2 %991 }
 0x17d   :  { %9483 = vst [vmem:[#allocation72_spill] sm:$0xff] %v5947_v14  ;;  %v5949_v44 = vpop.permute.xlu1 %941  ;;  %v5951_v20 = vpop.permute.xlu0 %936  ;;  %v375_v14 = vld [vmem:[%s9409_s1 + $0x4a0] sm:$0xff] }
 0x17e   :  { %9484 = vst [vmem:[#allocation73_spill] sm:$0xff] %v5949_v44  ;;  %v376_v44 = vld [vmem:[%s9409_s1 + $0x4a8] sm:$0xff] }
 0x17f   :  { %9485 = vst [vmem:[#allocation74_spill] sm:$0xff] %v5951_v20 }
 0x182   :  { %1171 = vperm.xlu2 %5073, %v373_v30   ;;  %v374_v30 = vld [vmem:[%s9409_s1 + $0x498] sm:$0xff] }
 0x183   :  { %1166 = vperm.xlu1 %5072, %v372_v19   ;;  %1161 = vperm.xlu0 %5071, %v371_v26  }
 0x184   :  { %v5962_v39 = vpop.permute.xlu2 %1006 }
 0x185   :  { %9486 = vst [vmem:[#allocation75_spill] sm:$0xff] %v5962_v39  ;;  %v5964_v32 = vpop.permute.xlu1 %956  ;;  %v5966_v20 = vpop.permute.xlu0 %951  ;;  %v378_v39 = vld [vmem:[%s9409_s1 + $0x4b8] sm:$0xff] }
 0x186   :  { %9487 = vst [vmem:[#allocation76_spill] sm:$0xff] %v5964_v32  ;;  %v379_v32 = vld [vmem:[%s9409_s1 + $0x4c0] sm:$0xff] }
 0x187   :  { %9488 = vst [vmem:[#allocation77_spill] sm:$0xff] %v5966_v20 }
 0x18a   :  { %1186 = vperm.xlu2 %5073, %v376_v44   ;;  %v377_v44 = vld [vmem:[%s9409_s1 + $0x4b0] sm:$0xff] }
 0x18b   :  { %1181 = vperm.xlu1 %5072, %v375_v14   ;;  %1176 = vperm.xlu0 %5071, %v374_v30  }
 0x18c   :  { %v5977_v19 = vpop.permute.xlu2 %1021 }
 0x18d   :  { %9489 = vst [vmem:[#allocation78_spill] sm:$0xff] %v5977_v19  ;;  %v5979_v26 = vpop.permute.xlu1 %971  ;;  %v5981_v20 = vpop.permute.xlu0 %966 }
 0x18e   :  { %9490 = vst [vmem:[#allocation79_spill] sm:$0xff] %v5979_v26  ;;  %v381_v26 = vld [vmem:[%s9409_s1 + $0x4d0] sm:$0xff] }
 0x18f   :  { %9491 = vst [vmem:[#allocation80_spill] sm:$0xff] %v5981_v20  ;;  %v382_v20 = vld [vmem:[%s9409_s1 + $0x4d8] sm:$0xff] }
 0x192   :  { %1201 = vperm.xlu2 %5073, %v379_v32   ;;  %v380_v32 = vld [vmem:[%s9409_s1 + $0x4c8] sm:$0xff] }
 0x193   :  { %1196 = vperm.xlu1 %5072, %v378_v39   ;;  %1191 = vperm.xlu0 %5071, %v377_v44  }
 0x194   :  { %v5992_v14 = vpop.permute.xlu2 %1036 }
 0x195   :  { %9492 = vst [vmem:[#allocation81_spill] sm:$0xff] %v5992_v14  ;;  %v5994_v30 = vpop.permute.xlu1 %986  ;;  %v5996_v19 = vpop.permute.xlu0 %981 }
 0x196   :  { %9493 = vst [vmem:[#allocation82_spill] sm:$0xff] %v5994_v30  ;;  %v384_v30 = vld [vmem:[%s9409_s1 + $0x4e8] sm:$0xff] }
 0x197   :  { %9494 = vst [vmem:[#allocation83_spill] sm:$0xff] %v5996_v19  ;;  %v385_v19 = vld [vmem:[%s9409_s1 + $0x4f0] sm:$0xff] }
 0x19a   :  { %1216 = vperm.xlu2 %5073, %v382_v20   ;;  %v383_v20 = vld [vmem:[%s9409_s1 + $0x4e0] sm:$0xff] }
 0x19b   :  { %1211 = vperm.xlu1 %5072, %v381_v26   ;;  %1206 = vperm.xlu0 %5071, %v380_v32  }
 0x19c   :  { %v6007_v39 = vpop.permute.xlu2 %1051 }
 0x19d   :  { %9495 = vst [vmem:[#allocation84_spill] sm:$0xff] %v6007_v39  ;;  %v6009_v44 = vpop.permute.xlu1 %1001  ;;  %v6011_v14 = vpop.permute.xlu0 %996 }
 0x19e   :  { %9496 = vst [vmem:[#allocation85_spill] sm:$0xff] %v6009_v44  ;;  %v388_v44 = vld [vmem:[%s9409_s1 + $0x508] sm:$0xff] }
 0x19f   :  { %9497 = vst [vmem:[#allocation86_spill] sm:$0xff] %v6011_v14  ;;  %v387_v14 = vld [vmem:[%s9409_s1 + $0x500] sm:$0xff] }
 0x1a2   :  { %1231 = vperm.xlu2 %5073, %v385_v19   ;;  %v386_v19 = vld [vmem:[%s9409_s1 + $0x4f8] sm:$0xff] }
 0x1a3   :  { %1226 = vperm.xlu1 %5072, %v384_v30   ;;  %1221 = vperm.xlu0 %5071, %v383_v20  }
 0x1a4   :  { %v6022_v26 = vpop.permute.xlu2 %1066 }
 0x1a5   :  { %9498 = vst [vmem:[#allocation87_spill] sm:$0xff] %v6022_v26  ;;  %v6024_v32 = vpop.permute.xlu1 %1016  ;;  %v6026_v39 = vpop.permute.xlu0 %1011  ;;  %v390_v26 = vld [vmem:[%s9409_s1 + $0x518] sm:$0xff] }
 0x1a6   :  { %9499 = vst [vmem:[#allocation88_spill] sm:$0xff] %v6024_v32  ;;  %v391_v32 = vld [vmem:[%s9409_s1 + $0x520] sm:$0xff] }
 0x1a7   :  { %9500 = vst [vmem:[#allocation89_spill] sm:$0xff] %v6026_v39 }
 0x1aa   :  { %1246 = vperm.xlu2 %5073, %v388_v44   ;;  %v389_v44 = vld [vmem:[%s9409_s1 + $0x510] sm:$0xff] }
 0x1ab   :  { %1241 = vperm.xlu1 %5072, %v387_v14   ;;  %1236 = vperm.xlu0 %5071, %v386_v19  }
 0x1ac   :  { %v6037_v30 = vpop.permute.xlu2 %1081 }
 0x1ad   :  { %9501 = vst [vmem:[#allocation90_spill] sm:$0xff] %v6037_v30  ;;  %v6039_v20 = vpop.permute.xlu1 %1031  ;;  %v6041_v39 = vpop.permute.xlu0 %1026  ;;  %v393_v30 = vld [vmem:[%s9409_s1 + $0x530] sm:$0xff] }
 0x1ae   :  { %9502 = vst [vmem:[#allocation91_spill] sm:$0xff] %v6039_v20  ;;  %v394_v20 = vld [vmem:[%s9409_s1 + $0x538] sm:$0xff] }
 0x1af   :  { %9503 = vst [vmem:[#allocation92_spill] sm:$0xff] %v6041_v39 }
 0x1b2   :  { %1261 = vperm.xlu2 %5073, %v391_v32   ;;  %v392_v32 = vld [vmem:[%s9409_s1 + $0x528] sm:$0xff] }
 0x1b3   :  { %1256 = vperm.xlu1 %5072, %v390_v26   ;;  %1251 = vperm.xlu0 %5071, %v389_v44  }
 0x1b4   :  { %v6052_v14 = vpop.permute.xlu2 %1096 }
 0x1b5   :  { %9504 = vst [vmem:[#allocation93_spill] sm:$0xff] %v6052_v14  ;;  %v6054_v19 = vpop.permute.xlu1 %1046  ;;  %v6056_v39 = vpop.permute.xlu0 %1041 }
 0x1b6   :  { %9505 = vst [vmem:[#allocation94_spill] sm:$0xff] %v6054_v19  ;;  %v396_v19 = vld [vmem:[%s9409_s1 + $0x548] sm:$0xff] }
 0x1b7   :  { %9506 = vst [vmem:[#allocation95_spill] sm:$0xff] %v6056_v39  ;;  %v397_v39 = vld [vmem:[%s9409_s1 + $0x550] sm:$0xff] }
 0x1ba   :  { %1276 = vperm.xlu2 %5073, %v394_v20   ;;  %v395_v20 = vld [vmem:[%s9409_s1 + $0x540] sm:$0xff] }
 0x1bb   :  { %1271 = vperm.xlu1 %5072, %v393_v30   ;;  %1266 = vperm.xlu0 %5071, %v392_v32  }
 0x1bc   :  { %v6067_v26 = vpop.permute.xlu2 %1111 }
 0x1bd   :  { %9507 = vst [vmem:[#allocation96_spill] sm:$0xff] %v6067_v26  ;;  %v6069_v44 = vpop.permute.xlu1 %1061  ;;  %v6071_v14 = vpop.permute.xlu0 %1056 }
 0x1be   :  { %9508 = vst [vmem:[#allocation97_spill] sm:$0xff] %v6069_v44  ;;  %v399_v44 = vld [vmem:[%s9409_s1 + $0x560] sm:$0xff] }
 0x1bf   :  { %9509 = vst [vmem:[#allocation98_spill] sm:$0xff] %v6071_v14  ;;  %v400_v14 = vld [vmem:[%s9409_s1 + $0x568] sm:$0xff] }
 0x1c2   :  { %1291 = vperm.xlu2 %5073, %v397_v39   ;;  %v398_v39 = vld [vmem:[%s9409_s1 + $0x558] sm:$0xff] }
 0x1c3   :  { %1286 = vperm.xlu1 %5072, %v396_v19   ;;  %1281 = vperm.xlu0 %5071, %v395_v20  }
 0x1c4   :  { %v6082_v30 = vpop.permute.xlu2 %1126 }
 0x1c5   :  { %9510 = vst [vmem:[#allocation99_spill] sm:$0xff] %v6082_v30  ;;  %v6084_v32 = vpop.permute.xlu1 %1076  ;;  %v6086_v26 = vpop.permute.xlu0 %1071 }
 0x1c6   :  { %9511 = vst [vmem:[#allocation100_spill] sm:$0xff] %v6084_v32  ;;  %v403_v32 = vld [vmem:[%s9409_s1 + $0x580] sm:$0xff] }
 0x1c7   :  { %9512 = vst [vmem:[#allocation101_spill] sm:$0xff] %v6086_v26  ;;  %v402_v26 = vld [vmem:[%s9409_s1 + $0x578] sm:$0xff] }
 0x1ca   :  { %1306 = vperm.xlu2 %5073, %v400_v14   ;;  %v401_v14 = vld [vmem:[%s9409_s1 + $0x570] sm:$0xff] }
 0x1cb   :  { %1301 = vperm.xlu1 %5072, %v399_v44   ;;  %1296 = vperm.xlu0 %5071, %v398_v39  }
 0x1cc   :  { %v6097_v19 = vpop.permute.xlu2 %1141 }
 0x1cd   :  { %9513 = vst [vmem:[#allocation102_spill] sm:$0xff] %v6097_v19  ;;  %v6099_v20 = vpop.permute.xlu1 %1091  ;;  %v6101_v30 = vpop.permute.xlu0 %1086  ;;  %v406_v19 = vld [vmem:[%s9409_s1 + $0x598] sm:$0xff] }
 0x1ce   :  { %9514 = vst [vmem:[#allocation103_spill] sm:$0xff] %v6099_v20 }
 0x1cf   :  { %9515 = vst [vmem:[#allocation104_spill] sm:$0xff] %v6101_v30  ;;  %v405_v30 = vld [vmem:[%s9409_s1 + $0x590] sm:$0xff] }
 0x1d2   :  { %1321 = vperm.xlu2 %5073, %v403_v32   ;;  %v404_v32 = vld [vmem:[%s9409_s1 + $0x588] sm:$0xff] }
 0x1d3   :  { %1316 = vperm.xlu1 %5072, %v402_v26   ;;  %1311 = vperm.xlu0 %5071, %v401_v14  }
 0x1d4   :  { %v6112_v44 = vpop.permute.xlu2 %1156 }
 0x1d5   :  { %9516 = vst [vmem:[#allocation105_spill] sm:$0xff] %v6112_v44  ;;  %v6114_v39 = vpop.permute.xlu1 %1106  ;;  %v6116_v20 = vpop.permute.xlu0 %1101  ;;  %v408_v44 = vld [vmem:[%s9409_s1 + $0x5a8] sm:$0xff] }
 0x1d6   :  { %9517 = vst [vmem:[#allocation106_spill] sm:$0xff] %v6114_v39  ;;  %v409_v39 = vld [vmem:[%s9409_s1 + $0x5b0] sm:$0xff] }
 0x1d7   :  { %9518 = vst [vmem:[#allocation107_spill] sm:$0xff] %v6116_v20 }
 0x1da   :  { %1336 = vperm.xlu2 %5073, %v406_v19   ;;  %v407_v19 = vld [vmem:[%s9409_s1 + $0x5a0] sm:$0xff] }
 0x1db   :  { %1331 = vperm.xlu1 %5072, %v405_v30   ;;  %1326 = vperm.xlu0 %5071, %v404_v32  }
 0x1dc   :  { %v6127_v26 = vpop.permute.xlu2 %1171 }
 0x1dd   :  { %9519 = vst [vmem:[#allocation108_spill] sm:$0xff] %v6127_v26  ;;  %v6129_v14 = vpop.permute.xlu1 %1121  ;;  %v6131_v20 = vpop.permute.xlu0 %1116 }
 0x1de   :  { %9520 = vst [vmem:[#allocation109_spill] sm:$0xff] %v6129_v14  ;;  %v411_v14 = vld [vmem:[%s9409_s1 + $0x5c0] sm:$0xff] }
 0x1df   :  { %9521 = vst [vmem:[#allocation110_spill] sm:$0xff] %v6131_v20  ;;  %v412_v20 = vld [vmem:[%s9409_s1 + $0x5c8] sm:$0xff] }
 0x1e2   :  { %1351 = vperm.xlu2 %5073, %v409_v39   ;;  %v410_v39 = vld [vmem:[%s9409_s1 + $0x5b8] sm:$0xff] }
 0x1e3   :  { %1346 = vperm.xlu1 %5072, %v408_v44   ;;  %1341 = vperm.xlu0 %5071, %v407_v19  }
 0x1e4   :  { %v6142_v30 = vpop.permute.xlu2 %1186 }
 0x1e5   :  { %9522 = vst [vmem:[#allocation111_spill] sm:$0xff] %v6142_v30  ;;  %v6144_v32 = vpop.permute.xlu1 %1136  ;;  %v6146_v26 = vpop.permute.xlu0 %1131 }
 0x1e6   :  { %9523 = vst [vmem:[#allocation112_spill] sm:$0xff] %v6144_v32  ;;  %v414_v32 = vld [vmem:[%s9409_s1 + $0x5d8] sm:$0xff] }
 0x1e7   :  { %9524 = vst [vmem:[#allocation113_spill] sm:$0xff] %v6146_v26  ;;  %v415_v26 = vld [vmem:[%s9409_s1 + $0x5e0] sm:$0xff] }
 0x1ea   :  { %1366 = vperm.xlu2 %5073, %v412_v20   ;;  %v413_v20 = vld [vmem:[%s9409_s1 + $0x5d0] sm:$0xff] }
 0x1eb   :  { %1361 = vperm.xlu1 %5072, %v411_v14   ;;  %1356 = vperm.xlu0 %5071, %v410_v39  }
 0x1ec   :  { %v6157_v44 = vpop.permute.xlu2 %1201 }
 0x1ed   :  { %9525 = vst [vmem:[#allocation114_spill] sm:$0xff] %v6157_v44  ;;  %v6159_v19 = vpop.permute.xlu1 %1151  ;;  %v6161_v30 = vpop.permute.xlu0 %1146 }
 0x1ee   :  { %9526 = vst [vmem:[#allocation115_spill] sm:$0xff] %v6159_v19  ;;  %v417_v19 = vld [vmem:[%s9409_s1 + $0x5f0] sm:$0xff] }
 0x1ef   :  { %9527 = vst [vmem:[#allocation116_spill] sm:$0xff] %v6161_v30  ;;  %v418_v30 = vld [vmem:[%s9409_s1 + $0x5f8] sm:$0xff] }
 0x1f2   :  { %1381 = vperm.xlu2 %5073, %v415_v26   ;;  %v416_v26 = vld [vmem:[%s9409_s1 + $0x5e8] sm:$0xff] }
 0x1f3   :  { %1376 = vperm.xlu1 %5072, %v414_v32   ;;  %1371 = vperm.xlu0 %5071, %v413_v20  }
 0x1f4   :  { %v6172_v14 = vpop.permute.xlu2 %1216 }
 0x1f5   :  { %9528 = vst [vmem:[#allocation117_spill] sm:$0xff] %v6172_v14  ;;  %v6174_v39 = vpop.permute.xlu1 %1166  ;;  %v6176_v44 = vpop.permute.xlu0 %1161  ;;  %v420_v14 = vld [vmem:[%s9409_s1 + $0x608] sm:$0xff] }
 0x1f6   :  { %9529 = vst [vmem:[#allocation118_spill] sm:$0xff] %v6174_v39  ;;  %v421_v39 = vld [vmem:[%s9409_s1 + $0x610] sm:$0xff] }
 0x1f7   :  { %9530 = vst [vmem:[#allocation119_spill] sm:$0xff] %v6176_v44 }
 0x1fa   :  { %1396 = vperm.xlu2 %5073, %v418_v30   ;;  %v419_v30 = vld [vmem:[%s9409_s1 + $0x600] sm:$0xff] }
 0x1fb   :  { %1391 = vperm.xlu1 %5072, %v417_v19   ;;  %1386 = vperm.xlu0 %5071, %v416_v26  }
 0x1fc   :  { %v6187_v32 = vpop.permute.xlu2 %1231 }
 0x1fd   :  { %9531 = vst [vmem:[#allocation120_spill] sm:$0xff] %v6187_v32  ;;  %v6189_v20 = vpop.permute.xlu1 %1181  ;;  %v6191_v44 = vpop.permute.xlu0 %1176  ;;  %v423_v32 = vld [vmem:[%s9409_s1 + $0x620] sm:$0xff] }
 0x1fe   :  { %9532 = vst [vmem:[#allocation121_spill] sm:$0xff] %v6189_v20  ;;  %v424_v20 = vld [vmem:[%s9409_s1 + $0x628] sm:$0xff] }
 0x1ff   :  { %9533 = vst [vmem:[#allocation122_spill] sm:$0xff] %v6191_v44 }
 0x202   :  { %1411 = vperm.xlu2 %5073, %v421_v39   ;;  %v422_v39 = vld [vmem:[%s9409_s1 + $0x618] sm:$0xff] }
 0x203   :  { %1406 = vperm.xlu1 %5072, %v420_v14   ;;  %1401 = vperm.xlu0 %5071, %v419_v30  }
 0x204   :  { %v6202_v19 = vpop.permute.xlu2 %1246 }
 0x205   :  { %9534 = vst [vmem:[#allocation123_spill] sm:$0xff] %v6202_v19  ;;  %v6204_v26 = vpop.permute.xlu1 %1196  ;;  %v6206_v44 = vpop.permute.xlu0 %1191 }
 0x206   :  { %9535 = vst [vmem:[#allocation124_spill] sm:$0xff] %v6204_v26  ;;  %v426_v26 = vld [vmem:[%s9409_s1 + $0x638] sm:$0xff] }
 0x207   :  { %9536 = vst [vmem:[#allocation125_spill] sm:$0xff] %v6206_v44  ;;  %v427_v44 = vld [vmem:[%s9409_s1 + $0x640] sm:$0xff] }
 0x20a   :  { %1426 = vperm.xlu2 %5073, %v424_v20   ;;  %v425_v20 = vld [vmem:[%s9409_s1 + $0x630] sm:$0xff] }
 0x20b   :  { %1421 = vperm.xlu1 %5072, %v423_v32   ;;  %1416 = vperm.xlu0 %5071, %v422_v39  }
 0x20c   :  { %v6217_v14 = vpop.permute.xlu2 %1261 }
 0x20d   :  { %9537 = vst [vmem:[#allocation126_spill] sm:$0xff] %v6217_v14  ;;  %v6219_v30 = vpop.permute.xlu1 %1211  ;;  %v6221_v19 = vpop.permute.xlu0 %1206 }
 0x20e   :  { %9538 = vst [vmem:[#allocation127_spill] sm:$0xff] %v6219_v30  ;;  %v429_v30 = vld [vmem:[%s9409_s1 + $0x650] sm:$0xff] }
 0x20f   :  { %9539 = vst [vmem:[#allocation128_spill] sm:$0xff] %v6221_v19  ;;  %v430_v19 = vld [vmem:[%s9409_s1 + $0x658] sm:$0xff] }
 0x212   :  { %1441 = vperm.xlu2 %5073, %v427_v44   ;;  %v428_v44 = vld [vmem:[%s9409_s1 + $0x648] sm:$0xff] }
 0x213   :  { %1436 = vperm.xlu1 %5072, %v426_v26   ;;  %1431 = vperm.xlu0 %5071, %v425_v20  }
 0x214   :  { %v6232_v32 = vpop.permute.xlu2 %1276 }
 0x215   :  { %9540 = vst [vmem:[#allocation129_spill] sm:$0xff] %v6232_v32  ;;  %v6234_v39 = vpop.permute.xlu1 %1226  ;;  %v6236_v14 = vpop.permute.xlu0 %1221 }
 0x216   :  { %9541 = vst [vmem:[#allocation130_spill] sm:$0xff] %v6234_v39  ;;  %v433_v39 = vld [vmem:[%s9409_s1 + $0x670] sm:$0xff] }
 0x217   :  { %9542 = vst [vmem:[#allocation131_spill] sm:$0xff] %v6236_v14  ;;  %v432_v14 = vld [vmem:[%s9409_s1 + $0x668] sm:$0xff] }
 0x21a   :  { %1456 = vperm.xlu2 %5073, %v430_v19   ;;  %v431_v19 = vld [vmem:[%s9409_s1 + $0x660] sm:$0xff] }
 0x21b   :  { %1451 = vperm.xlu1 %5072, %v429_v30   ;;  %1446 = vperm.xlu0 %5071, %v428_v44  }
 0x21c   :  { %v6247_v26 = vpop.permute.xlu2 %1291 }
 0x21d   :  { %9543 = vst [vmem:[#allocation132_spill] sm:$0xff] %v6247_v26  ;;  %v6249_v20 = vpop.permute.xlu1 %1241  ;;  %v6251_v32 = vpop.permute.xlu0 %1236  ;;  %v436_v26 = vld [vmem:[%s9409_s1 + $0x688] sm:$0xff] }
 0x21e   :  { %9544 = vst [vmem:[#allocation133_spill] sm:$0xff] %v6249_v20 }
 0x21f   :  { %9545 = vst [vmem:[#allocation134_spill] sm:$0xff] %v6251_v32  ;;  %v435_v32 = vld [vmem:[%s9409_s1 + $0x680] sm:$0xff] }
 0x222   :  { %1471 = vperm.xlu2 %5073, %v433_v39   ;;  %v434_v39 = vld [vmem:[%s9409_s1 + $0x678] sm:$0xff] }
 0x223   :  { %1466 = vperm.xlu1 %5072, %v432_v14   ;;  %1461 = vperm.xlu0 %5071, %v431_v19  }
 0x224   :  { %v6262_v30 = vpop.permute.xlu2 %1306 }
 0x225   :  { %9546 = vst [vmem:[#allocation135_spill] sm:$0xff] %v6262_v30  ;;  %v6264_v44 = vpop.permute.xlu1 %1256  ;;  %v6266_v20 = vpop.permute.xlu0 %1251  ;;  %v437_v30 = vld [vmem:[%s9409_s1 + $0x690] sm:$0xff] }
 0x226   :  { %9547 = vst [vmem:[#allocation136_spill] sm:$0xff] %v6264_v44 }
 0x227   :  { %9548 = vst [vmem:[#allocation137_spill] sm:$0xff] %v6266_v20  ;;  %v438_v20 = vld [vmem:[%s9409_s1 + $0x698] sm:$0xff] }
 0x22a   :  { %1486 = vperm.xlu2 %5073, %v436_v26  }
 0x22b   :  { %1481 = vperm.xlu1 %5072, %v435_v32   ;;  %1476 = vperm.xlu0 %5071, %v434_v39   ;;  %v5077_v32 = vld [vmem:[%s9409_s1] sm:$0xff] }
 0x22c   :  { %v6277_v14 = vpop.permute.xlu2 %1321 }
 0x22d   :  { %9549 = vst [vmem:[#allocation138_spill] sm:$0xff] %v6277_v14  ;;  %v6279_v19 = vpop.permute.xlu1 %1271  ;;  %v6281_v44 = vpop.permute.xlu0 %1266 }
 0x22e   :  { %9550 = vst [vmem:[#allocation139_spill] sm:$0xff] %v6279_v19 }
 0x22f   :  { %9551 = vst [vmem:[#allocation140_spill] sm:$0xff] %v6281_v44  ;;  %v5078_v44 = vld [vmem:[%s9409_s1 + $0x10] sm:$0xff] }
 0x232   :  { %5074 = vset.pattern.permute.xlu2 %v5290_v47 }
 0x233   :  { %1496 = vperm.xlu1 %5072, %v438_v20   ;;  %1491 = vperm.xlu0 %5071, %v437_v30   ;;  %v5079_v20 = vld [vmem:[%s9409_s1 + $0x18] sm:$0xff] }
 0x234   :  { %1712 = vperm.xlu2 %5074, %v5077_v32   ;;  %v6292_v26 = vpop.permute.xlu2 %1336  ;;  %v5080_v32 = vld [vmem:[%s9409_s1 + $0x8] sm:$0xff] }
 0x235   :  { %9552 = vst [vmem:[#allocation141_spill] sm:$0xff] %v6292_v26  ;;  %v6294_v39 = vpop.permute.xlu1 %1286  ;;  %v6296_v14 = vpop.permute.xlu0 %1281 }
 0x236   :  { %9553 = vst [vmem:[#allocation142_spill] sm:$0xff] %v6294_v39 }
 0x237   :  { %9554 = vst [vmem:[#allocation143_spill] sm:$0xff] %v6296_v14 }
 0x23b   :  { %5076 = vset.pattern.permute.xlu1 %v5290_v47  ;;  %5075 = vset.pattern.permute.xlu0 %v5290_v47 }
 0x23c   :  { %1720 = vperm.xlu1 %5076, %v5078_v44   ;;  %1724 = vperm.xlu2 %5074, %v5079_v20   ;;  %v6304_v30 = vpop.permute.xlu2 %1351  ;;  %v5081_v44 = vld [vmem:[%s9409_s1 + $0x20] sm:$0xff]  ;;  %v5082_v20 = vld [vmem:[%s9409_s1 + $0x28] sm:$0xff] }
 0x23d   :  { %9555 = vst [vmem:[#allocation144_spill] sm:$0xff] %v6304_v30  ;;  %1716 = vperm.xlu0 %5075, %v5080_v32   ;;  %v6309_v26 = vpop.permute.xlu1 %1301  ;;  %v6311_v47 = vpop.permute.xlu0 %1296  ;;  %v5083_v32 = vld [vmem:[%s9409_s1 + $0x30] sm:$0xff] }
 0x23e   :  { %9556 = vst [vmem:[#allocation145_spill] sm:$0xff] %v6309_v26 }
 0x23f   :  { %9557 = vst [vmem:[#allocation146_spill] sm:$0xff] %v6311_v47 }
 0x244   :  { %1728 = vperm.xlu1 %5076, %v5081_v44   ;;  %1732 = vperm.xlu2 %5074, %v5082_v20   ;;  %v6319_v30 = vpop.permute.xlu2 %1366  ;;  %v5084_v44 = vld [vmem:[%s9409_s1 + $0x38] sm:$0xff]  ;;  %v5085_v20 = vld [vmem:[%s9409_s1 + $0x40] sm:$0xff] }
 0x245   :  { %9558 = vst [vmem:[#allocation147_spill] sm:$0xff] %v6319_v30  ;;  %1736 = vperm.xlu0 %5075, %v5083_v32   ;;  %v6324_v19 = vpop.permute.xlu1 %1316  ;;  %v6326_v39 = vpop.permute.xlu0 %1311  ;;  %v5086_v32 = vld [vmem:[%s9409_s1 + $0x48] sm:$0xff] }
 0x246   :  { %9559 = vst [vmem:[#allocation148_spill] sm:$0xff] %v6324_v19 }
 0x247   :  { %9560 = vst [vmem:[#allocation149_spill] sm:$0xff] %v6326_v39 }
 0x24c   :  { %1740 = vperm.xlu1 %5076, %v5084_v44   ;;  %1744 = vperm.xlu2 %5074, %v5085_v20   ;;  %v6334_v30 = vpop.permute.xlu2 %1381  ;;  %v5087_v44 = vld [vmem:[%s9409_s1 + $0x50] sm:$0xff]  ;;  %v5088_v20 = vld [vmem:[%s9409_s1 + $0x58] sm:$0xff] }
 0x24d   :  { %9561 = vst [vmem:[#allocation150_spill] sm:$0xff] %v6334_v30  ;;  %1748 = vperm.xlu0 %5075, %v5086_v32   ;;  %v6339_v14 = vpop.permute.xlu1 %1331  ;;  %v6341_v47 = vpop.permute.xlu0 %1326  ;;  %v5089_v32 = vld [vmem:[%s9409_s1 + $0x60] sm:$0xff] }
 0x24e   :  { %9562 = vst [vmem:[#allocation151_spill] sm:$0xff] %v6339_v14 }
 0x24f   :  { %9563 = vst [vmem:[#allocation152_spill] sm:$0xff] %v6341_v47 }
 0x254   :  { %1752 = vperm.xlu1 %5076, %v5087_v44   ;;  %1756 = vperm.xlu2 %5074, %v5088_v20   ;;  %v6349_v30 = vpop.permute.xlu2 %1396  ;;  %v5090_v44 = vld [vmem:[%s9409_s1 + $0x68] sm:$0xff]  ;;  %v5091_v20 = vld [vmem:[%s9409_s1 + $0x70] sm:$0xff] }
 0x255   :  { %9564 = vst [vmem:[#allocation153_spill] sm:$0xff] %v6349_v30  ;;  %1760 = vperm.xlu0 %5075, %v5089_v32   ;;  %v6354_v14 = vpop.permute.xlu1 %1346  ;;  %v6356_v47 = vpop.permute.xlu0 %1341  ;;  %v5092_v32 = vld [vmem:[%s9409_s1 + $0x78] sm:$0xff] }
 0x256   :  { %9565 = vst [vmem:[#allocation154_spill] sm:$0xff] %v6354_v14 }
 0x257   :  { %9566 = vst [vmem:[#allocation155_spill] sm:$0xff] %v6356_v47 }
 0x25c   :  { %1764 = vperm.xlu1 %5076, %v5090_v44   ;;  %1768 = vperm.xlu2 %5074, %v5091_v20   ;;  %v6364_v30 = vpop.permute.xlu2 %1411  ;;  %v5093_v44 = vld [vmem:[%s9409_s1 + $0x80] sm:$0xff]  ;;  %v5094_v20 = vld [vmem:[%s9409_s1 + $0x88] sm:$0xff] }
 0x25d   :  { %9567 = vst [vmem:[#allocation156_spill] sm:$0xff] %v6364_v30  ;;  %1772 = vperm.xlu0 %5075, %v5092_v32   ;;  %v6369_v14 = vpop.permute.xlu1 %1361  ;;  %v6371_v47 = vpop.permute.xlu0 %1356  ;;  %v5095_v32 = vld [vmem:[%s9409_s1 + $0x90] sm:$0xff] }
 0x25e   :  { %9568 = vst [vmem:[#allocation157_spill] sm:$0xff] %v6369_v14 }
 0x25f   :  { %9569 = vst [vmem:[#allocation158_spill] sm:$0xff] %v6371_v47 }
 0x264   :  { %1776 = vperm.xlu1 %5076, %v5093_v44   ;;  %1780 = vperm.xlu2 %5074, %v5094_v20   ;;  %v6379_v30 = vpop.permute.xlu2 %1426  ;;  %v5096_v44 = vld [vmem:[%s9409_s1 + $0x98] sm:$0xff]  ;;  %v5097_v20 = vld [vmem:[%s9409_s1 + $0xa0] sm:$0xff] }
 0x265   :  { %9570 = vst [vmem:[#allocation159_spill] sm:$0xff] %v6379_v30  ;;  %1784 = vperm.xlu0 %5075, %v5095_v32   ;;  %v6384_v14 = vpop.permute.xlu1 %1376  ;;  %v6386_v47 = vpop.permute.xlu0 %1371  ;;  %v5098_v32 = vld [vmem:[%s9409_s1 + $0xa8] sm:$0xff] }
 0x266   :  { %9571 = vst [vmem:[#allocation160_spill] sm:$0xff] %v6384_v14 }
 0x267   :  { %9572 = vst [vmem:[#allocation161_spill] sm:$0xff] %v6386_v47 }
 0x26c   :  { %1788 = vperm.xlu1 %5076, %v5096_v44   ;;  %1792 = vperm.xlu2 %5074, %v5097_v20   ;;  %v6394_v30 = vpop.permute.xlu2 %1441  ;;  %v5099_v44 = vld [vmem:[%s9409_s1 + $0xb0] sm:$0xff]  ;;  %v5100_v20 = vld [vmem:[%s9409_s1 + $0xb8] sm:$0xff] }
 0x26d   :  { %9573 = vst [vmem:[#allocation162_spill] sm:$0xff] %v6394_v30  ;;  %1796 = vperm.xlu0 %5075, %v5098_v32   ;;  %v6399_v14 = vpop.permute.xlu1 %1391  ;;  %v6401_v47 = vpop.permute.xlu0 %1386  ;;  %v5101_v32 = vld [vmem:[%s9409_s1 + $0xc0] sm:$0xff] }
 0x26e   :  { %9574 = vst [vmem:[#allocation163_spill] sm:$0xff] %v6399_v14 }
 0x26f   :  { %9575 = vst [vmem:[#allocation164_spill] sm:$0xff] %v6401_v47 }
 0x274   :  { %1800 = vperm.xlu1 %5076, %v5099_v44   ;;  %1804 = vperm.xlu2 %5074, %v5100_v20   ;;  %v6409_v30 = vpop.permute.xlu2 %1456  ;;  %v5102_v44 = vld [vmem:[%s9409_s1 + $0xc8] sm:$0xff]  ;;  %v5103_v20 = vld [vmem:[%s9409_s1 + $0xd0] sm:$0xff] }
 0x275   :  { %9576 = vst [vmem:[#allocation165_spill] sm:$0xff] %v6409_v30  ;;  %1808 = vperm.xlu0 %5075, %v5101_v32   ;;  %v6414_v26 = vpop.permute.xlu1 %1406  ;;  %v6416_v47 = vpop.permute.xlu0 %1401  ;;  %v5104_v32 = vld [vmem:[%s9409_s1 + $0xd8] sm:$0xff] }
 0x276   :  { %9577 = vst [vmem:[#allocation166_spill] sm:$0xff] %v6414_v26 }
 0x277   :  { %9578 = vst [vmem:[#allocation167_spill] sm:$0xff] %v6416_v47 }
 0x27c   :  { %1812 = vperm.xlu1 %5076, %v5102_v44   ;;  %1816 = vperm.xlu2 %5074, %v5103_v20   ;;  %v6424_v30 = vpop.permute.xlu2 %1471  ;;  %v5105_v44 = vld [vmem:[%s9409_s1 + $0xe0] sm:$0xff]  ;;  %v5106_v20 = vld [vmem:[%s9409_s1 + $0xe8] sm:$0xff] }
 0x27d   :  { %9579 = vst [vmem:[#allocation168_spill] sm:$0xff] %v6424_v30  ;;  %1820 = vperm.xlu0 %5075, %v5104_v32   ;;  %v6429_v26 = vpop.permute.xlu1 %1421  ;;  %v6431_v47 = vpop.permute.xlu0 %1416  ;;  %v5107_v32 = vld [vmem:[%s9409_s1 + $0xf0] sm:$0xff] }
 0x27e   :  { %9580 = vst [vmem:[#allocation169_spill] sm:$0xff] %v6429_v26 }
 0x27f   :  { %9581 = vst [vmem:[#allocation170_spill] sm:$0xff] %v6431_v47 }
 0x284   :  { %1824 = vperm.xlu1 %5076, %v5105_v44   ;;  %1828 = vperm.xlu2 %5074, %v5106_v20   ;;  %v6439_v30 = vpop.permute.xlu2 %1486  ;;  %v5108_v44 = vld [vmem:[%s9409_s1 + $0xf8] sm:$0xff]  ;;  %v5109_v20 = vld [vmem:[%s9409_s1 + $0x100] sm:$0xff] }
 0x285   :  { %9582 = vst [vmem:[#allocation171_spill] sm:$0xff] %v6439_v30  ;;  %1832 = vperm.xlu0 %5075, %v5107_v32   ;;  %v6444_v26 = vpop.permute.xlu1 %1436  ;;  %v6446_v47 = vpop.permute.xlu0 %1431  ;;  %v5110_v30 = vld [vmem:[%s9409_s1 + $0x108] sm:$0xff] }
 0x286   :  { %9583 = vst [vmem:[#allocation172_spill] sm:$0xff] %v6444_v26 }
 0x287   :  { %9584 = vst [vmem:[#allocation173_spill] sm:$0xff] %v6446_v47 }
 0x28c   :  { %1836 = vperm.xlu1 %5076, %v5108_v44   ;;  %1840 = vperm.xlu2 %5074, %v5109_v20   ;;  %v5111_v44 = vld [vmem:[%s9409_s1 + $0x110] sm:$0xff]  ;;  %v5112_v20 = vld [vmem:[%s9409_s1 + $0x118] sm:$0xff] }
 0x28d   :  { %1844 = vperm.xlu0 %5075, %v5110_v30   ;;  %v6457_v32 = vpop.permute.xlu1 %1451  ;;  %v6459_v26 = vpop.permute.xlu0 %1446  ;;  %v5113_v30 = vld [vmem:[%s9409_s1 + $0x120] sm:$0xff] }
 0x28e   :  { %9585 = vst [vmem:[#allocation174_spill] sm:$0xff] %v6457_v32  ;;  %v6461_v47 = vpop.permute.xlu2 %1712 }
 0x28f   :  { %9586 = vst [vmem:[#allocation175_spill] sm:$0xff] %v6459_v26 }
 0x294   :  { %1848 = vperm.xlu1 %5076, %v5111_v44   ;;  %1852 = vperm.xlu2 %5074, %v5112_v20   ;;  %v5114_v44 = vld [vmem:[%s9409_s1 + $0x128] sm:$0xff]  ;;  %v5115_v20 = vld [vmem:[%s9409_s1 + $0x130] sm:$0xff] }
 0x295   :  { %1856 = vperm.xlu0 %5075, %v5113_v30   ;;  %v6472_v32 = vpop.permute.xlu1 %1466  ;;  %v6474_v26 = vpop.permute.xlu0 %1461  ;;  %v5116_v30 = vld [vmem:[%s9409_s1 + $0x138] sm:$0xff] }
 0x296   :  { %9587 = vst [vmem:[#allocation176_spill] sm:$0xff] %v6472_v32  ;;  %v6476_v14 = vpop.permute.xlu2 %1724 }
 0x297   :  { %9588 = vst [vmem:[#allocation177_spill] sm:$0xff] %v6474_v26 }
 0x29c   :  { %1860 = vperm.xlu1 %5076, %v5114_v44   ;;  %1864 = vperm.xlu2 %5074, %v5115_v20   ;;  %v5117_v44 = vld [vmem:[%s9409_s1 + $0x140] sm:$0xff]  ;;  %v5118_v20 = vld [vmem:[%s9409_s1 + $0x148] sm:$0xff] }
 0x29d   :  { %1868 = vperm.xlu0 %5075, %v5116_v30   ;;  %v6487_v32 = vpop.permute.xlu1 %1481  ;;  %v6489_v26 = vpop.permute.xlu0 %1476  ;;  %v5119_v30 = vld [vmem:[%s9409_s1 + $0x150] sm:$0xff] }
 0x29e   :  { %9589 = vst [vmem:[#allocation178_spill] sm:$0xff] %v6487_v32  ;;  %v6491_v39 = vpop.permute.xlu2 %1732 }
 0x29f   :  { %9590 = vst [vmem:[#allocation179_spill] sm:$0xff] %v6489_v26 }
 0x2a4   :  { %1872 = vperm.xlu1 %5076, %v5117_v44   ;;  %1876 = vperm.xlu2 %5074, %v5118_v20   ;;  %v5120_v44 = vld [vmem:[%s9409_s1 + $0x158] sm:$0xff]  ;;  %v5121_v20 = vld [vmem:[%s9409_s1 + $0x160] sm:$0xff] }
 0x2a5   :  { %1880 = vperm.xlu0 %5075, %v5119_v30   ;;  %v6502_v32 = vpop.permute.xlu1 %1496  ;;  %v6504_v26 = vpop.permute.xlu0 %1491  ;;  %v5122_v30 = vld [vmem:[%s9409_s1 + $0x168] sm:$0xff] }
 0x2a6   :  { %9591 = vst [vmem:[#allocation180_spill] sm:$0xff] %v6502_v32  ;;  %v6506_v19 = vpop.permute.xlu2 %1744 }
 0x2a7   :  { %9592 = vst [vmem:[#allocation181_spill] sm:$0xff] %v6504_v26 }
 0x2ac   :  { %1884 = vperm.xlu1 %5076, %v5120_v44   ;;  %1888 = vperm.xlu2 %5074, %v5121_v20   ;;  %v5123_v44 = vld [vmem:[%s9409_s1 + $0x170] sm:$0xff]  ;;  %v5124_v20 = vld [vmem:[%s9409_s1 + $0x178] sm:$0xff] }
 0x2ad   :  { %1892 = vperm.xlu0 %5075, %v5122_v30   ;;  %v5125_v30 = vld [vmem:[%s9409_s1 + $0x180] sm:$0xff] }
 0x2ae   :  { %v6517_v32 = vpop.permute.xlu1 %1720  ;;  %v6519_v26 = vpop.permute.xlu2 %1756 }
 0x2af   :  { %v6521_v6 = vpop.permute.xlu0 %1716 }
 0x2b4   :  { %1896 = vperm.xlu1 %5076, %v5123_v44   ;;  %1900 = vperm.xlu2 %5074, %v5124_v20   ;;  %v5127_v44 = vld [vmem:[%s9409_s1 + $0x190] sm:$0xff]  ;;  %v5128_v20 = vld [vmem:[%s9409_s1 + $0x198] sm:$0xff] }
 0x2b5   :  { %1904 = vperm.xlu0 %5075, %v5125_v30  }
 0x2b6   :  { %v6532_v7 = vpop.permute.xlu1 %1728  ;;  %v1769_v2 = vpop.permute.xlu2 %1768 }
 0x2b7   :  { %v6534_v59 = vpop.permute.xlu0 %1736  ;;  %v2573_v48 = vadd.f32 %v1769_v2, %v1513_v13 }
 0x2bc   :  { %1908 = vperm.xlu1 %5076, %v5126_v18   ;;  %1912 = vperm.xlu2 %5074, %v5127_v44   ;;  %v5130_v18 = vld [vmem:[%s9409_s1 + $0x1a8] sm:$0xff]  ;;  %v5131_v44 = vld [vmem:[%s9409_s1 + $0x1b0] sm:$0xff] }
 0x2bd   :  { %1916 = vperm.xlu0 %5075, %v5128_v20  }
 0x2be   :  { %v6545_v30 = vpop.permute.xlu1 %1740  ;;  %v6547_v46 = vpop.permute.xlu2 %1780 }
 0x2bf   :  { %v1749_v31 = vpop.permute.xlu0 %1748 }
 0x2c4   :  { %1920 = vperm.xlu1 %5076, %v5129_v27   ;;  %1924 = vperm.xlu2 %5074, %v5130_v18   ;;  %v28_v27 = vld [vmem:[%s9410_s0 + $0x68] sm:$0xff]  ;;  %v30_v18 = vld [vmem:[%s9410_s0 + $0x78] sm:$0xff] }
 0x2c5   :  { %1928 = vperm.xlu0 %5075, %v5131_v44   ;;  %v5132_v44 = vld [vmem:[%s9409_s1 + $0x1b8] sm:$0xff]  ;;  %v1512_v55 = vmul.f32 %v5514_v10, %v28_v27  ;;  %v1514_v0 = vmul.f32 %v5531_v17, %v30_v18  ;;  %v2785_v17 = vmax.f32 %v2573_v48, 0.0  ;;  %v24_v27 = vld [vmem:[%s9410_s0 + $0x48] sm:$0xff] }
 0x2c6   :  { %v1753_v20 = vpop.permute.xlu1 %1752  ;;  %v6558_v1 = vpop.permute.xlu2 %1792  ;;  %v1508_v48 = vmul.f32 %v5501_v5, %v24_v27 }
 0x2c7   :  { %v1761_v33 = vpop.permute.xlu0 %1760 }
 0x2c8   :  { %v2571_v13 = vadd.f32 %v1761_v33, %v1511_v36 }
 0x2ca   :  { %v2783_v36 = vmax.f32 %v2571_v13, 0.0  ;;  %v19_v13 = vld [vmem:[%s9410_s0 + $0x20] sm:$0xff] }
 0x2cc   :  { %1932 = vperm.xlu1 %5076, %v5132_v44   ;;  %1936 = vperm.xlu2 %5074, %v5133_v12   ;;  %v25_v12 = vld [vmem:[%s9410_s0 + $0x50] sm:$0xff] }
 0x2cd   :  { %1940 = vperm.xlu0 %5075, %v5134_v25   ;;  %v26_v25 = vld [vmem:[%s9410_s0 + $0x58] sm:$0xff]  ;;  %v1509_v10 = vmul.f32 %v5499_v4, %v25_v12 }
 0x2ce   :  { %v1765_v44 = vpop.permute.xlu1 %1764  ;;  %v6584_v24 = vpop.permute.xlu2 %1804  ;;  %v1510_v18 = vmul.f32 %v5452_v49, %v26_v25  ;;  %v5136_v4 = vld [vmem:[%s9409_s1 + $0x1d8] sm:$0xff]  ;;  %v5137_v49 = vld [vmem:[%s9409_s1 + $0x1e0] sm:$0xff] }
 0x2cf   :  { %v1773_v38 = vpop.permute.xlu0 %1772  ;;  %v2572_v60 = vadd.f32 %v1765_v44, %v1512_v55  ;;  %v2569_v54 = vadd.f32 %v1753_v20, %v1509_v10  ;;  %v22_v20 = vld [vmem:[%s9410_s0 + $0x38] sm:$0xff]  ;;  %v2568_v44 = vadd.f32 %v1749_v31, %v1508_v48  ;;  %v5138_v31 = vld [vmem:[%s9409_s1 + $0x1e8] sm:$0xff] }
 0x2d0   :  { %v2574_v58 = vadd.f32 %v1773_v38, %v1514_v0  ;;  %v1507_v0 = vmul.f32 %v5441_v45, %v23_v40  ;;  %v1506_v25 = vmul.f32 %v5484_v62, %v22_v20  ;;  %v5139_v62 = vld [vmem:[%s9409_s1 + $0x1f0] sm:$0xff] }
 0x2d1   :  { %v2784_v8 = vmax.f32 %v2572_v60, 0.0  ;;  %v2570_v60 = vadd.f32 %v6519_v26, %v1510_v18  ;;  %v2781_v12 = vmax.f32 %v2569_v54, 0.0  ;;  %v21_v26 = vld [vmem:[%s9410_s0 + $0x30] sm:$0xff] }
 0x2d2   :  { %v2786_v2 = vmax.f32 %v2574_v58, 0.0  ;;  %v2567_v10 = vadd.f32 %v6506_v19, %v1507_v0  ;;  %v1505_v45 = vmul.f32 %v5486_v63, %v21_v26  ;;  %v2566_v54 = vadd.f32 %v6545_v30, %v1506_v25  ;;  %v5140_v63 = vld [vmem:[%s9409_s1 + $0x1f8] sm:$0xff]  ;;  %v15_v26 = vld [vmem:[%s9410_s0] sm:$0xff] }
 0x2d3   :  { %v2989_v5 = vpack.c.bf16 %v2784_v8, %v2783_v36  ;;  %v2780_v8 = vmax.f32 %v2568_v44, 0.0  ;;  %v1503_v30 = vmul.f32 %v5419_v37, %v19_v13  ;;  %v16_v44 = vld [vmem:[%s9410_s0 + $0x8] sm:$0xff] }
 0x2d4   :  { %1944 = vperm.xlu1 %5076, %v5135_v11   ;;  %1948 = vperm.xlu2 %5074, %v5136_v4   ;;  %v2990_v33 = vpack.c.bf16 %v2786_v2, %v2785_v17  ;;  %v2782_v17 = vmax.f32 %v2570_v60, 0.0  ;;  %v20_v2 = vld [vmem:[%s9410_s0 + $0x28] sm:$0xff]  ;;  %v2779_v27 = vmax.f32 %v2567_v10, 0.0  ;;  %v2565_v18 = vadd.f32 %v6534_v59, %v1505_v45  ;;  %v18_v59 = vld [vmem:[%s9410_s0 + $0x18] sm:$0xff] }
 0x2d5   :  { %1952 = vperm.xlu0 %5075, %v5137_v49   ;;  %v1504_v49 = vmul.f32 %v5430_v41, %v20_v2  ;;  %v2563_v48 = vadd.f32 %v6532_v7, %v1503_v30  ;;  %v2778_v37 = vmax.f32 %v2566_v54, 0.0  ;;  %v1502_v41 = vmul.f32 %v5469_v56, %v18_v59  ;;  %v5143_v56 = vld [vmem:[%s9409_s1 + $0x210] sm:$0xff]  ;;  %v5144_v2 = vld [vmem:[%s9409_s1 + $0x218] sm:$0xff]  ;;  %v5149_v59 = vld [vmem:[%s9409_s1 + $0x240] sm:$0xff] }
 0x2d6   :  { %3778 = vmatpush.bf16.msra.mxu0 %v2990_v33  ;;  %5053 = vmatpush.bf16.msra.mxu2 %v2990_v33  ;;  %v6612_v38 = vpop.permute.xlu1 %1776  ;;  %v6614_v58 = vpop.permute.xlu2 %1816  ;;  %v2988_v19 = vpack.c.bf16 %v2782_v17, %v2781_v12  ;;  %v17_v33 = vld [vmem:[%s9410_s0 + $0x10] sm:$0xff]  ;;  %v2987_v60 = vpack.c.bf16 %v2780_v8, %v2779_v27  ;;  %v2777_v0 = vmax.f32 %v2565_v18, 0.0  ;;  %v1499_v54 = vmul.f32 %v5456_v51, %v15_v26 }
 0x2d7   :  { %v6619_v55 = vpop.permute.xlu0 %1784  ;;  %v1501_v36 = vmul.f32 %v5454_v50, %v17_v33  ;;  %v2564_v20 = vadd.f32 %v6491_v39, %v1504_v49  ;;  %v2775_v12 = vmax.f32 %v2563_v48, 0.0  ;;  %v5142_v50 = vld [vmem:[%s9409_s1 + $0x208] sm:$0xff]  ;;  %v2562_v25 = vadd.f32 %v6476_v14, %v1502_v41  ;;  %v5147_v49 = vld [vmem:[%s9409_s1 + $0x230] sm:$0xff]  ;;  %v5148_v48 = vld [vmem:[%s9409_s1 + $0x238] sm:$0xff] }
 0x2d8   :  { %v2986_v39 = vpack.c.bf16 %v2778_v37, %v2777_v0  ;;  %v4711_v37 = vld [vmem:[%s9411_s2 + $0x1c0] sm:$0xf]  ;;  %v45_v41 = vld [vmem:[%s9410_s0 + $0xf0] sm:$0xff] }
 0x2d9   :  { %v2561_v7 = vadd.f32 %v6517_v32, %v1501_v36  ;;  %v1500_v32 = vmul.f32 %v5471_v57, %v16_v44  ;;  %v2776_v10 = vmax.f32 %v2564_v20, 0.0  ;;  %v2774_v57 = vmax.f32 %v2562_v25, 0.0  ;;  %v5151_v26 = vld [vmem:[%s9409_s1 + $0x250] sm:$0xff] }
 0x2da   :  { %3779 = vmatpush.bf16.msra.mxu0 %v2989_v5  ;;  %5054 = vmatpush.bf16.msra.mxu2 %v2989_v5  ;;  %v5141_v5 = vld [vmem:[%s9409_s1 + $0x200] sm:$0xff] }
 0x2db   :  { %v2773_v8 = vmax.f32 %v2561_v7, 0.0  ;;  %v43_v7 = vld [vmem:[%s9410_s0 + $0xe0] sm:$0xff] }
 0x2dc   :  { %1956 = vperm.xlu1 %5076, %v5138_v31   ;;  %1960 = vperm.xlu2 %5074, %v5139_v62   ;;  %v2560_v31 = vadd.f32 %v6521_v6, %v1500_v32  ;;  %v2985_v62 = vpack.c.bf16 %v2776_v10, %v2775_v12  ;;  %v5146_v6 = vld [vmem:[%s9409_s1 + $0x228] sm:$0xff]  ;;  %v46_v12 = vld [vmem:[%s9410_s0 + $0xf8] sm:$0xff] }
 0x2dd   :  { %1964 = vperm.xlu0 %5075, %v5140_v63   ;;  %v5145_v63 = vld [vmem:[%s9409_s1 + $0x220] sm:$0xff]  ;;  %v2984_v51 = vpack.c.bf16 %v2774_v57, %v2773_v8  ;;  %v1530_v32 = vmul.f32 %v5604_v52, %v46_v12  ;;  %v42_v10 = vld [vmem:[%s9410_s0 + $0xd8] sm:$0xff]  ;;  %v41_v52 = vld [vmem:[%s9410_s0 + $0xd0] sm:$0xff] }
 0x2de   :  { %3780 = vmatpush.bf16.msra.mxu0 %v2988_v19  ;;  %5055 = vmatpush.bf16.msra.mxu2 %v2988_v19  ;;  %v6646_v11 = vpop.permute.xlu1 %1788  ;;  %v6648_v4 = vpop.permute.xlu2 %1828  ;;  %v2559_v19 = vadd.f32 %v6461_v47, %v1499_v54  ;;  %v2772_v14 = vmax.f32 %v2560_v31, 0.0  ;;  %v1526_v57 = vmul.f32 %v5591_v43, %v42_v10  ;;  %v5153_v43 = vld [vmem:[%s9409_s1 + $0x260] sm:$0xff] }
 0x2df   :  { %v6653_v40 = vpop.permute.xlu0 %1796  ;;  %v35_v10 = vld [vmem:[%s9410_s0 + $0xa0] sm:$0xff] }
 0x2e0   :  { %v2771_v47 = vmax.f32 %v2559_v19, 0.0 }
 0x2e2   :  { %3781 = vmatpush.bf16.msra.mxu0 %v2987_v60  ;;  %5056 = vmatpush.bf16.msra.mxu2 %v2987_v60  ;;  %v2983_v33 = vpack.c.bf16 %v2772_v14, %v2771_v47  ;;  %v5004_v60 = vld [vmem:[%s9411_s2 + $0x1f4] sm:$0xf0] }
 0x2e3   :  { %v4712_v36 = vor.u32 %v5004_v60, %v4711_v37 }
 0x2e4   :  { %1968 = vperm.xlu1 %5076, %v5141_v5   ;;  %1972 = vperm.xlu2 %5074, %v5142_v50   ;;  %v1529_v5 = vmul.f32 %v5606_v53, %v45_v41  ;;  %v44_v50 = vld [vmem:[%s9410_s0 + $0xe8] sm:$0xff]  ;;  %v5152_v53 = vld [vmem:[%s9409_s1 + $0x258] sm:$0xff] }
 0x2e5   :  { %1976 = vperm.xlu0 %5075, %v5143_v56   ;;  %v1527_v56 = vmul.f32 %v5589_v42, %v43_v7  ;;  %v1528_v31 = vmul.f32 %v5542_v21, %v44_v50  ;;  %v1525_v21 = vmul.f32 %v5527_v15, %v41_v52  ;;  %v4767_v15 = vld [vmem:[%s9411_s2 + $0x230] sm:$0xf]  ;;  %v38_v50 = vld [vmem:[%s9410_s0 + $0xb8] sm:$0xff] }
 0x2e6   :  { %3782 = vmatpush.bf16.msra.mxu0 %v2986_v39  ;;  %5057 = vmatpush.bf16.msra.mxu2 %v2986_v39  ;;  %v6681_v17 = vpop.permute.xlu1 %1800  ;;  %v6683_v13 = vpop.permute.xlu2 %1840  ;;  %v5150_v39 = vld [vmem:[%s9409_s1 + $0x248] sm:$0xff] }
 0x2e7   :  { %v6685_v45 = vpop.permute.xlu0 %1808  ;;  %v2588_v14 = vadd.f32 %v6648_v4, %v1528_v31  ;;  %v5154_v4 = vld [vmem:[%s9409_s1 + $0x268] sm:$0xff]  ;;  %v2585_v37 = vadd.f32 %v6614_v58, %v1525_v21 }
 0x2e8   :  { %v5158_v31 = vld [vmem:[%s9409_s1 + $0x288] sm:$0xff] }
 0x2e9   :  { %v2800_v60 = vmax.f32 %v2588_v14, 0.0 }
 0x2ea   :  { %3783 = vmatpush.bf16.msra.mxu0 %v2985_v62  ;;  %5058 = vmatpush.bf16.msra.mxu2 %v2985_v62 }
 0x2ec   :  { %1980 = vperm.xlu1 %5076, %v5144_v2   ;;  %1984 = vperm.xlu2 %5074, %v5145_v63  }
 0x2ed   :  { %1988 = vperm.xlu0 %5075, %v5146_v6  }
 0x2ee   :  { %3784 = vmatpush.bf16.msra.mxu0 %v2984_v51  ;;  %5059 = vmatpush.bf16.msra.mxu2 %v2984_v51  ;;  %v6699_v30 = vpop.permute.xlu1 %1812  ;;  %v6701_v27 = vpop.permute.xlu2 %1852  ;;  %v40_v51 = vld [vmem:[%s9410_s0 + $0xc8] sm:$0xff] }
 0x2ef   :  { %v1821_v18 = vpop.permute.xlu0 %1820 }
 0x2f0   :  { %v2586_v6 = vadd.f32 %v1821_v18, %v1526_v57  ;;  %v5018_v18 = vld [vmem:[%s9411_s2 + $0x264] sm:$0xf0] }
 0x2f2   :  { %3785 = vmatpush.bf16.msra.mxu0 %v2983_v33  ;;  %5060 = vmatpush.bf16.msra.mxu2 %v2983_v33  ;;  %v2798_v7 = vmax.f32 %v2586_v6, 0.0 }
 0x2f4   :  { %1992 = vperm.xlu1 %5076, %v5147_v49   ;;  %1996 = vperm.xlu2 %5074, %v5148_v48   ;;  %v39_v49 = vld [vmem:[%s9410_s0 + $0xc0] sm:$0xff]  ;;  %v1524_v48 = vmul.f32 %v5574_v34, %v40_v51 }
 0x2f5   :  { %2000 = vperm.xlu0 %5075, %v5149_v59   ;;  %3806 = vmatmul.bf16.vlgmr.msra.gmra.mxu2 %v4712_v36  ;;  %v5155_v59 = vld [vmem:[%s9409_s1 + $0x270] sm:$0xff]  ;;  %v4768_v36 = vor.u32 %v5018_v18, %v4767_v15  ;;  %v1523_v34 = vmul.f32 %v5576_v35, %v39_v49  ;;  %v36_v35 = vld [vmem:[%s9410_s0 + $0xa8] sm:$0xff] }
 0x2f6   :  { %v1825_v20 = vpop.permute.xlu1 %1824  ;;  %v6718_v0 = vpop.permute.xlu2 %1864  ;;  %v2584_v58 = vadd.f32 %v6699_v30, %v1524_v48  ;;  %v1522_v30 = vmul.f32 %v5512_v9, %v38_v50  ;;  %v1520_v9 = vmul.f32 %v5561_v29, %v36_v35  ;;  %v1519_v29 = vmul.f32 %v5497_v3, %v35_v10  ;;  %v31_v3 = vld [vmem:[%s9410_s0 + $0x80] sm:$0xff]  ;;  %v61_v10 = vld [vmem:[%s9410_s0 + $0x170] sm:$0xff] }
 0x2f7   :  { %v1833_v44 = vpop.permute.xlu0 %1832  ;;  %v2587_v62 = vadd.f32 %v1825_v20, %v1527_v56  ;;  %v37_v20 = vld [vmem:[%s9410_s0 + $0xb0] sm:$0xff]  ;;  %v2583_v56 = vadd.f32 %v6685_v45, %v1523_v34  ;;  %v5157_v45 = vld [vmem:[%s9409_s1 + $0x280] sm:$0xff] }
 0x2f8   :  { %v2589_v25 = vadd.f32 %v1833_v44, %v1529_v5  ;;  %v2579_v21 = vadd.f32 %v6558_v1, %v1519_v29  ;;  %v5160_v1 = vld [vmem:[%s9409_s1 + $0x298] sm:$0xff]  ;;  %v5161_v48 = vld [vmem:[%s9409_s1 + $0x2a0] sm:$0xff] }
 0x2f9   :  { %v2799_v47 = vmax.f32 %v2587_v62, 0.0  ;;  %v34_v62 = vld [vmem:[%s9410_s0 + $0x98] sm:$0xff]  ;;  %v4997_v35 = vld [vmem:[%s9411_s2 + $0x1c4] sm:$0xf] }
 0x2fa   :  { %v2801_v2 = vmax.f32 %v2589_v25, 0.0  ;;  %v2796_v25 = vmax.f32 %v2584_v58, 0.0  ;;  %v1518_v51 = vmul.f32 %v5544_v22, %v34_v62  ;;  %v5159_v22 = vld [vmem:[%s9409_s1 + $0x290] sm:$0xff]  ;;  %v2791_v15 = vmax.f32 %v2579_v21, 0.0  ;;  %v5165_v29 = vld [vmem:[%s9409_s1 + $0x2c0] sm:$0xff] }
 0x2fb   :  { %v2997_v5 = vpack.c.bf16 %v2800_v60, %v2799_v47 }
 0x2fc   :  { %2004 = vperm.xlu1 %5076, %v5150_v39   ;;  %2008 = vperm.xlu2 %5074, %v5151_v26   ;;  %v1521_v39 = vmul.f32 %v5559_v28, %v37_v20  ;;  %v2797_v26 = vmax.f32 %v2585_v37, 0.0  ;;  %v5156_v28 = vld [vmem:[%s9409_s1 + $0x278] sm:$0xff]  ;;  %v2578_v47 = vadd.f32 %v6646_v11, %v1518_v51 }
 0x2fd   :  { %2012 = vperm.xlu0 %5075, %v5152_v53   ;;  %v5032_v11 = vld [vmem:[%s9411_s2 + $0x2d4] sm:$0xf0] }
 0x2fe   :  { %v1837_v54 = vpop.permute.xlu1 %1836  ;;  %v6747_v8 = vpop.permute.xlu2 %1876  ;;  %v2996_v53 = vpack.c.bf16 %v2798_v7, %v2797_v26 }
 0x2ff   :  { %v2590_v19 = vadd.f32 %v1837_v54, %v1530_v32  ;;  %v6750_v42 = vpop.permute.xlu0 %1844  ;;  %v2581_v32 = vadd.f32 %v6681_v17, %v1521_v39  ;;  %v2582_v17 = vadd.f32 %v6584_v24, %v1522_v30  ;;  %v2795_v54 = vmax.f32 %v2583_v56, 0.0  ;;  %v5162_v39 = vld [vmem:[%s9409_s1 + $0x2a8] sm:$0xff]  ;;  %v4713_v30 = vld [vmem:[%s9411_s2 + $0x1f8] sm:$0xf0] }
 0x300   :  { %v2580_v24 = vadd.f32 %v6653_v40, %v1520_v9  ;;  %v9593_v9 = vld [vmem:[#allocation9_spill] sm:$0xff] }
 0x301   :  { %v2802_v63 = vmax.f32 %v2590_v19, 0.0  ;;  %v2793_v57 = vmax.f32 %v2581_v32, 0.0  ;;  %v2794_v6 = vmax.f32 %v2582_v17, 0.0 }
 0x303   :  { %v2998_v33 = vpack.c.bf16 %v2802_v63, %v2801_v2  ;;  %v2995_v2 = vpack.c.bf16 %v2796_v25, %v2795_v54  ;;  %v33_v63 = vld [vmem:[%s9410_s0 + $0x90] sm:$0xff]  ;;  %v2994_v49 = vpack.c.bf16 %v2794_v6, %v2793_v57  ;;  %v59_v54 = vld [vmem:[%s9410_s0 + $0x160] sm:$0xff] }
 0x304   :  { %2016 = vperm.xlu1 %5076, %v5153_v43   ;;  %2020 = vperm.xlu2 %5074, %v5154_v4   ;;  %v1517_v40 = vmul.f32 %v5546_v23, %v33_v63  ;;  %v32_v43 = vld [vmem:[%s9410_s0 + $0x88] sm:$0xff]  ;;  %v4823_v23 = vld [vmem:[%s9411_s2 + $0x2a0] sm:$0xf]  ;;  %v1515_v4 = vmul.f32 %v5529_v16, %v31_v3  ;;  %v2790_v16 = vmax.f32 %v2578_v47, 0.0  ;;  %v4879_v57 = vld [vmem:[%s9411_s2 + $0x310] sm:$0xf] }
 0x305   :  { %2024 = vperm.xlu0 %5075, %v5155_v59   ;;  %3827 = vmatpush.bf16.msra.mxu1 %v2998_v33  ;;  %v4824_v37 = vor.u32 %v5032_v11, %v4823_v23  ;;  %v9595_v63 = vld [vmem:[#allocation20_spill] sm:$0xff] }
 0x306   :  { %5061 = vmatpush.bf16.msra.mxu3 %v2998_v33  ;;  %v6784_v44 = vpop.permute.xlu1 %1848  ;;  %v6786_v41 = vpop.permute.xlu2 %1888  ;;  %3811 = vmatmul.bf16.gmra.mxu2 %v4768_v36  ;;  %v2792_v33 = vmax.f32 %v2580_v24, 0.0  ;;  %v2577_v18 = vadd.f32 %v6619_v55, %v1517_v40  ;;  %v1516_v36 = vmul.f32 %v5482_v61, %v32_v43  ;;  %v2575_v20 = vadd.f32 %v6612_v38, %v1515_v4  ;;  %v5163_v61 = vld [vmem:[%s9409_s1 + $0x2b0] sm:$0xff]  ;;  %v5166_v24 = vld [vmem:[%s9409_s1 + $0x2c8] sm:$0xff]  ;;  %v58_v40 = vld [vmem:[%s9410_s0 + $0x158] sm:$0xff] }
 0x307   :  { %v6790_v12 = vpop.permute.xlu0 %1856  ;;  %v5167_v6 = vld [vmem:[%s9409_s1 + $0x2d0] sm:$0xff] }
 0x308   :  { %v2993_v55 = vpack.c.bf16 %v2792_v33, %v2791_v15  ;;  %v2576_v58 = vadd.f32 %v6547_v46, %v1516_v36  ;;  %v2789_v7 = vmax.f32 %v2577_v18, 0.0  ;;  %v5164_v46 = vld [vmem:[%s9409_s1 + $0x2b8] sm:$0xff]  ;;  %v9597_v11 = vld [vmem:[#allocation16_spill] sm:$0xff] }
 0x309   :  { %3828 = vmatpush.bf16.msra.mxu1 %v2997_v5  ;;  %v1542_v4 = vmul.f32 %v9597_v11, %v58_v40  ;;  %v9598_v36 = vld [vmem:[#allocation17_spill] sm:$0xff]  ;;  %v9603_v40 = vld [vmem:[#allocation10_spill] sm:$0xff]  ;;  %v9604_v11 = vld [vmem:[#allocation11_spill] sm:$0xff] }
 0x30a   :  { %5062 = vmatpush.bf16.msra.mxu3 %v2997_v5  ;;  %v2787_v5 = vmax.f32 %v2575_v20, 0.0  ;;  %v2992_v50 = vpack.c.bf16 %v2790_v16, %v2789_v7  ;;  %v2788_v38 = vmax.f32 %v2576_v58, 0.0  ;;  %v56_v7 = vld [vmem:[%s9410_s0 + $0x148] sm:$0xff] }
 0x30c   :  { %2028 = vperm.xlu1 %5076, %v5156_v28   ;;  %2032 = vperm.xlu2 %5074, %v5157_v45   ;;  %v2991_v25 = vpack.c.bf16 %v2788_v38, %v2787_v5  ;;  %v4716_v28 = vor.u32 %v4997_v35, %v4713_v30  ;;  %v60_v45 = vld [vmem:[%s9410_s0 + $0x168] sm:$0xff]  ;;  %v5168_v5 = vld [vmem:[%s9409_s1 + $0x2d8] sm:$0xff] }
 0x30d   :  { %2036 = vperm.xlu0 %5075, %v5158_v31   ;;  %3829 = vmatpush.bf16.msra.mxu1 %v2996_v53  ;;  %v9594_v31 = vld [vmem:[#allocation19_spill] sm:$0xff]  ;;  %v1544_v51 = vmul.f32 %v9595_v63, %v60_v45  ;;  %v5011_v45 = vld [vmem:[%s9411_s2 + $0x234] sm:$0xf] }
 0x30e   :  { %5063 = vmatpush.bf16.msra.mxu3 %v2996_v53  ;;  %v6819_v19 = vpop.permute.xlu1 %1860  ;;  %v6821_v52 = vpop.permute.xlu2 %1900  ;;  %v62_v53 = vld [vmem:[%s9410_s0 + $0x178] sm:$0xff]  ;;  %v1545_v62 = vmul.f32 %v9594_v31, %v61_v10 }
 0x30f   :  { %v6825_v14 = vpop.permute.xlu0 %1868  ;;  %v1546_v17 = vmul.f32 %v9593_v9, %v62_v53  ;;  %v4769_v9 = vld [vmem:[%s9411_s2 + $0x268] sm:$0xf0] }
 0x311   :  { %3830 = vmatpush.bf16.msra.mxu1 %v2995_v2  ;;  %v2606_v21 = vadd.f32 %v6821_v52, %v1546_v17  ;;  %v57_v52 = vld [vmem:[%s9410_s0 + $0x150] sm:$0xff] }
 0x312   :  { %5064 = vmatpush.bf16.msra.mxu3 %v2995_v2  ;;  %v5046_v2 = vld [vmem:[%s9411_s2 + $0x344] sm:$0xf0]  ;;  %v1541_v20 = vmul.f32 %v9598_v36, %v57_v52  ;;  %v53_v17 = vld [vmem:[%s9410_s0 + $0x130] sm:$0xff] }
 0x313   :  { %v4880_v3 = vor.u32 %v5046_v2, %v4879_v57  ;;  %v2818_v18 = vmax.f32 %v2606_v21, 0.0  ;;  %v9602_v57 = vld [vmem:[#allocation4_spill] sm:$0xff]  ;;  %v9605_v36 = vld [vmem:[#allocation7_spill] sm:$0xff] }
 0x314   :  { %2040 = vperm.xlu1 %5076, %v5159_v22   ;;  %2044 = vperm.xlu2 %5074, %v5160_v1   ;;  %v1537_v2 = vmul.f32 %v9602_v57, %v53_v17 }
 0x315   :  { %2048 = vperm.xlu0 %5075, %v5161_v48   ;;  %3831 = vmatpush.bf16.msra.mxu1 %v2994_v49 }
 0x316   :  { %5065 = vmatpush.bf16.msra.mxu3 %v2994_v49  ;;  %v6857_v60 = vpop.permute.xlu1 %1872  ;;  %v6859_v59 = vpop.permute.xlu2 %1912  ;;  %3816 = vmatmul.bf16.gmra.mxu2 %v4824_v37  ;;  %v9596_v49 = vld [vmem:[#allocation6_spill] sm:$0xff] }
 0x317   :  { %v6863_v34 = vpop.permute.xlu0 %1880  ;;  %v1543_v43 = vmul.f32 %v9596_v49, %v59_v54  ;;  %v55_v37 = vld [vmem:[%s9410_s0 + $0x140] sm:$0xff] }
 0x318   :  { %v2601_v38 = vadd.f32 %v6863_v34, %v1541_v20  ;;  %v9601_v54 = vld [vmem:[#allocation14_spill] sm:$0xff] }
 0x319   :  { %3832 = vmatpush.bf16.msra.mxu1 %v2993_v55  ;;  %v2603_v15 = vadd.f32 %v6786_v41, %v1543_v43  ;;  %v5169_v41 = vld [vmem:[%s9409_s1 + $0x2e0] sm:$0xff] }
 0x31a   :  { %5066 = vmatpush.bf16.msra.mxu3 %v2993_v55  ;;  %v5173_v43 = vld [vmem:[%s9409_s1 + $0x300] sm:$0xff] }
 0x31c   :  { %2052 = vperm.xlu1 %5076, %v5162_v39   ;;  %2056 = vperm.xlu2 %5074, %v5163_v61   ;;  %v2815_v61 = vmax.f32 %v2603_v15, 0.0 }
 0x31d   :  { %2060 = vperm.xlu0 %5075, %v5164_v46   ;;  %3833 = vmatpush.bf16.msra.mxu1 %v2992_v50  ;;  %v5170_v46 = vld [vmem:[%s9409_s1 + $0x2e8] sm:$0xff] }
 0x31e   :  { %5067 = vmatpush.bf16.msra.mxu3 %v2992_v50  ;;  %v1885_v26 = vpop.permute.xlu1 %1884  ;;  %v6875_v56 = vpop.permute.xlu2 %1924  ;;  %v9599_v50 = vld [vmem:[#allocation13_spill] sm:$0xff] }
 0x31f   :  { %v1893_v32 = vpop.permute.xlu0 %1892  ;;  %v2602_v16 = vadd.f32 %v1885_v26, %v1542_v4  ;;  %v1539_v39 = vmul.f32 %v9599_v50, %v55_v37  ;;  %v54_v26 = vld [vmem:[%s9410_s0 + $0x138] sm:$0xff] }
 0x320   :  { %v2604_v22 = vadd.f32 %v1893_v32, %v1544_v51  ;;  %v9600_v32 = vld [vmem:[#allocation5_spill] sm:$0xff]  ;;  %v1538_v31 = vmul.f32 %v9601_v54, %v54_v26 }
 0x321   :  { %3834 = vmatpush.bf16.msra.mxu1 %v2991_v25  ;;  %v2599_v53 = vadd.f32 %v6857_v60, %v1539_v39  ;;  %v2814_v10 = vmax.f32 %v2602_v16, 0.0  ;;  %v50_v37 = vld [vmem:[%s9410_s0 + $0x118] sm:$0xff]  ;;  %v47_v39 = vld [vmem:[%s9410_s0 + $0x100] sm:$0xff] }
 0x322   :  { %5068 = vmatpush.bf16.msra.mxu3 %v2991_v25  ;;  %v2816_v55 = vmax.f32 %v2604_v22, 0.0  ;;  %v1540_v25 = vmul.f32 %v9600_v32, %v56_v7  ;;  %v2598_v63 = vadd.f32 %v6825_v14, %v1538_v31  ;;  %v2597_v14 = vadd.f32 %v6718_v0, %v1537_v2  ;;  %v49_v22 = vld [vmem:[%s9410_s0 + $0x110] sm:$0xff]  ;;  %v9606_v7 = vld [vmem:[#allocation3_spill] sm:$0xff]  ;;  %v5176_v32 = vld [vmem:[%s9409_s1 + $0x318] sm:$0xff] }
 0x323   :  { %v2811_v51 = vmax.f32 %v2599_v53, 0.0  ;;  %v1533_v20 = vmul.f32 %v9605_v36, %v49_v22  ;;  %v4825_v31 = vld [vmem:[%s9411_s2 + $0x2d8] sm:$0xf0]  ;;  %v75_v36 = vld [vmem:[%s9410_s0 + $0x1e0] sm:$0xff] }
 0x324   :  { %2064 = vperm.xlu1 %5076, %v5165_v29   ;;  %2068 = vperm.xlu2 %5074, %v5166_v24   ;;  %v2600_v60 = vadd.f32 %v6747_v8, %v1540_v25  ;;  %v52_v29 = vld [vmem:[%s9410_s0 + $0x128] sm:$0xff]  ;;  %v4772_v24 = vor.u32 %v5011_v45, %v4769_v9  ;;  %v5171_v8 = vld [vmem:[%s9409_s1 + $0x2f0] sm:$0xff]  ;;  %v2810_v15 = vmax.f32 %v2598_v63, 0.0  ;;  %v2809_v16 = vmax.f32 %v2597_v14, 0.0 }
 0x325   :  { %2072 = vperm.xlu0 %5075, %v5167_v6   ;;  %3855 = vmatmul.bf16.vlgmr.msra.gmra.mxu3 %v4716_v28  ;;  %v3005_v28 = vpack.c.bf16 %v2816_v55, %v2815_v61  ;;  %v51_v6 = vld [vmem:[%s9410_s0 + $0x120] sm:$0xff]  ;;  %v5174_v61 = vld [vmem:[%s9409_s1 + $0x308] sm:$0xff] }
 0x326   :  { %v1897_v47 = vpop.permute.xlu1 %1896  ;;  %v6917_v33 = vpop.permute.xlu2 %1936  ;;  %3821 = vmatmul.bf16.gmra.mxu2 %v4880_v3  ;;  %v5172_v3 = vld [vmem:[%s9409_s1 + $0x2f8] sm:$0xff]  ;;  %v2812_v49 = vmax.f32 %v2600_v60, 0.0  ;;  %v1535_v4 = vmul.f32 %v9604_v11, %v51_v6  ;;  %v3002_v50 = vpack.c.bf16 %v2810_v15, %v2809_v16  ;;  %v5179_v6 = vld [vmem:[%s9409_s1 + $0x330] sm:$0xff]  ;;  %v76_v11 = vld [vmem:[%s9410_s0 + $0x1e8] sm:$0xff] }
 0x327   :  { %v2605_v1 = vadd.f32 %v1897_v47, %v1545_v62  ;;  %v6920_v23 = vpop.permute.xlu0 %1904  ;;  %v2813_v62 = vmax.f32 %v2601_v38, 0.0  ;;  %v1536_v47 = vmul.f32 %v9603_v40, %v52_v29  ;;  %v9607_v38 = vld [vmem:[#allocation8_spill] sm:$0xff]  ;;  %v4495_v40 = vld [vmem:[%s9411_s2 + $0x8] sm:$0xf]  ;;  %v9610_v16 = vld [vmem:[#allocation34_spill] sm:$0xff] }
 0x328   :  { %v2595_v55 = vadd.f32 %v6790_v12, %v1535_v4  ;;  %v5175_v12 = vld [vmem:[%s9409_s1 + $0x310] sm:$0xff]  ;;  %v78_v4 = vld [vmem:[%s9410_s0 + $0x1f8] sm:$0xff] }
 0x329   :  { %v2817_v48 = vmax.f32 %v2605_v1, 0.0  ;;  %v3004_v21 = vpack.c.bf16 %v2814_v10, %v2813_v62  ;;  %v2596_v0 = vadd.f32 %v6819_v19, %v1536_v47  ;;  %v1534_v19 = vmul.f32 %v9606_v7, %v50_v37  ;;  %v9608_v10 = vld [vmem:[#allocation2_spill] sm:$0xff] }
 0x32a   :  { %v2807_v26 = vmax.f32 %v2595_v55, 0.0  ;;  %v4949_v47 = vld [vmem:[%s9411_s2 + $0x3c] sm:$0xf0]  ;;  %v1560_v55 = vmul.f32 %v9610_v16, %v76_v11  ;;  %v70_v11 = vld [vmem:[%s9410_s0 + $0x1b8] sm:$0xff]  ;;  %v9617_v16 = vld [vmem:[#allocation28_spill] sm:$0xff] }
 0x32b   :  { %v3006_v58 = vpack.c.bf16 %v2818_v18, %v2817_v48  ;;  %v3003_v48 = vpack.c.bf16 %v2812_v49, %v2811_v51  ;;  %v5177_v51 = vld [vmem:[%s9409_s1 + $0x320] sm:$0xff]  ;;  %v4496_v22 = vor.u32 %v4949_v47, %v4495_v40 }
 0x32c   :  { %2076 = vperm.xlu1 %5076, %v5168_v5   ;;  %2080 = vperm.xlu2 %5074, %v5169_v41   ;;  %v2593_v5 = vadd.f32 %v6784_v44, %v1533_v20  ;;  %v2808_v41 = vmax.f32 %v2596_v0, 0.0  ;;  %v2594_v44 = vadd.f32 %v6701_v27, %v1534_v19  ;;  %v5025_v27 = vld [vmem:[%s9411_s2 + $0x2a4] sm:$0xf]  ;;  %v9609_v0 = vld [vmem:[#allocation24_spill] sm:$0xff]  ;;  %v5182_v20 = vld [vmem:[%s9409_s1 + $0x348] sm:$0xff] }
 0x32d   :  { %2084 = vperm.xlu0 %5075, %v5170_v46   ;;  %3876 = vmatpush.bf16.msrb.mxu2 %v3006_v58  ;;  %v48_v58 = vld [vmem:[%s9410_s0 + $0x108] sm:$0xff]  ;;  %v4828_v29 = vor.u32 %v5025_v27, %v4825_v31  ;;  %v5181_v37 = vld [vmem:[%s9409_s1 + $0x340] sm:$0xff] }
 0x32e   :  { %v6948_v35 = vpop.permute.xlu1 %1908  ;;  %v6950_v30 = vpop.permute.xlu2 %1948  ;;  %v1532_v46 = vmul.f32 %v9607_v38, %v48_v58  ;;  %v2805_v9 = vmax.f32 %v2593_v5, 0.0  ;;  %v3001_v54 = vpack.c.bf16 %v2808_v41, %v2807_v26  ;;  %v2806_v62 = vmax.f32 %v2594_v44, 0.0  ;;  %v9611_v58 = vld [vmem:[#allocation38_spill] sm:$0xff]  ;;  %v5039_v44 = vld [vmem:[%s9411_s2 + $0x314] sm:$0xf]  ;;  %v74_v26 = vld [vmem:[%s9410_s0 + $0x1d8] sm:$0xff] }
 0x32f   :  { %v6954_v34 = vpop.permute.xlu0 %1916  ;;  %v1562_v7 = vmul.f32 %v9611_v58, %v78_v4  ;;  %v4962_v27 = vld [vmem:[%s9411_s2 + $0xa4] sm:$0xf0]  ;;  %v9616_v4 = vld [vmem:[#allocation18_spill] sm:$0xff] }
 0x330   :  { %v2592_v45 = vadd.f32 %v6750_v42, %v1532_v46  ;;  %v4487_v42 = vld [vmem:[%s9411_s2] sm:$0xf]  ;;  %v3000_v2 = vpack.c.bf16 %v2806_v62, %v2805_v9  ;;  %v72_v31 = vld [vmem:[%s9410_s0 + $0x1c8] sm:$0xff] }
 0x331   :  { %3877 = vmatpush.bf16.msrb.mxu2 %v3005_v28  ;;  %v1531_v28 = vmul.f32 %v9608_v10, %v47_v39 }
 0x332   :  { %v2804_v57 = vmax.f32 %v2592_v45, 0.0 }
 0x333   :  { %v2591_v60 = vadd.f32 %v6683_v13, %v1531_v28  ;;  %v5178_v13 = vld [vmem:[%s9409_s1 + $0x328] sm:$0xff] }
 0x334   :  { %2088 = vperm.xlu1 %5076, %v5171_v8   ;;  %2092 = vperm.xlu2 %5074, %v5172_v3  }
 0x335   :  { %2096 = vperm.xlu0 %5075, %v5173_v43   ;;  %3878 = vmatpush.bf16.msrb.mxu2 %v3004_v21  ;;  %v2803_v21 = vmax.f32 %v2591_v60, 0.0  ;;  %v77_v43 = vld [vmem:[%s9410_s0 + $0x1f0] sm:$0xff] }
 0x336   :  { %v6989_v1 = vpop.permute.xlu1 %1920  ;;  %v6991_v52 = vpop.permute.xlu2 %1960  ;;  %3860 = vmatmul.bf16.gmra.mxu3 %v4772_v24  ;;  %v4948_v24 = vld [vmem:[%s9411_s2 + $0x34] sm:$0xf0]  ;;  %v1561_v15 = vmul.f32 %v9609_v0, %v77_v43 }
 0x337   :  { %v6995_v18 = vpop.permute.xlu0 %1928  ;;  %v4488_v63 = vor.u32 %v4948_v24, %v4487_v42  ;;  %v2999_v49 = vpack.c.bf16 %v2804_v57, %v2803_v21  ;;  %v5185_v21 = vld [vmem:[%s9409_s1 + $0x360] sm:$0xff]  ;;  %v4551_v43 = vld [vmem:[%s9411_s2 + $0x78] sm:$0xf] }
 0x338   :  { %v2621_v19 = vadd.f32 %v6991_v52, %v1561_v15  ;;  %v4881_v52 = vld [vmem:[%s9411_s2 + $0x348] sm:$0xf0] }
 0x339   :  { %3879 = vmatpush.bf16.msrb.mxu2 %v3003_v48  ;;  %3786 = vmatmul.bf16.vlgmr.msra.gmra.mxu0 %v4488_v63  ;;  %v5180_v48 = vld [vmem:[%s9409_s1 + $0x338] sm:$0xff]  ;;  %v4884_v60 = vor.u32 %v5039_v44, %v4881_v52 }
 0x33a   :  { %v2833_v28 = vmax.f32 %v2621_v19, 0.0  ;;  %v5184_v63 = vld [vmem:[%s9409_s1 + $0x358] sm:$0xff]  ;;  %v67_v19 = vld [vmem:[%s9410_s0 + $0x1a0] sm:$0xff] }
 0x33c   :  { %2100 = vperm.xlu1 %5076, %v5174_v61   ;;  %2104 = vperm.xlu2 %5074, %v5175_v12   ;;  %v9612_v61 = vld [vmem:[#allocation35_spill] sm:$0xff] }
 0x33d   :  { %2108 = vperm.xlu0 %5075, %v5176_v32   ;;  %3880 = vmatpush.bf16.msrb.mxu2 %v3002_v50  ;;  %v73_v50 = vld [vmem:[%s9410_s0 + $0x1d0] sm:$0xff]  ;;  %v1559_v12 = vmul.f32 %v9612_v61, %v75_v36  ;;  %v9613_v32 = vld [vmem:[#allocation31_spill] sm:$0xff] }
 0x33e   :  { %v7021_v25 = vpop.permute.xlu1 %1932  ;;  %v7023_v53 = vpop.permute.xlu2 %1972  ;;  %v1557_v10 = vmul.f32 %v9613_v32, %v73_v50  ;;  %v69_v36 = vld [vmem:[%s9410_s0 + $0x1b0] sm:$0xff]  ;;  %v5186_v61 = vld [vmem:[%s9409_s1 + $0x368] sm:$0xff] }
 0x33f   :  { %v7027_v17 = vpop.permute.xlu0 %1940 }
 0x341   :  { %3881 = vmatpush.bf16.msrb.mxu2 %v3001_v54  ;;  %v4543_v54 = vld [vmem:[%s9411_s2 + $0x70] sm:$0xf] }
 0x342   :  { %v4544_v62 = vor.u32 %v4962_v27, %v4543_v54 }
 0x344   :  { %2112 = vperm.xlu1 %5076, %v5177_v51   ;;  %2116 = vperm.xlu2 %5074, %v5178_v13   ;;  %v71_v13 = vld [vmem:[%s9410_s0 + $0x1c0] sm:$0xff] }
 0x345   :  { %2120 = vperm.xlu0 %5075, %v5179_v6   ;;  %3882 = vmatpush.bf16.msrb.mxu2 %v3000_v2  ;;  %v5183_v2 = vld [vmem:[%s9409_s1 + $0x350] sm:$0xff]  ;;  %v1555_v0 = vmul.f32 %v9616_v4, %v71_v13 }
 0x346   :  { %v1945_v8 = vpop.permute.xlu1 %1944  ;;  %v7051_v3 = vpop.permute.xlu2 %1984  ;;  %3865 = vmatmul.bf16.gmra.mxu3 %v4828_v29  ;;  %v9614_v29 = vld [vmem:[#allocation21_spill] sm:$0xff]  ;;  %v9615_v6 = vld [vmem:[#allocation32_spill] sm:$0xff] }
 0x347   :  { %v1953_v14 = vpop.permute.xlu0 %1952  ;;  %v1558_v42 = vmul.f32 %v9614_v29, %v74_v26  ;;  %v2617_v24 = vadd.f32 %v1945_v8, %v1557_v10  ;;  %v1556_v8 = vmul.f32 %v9615_v6, %v72_v31  ;;  %v2615_v58 = vadd.f32 %v6917_v33, %v1555_v0  ;;  %v5187_v33 = vld [vmem:[%s9409_s1 + $0x370] sm:$0xff]  ;;  %v5189_v6 = vld [vmem:[%s9409_s1 + $0x380] sm:$0xff] }
 0x348   :  { %v2619_v45 = vadd.f32 %v1953_v14, %v1559_v12 }
 0x349   :  { %3883 = vmatpush.bf16.msrb.mxu2 %v2999_v49  ;;  %v2618_v40 = vadd.f32 %v6950_v30, %v1558_v42  ;;  %3791 = vmatmul.bf16.gmra.mxu0 %v4544_v62  ;;  %v2616_v15 = vadd.f32 %v7027_v17, %v1556_v8  ;;  %v2827_v52 = vmax.f32 %v2615_v58, 0.0  ;;  %v9621_v62 = vld [vmem:[#allocation26_spill] sm:$0xff]  ;;  %v5190_v8 = vld [vmem:[%s9409_s1 + $0x388] sm:$0xff] }
 0x34a   :  { %v2831_v47 = vmax.f32 %v2619_v45, 0.0 }
 0x34c   :  { %2124 = vperm.xlu1 %5076, %v5180_v48   ;;  %2128 = vperm.xlu2 %5074, %v5181_v37   ;;  %v2829_v48 = vmax.f32 %v2617_v24, 0.0 }
 0x34d   :  { %2132 = vperm.xlu0 %5075, %v5182_v20   ;;  %3884 = vmatmul.bf16.vlgmr.msrb.gmra.mxu2 %v4496_v22  ;;  %v4963_v22 = vld [vmem:[%s9411_s2 + $0xac] sm:$0xf0] }
 0x34e   :  { %v1957_v5 = vpop.permute.xlu1 %1956  ;;  %v7084_v41 = vpop.permute.xlu2 %1996  ;;  %v4552_v20 = vor.u32 %v4963_v22, %v4551_v43  ;;  %v9623_v43 = vld [vmem:[#allocation22_spill] sm:$0xff] }
 0x34f   :  { %v1965_v39 = vpop.permute.xlu0 %1964  ;;  %v2620_v38 = vadd.f32 %v1957_v5, %v1560_v55  ;;  %v1554_v55 = vmul.f32 %v9617_v16, %v70_v11  ;;  %v9618_v5 = vld [vmem:[#allocation29_spill] sm:$0xff] }
 0x350   :  { %v2622_v46 = vadd.f32 %v1965_v39, %v1562_v7  ;;  %v2830_v7 = vmax.f32 %v2618_v40, 0.0  ;;  %v1553_v50 = vmul.f32 %v9618_v5, %v69_v36  ;;  %v2828_v39 = vmax.f32 %v2616_v15, 0.0  ;;  %v4977_v36 = vld [vmem:[%s9411_s2 + $0x11c] sm:$0xf0]  ;;  %v4941_v5 = vld [vmem:[%s9411_s2 + $0x4] sm:$0xf] }
 0x351   :  { %v2832_v57 = vmax.f32 %v2620_v38, 0.0  ;;  %v2614_v17 = vadd.f32 %v7021_v25, %v1554_v55  ;;  %v68_v38 = vld [vmem:[%s9410_s0 + $0x1a8] sm:$0xff]  ;;  %v5188_v25 = vld [vmem:[%s9409_s1 + $0x378] sm:$0xff] }
 0x352   :  { %v2834_v9 = vmax.f32 %v2622_v46, 0.0  ;;  %v3012_v12 = vpack.c.bf16 %v2830_v7, %v2829_v48  ;;  %v9619_v46 = vld [vmem:[#allocation25_spill] sm:$0xff]  ;;  %v2613_v26 = vadd.f32 %v6995_v18, %v1553_v50  ;;  %v65_v18 = vld [vmem:[%s9410_s0 + $0x190] sm:$0xff] }
 0x353   :  { %v3013_v37 = vpack.c.bf16 %v2832_v57, %v2831_v47  ;;  %v1551_v44 = vmul.f32 %v9619_v46, %v67_v19  ;;  %v2826_v31 = vmax.f32 %v2614_v17, 0.0  ;;  %v4599_v57 = vld [vmem:[%s9411_s2 + $0xe0] sm:$0xf]  ;;  %v4489_v50 = vld [vmem:[%s9411_s2 + $0x38] sm:$0xf0] }
 0x354   :  { %2136 = vperm.xlu1 %5076, %v5183_v2   ;;  %2140 = vperm.xlu2 %5074, %v5184_v63   ;;  %v3014_v51 = vpack.c.bf16 %v2834_v9, %v2833_v28  ;;  %v66_v28 = vld [vmem:[%s9410_s0 + $0x198] sm:$0xff]  ;;  %v9620_v9 = vld [vmem:[#allocation15_spill] sm:$0xff]  ;;  %v2825_v24 = vmax.f32 %v2613_v26, 0.0  ;;  %v63_v47 = vld [vmem:[%s9410_s0 + $0x180] sm:$0xff] }
 0x355   :  { %2144 = vperm.xlu0 %5075, %v5185_v21   ;;  %v1552_v54 = vmul.f32 %v9620_v9, %v68_v38  ;;  %v2611_v27 = vadd.f32 %v6989_v1, %v1551_v44  ;;  %v1550_v29 = vmul.f32 %v9621_v62, %v66_v28  ;;  %v4976_v1 = vld [vmem:[%s9411_s2 + $0x114] sm:$0xf0]  ;;  %v64_v2 = vld [vmem:[%s9410_s0 + $0x188] sm:$0xff]  ;;  %v5197_v62 = vld [vmem:[%s9409_s1 + $0x3c0] sm:$0xff] }
 0x356   :  { %3925 = vmatpush.bf16.msrb.mxu3 %v3014_v51  ;;  %v7124_v14 = vpop.permute.xlu1 %1968  ;;  %v7126_v49 = vpop.permute.xlu2 %2008  ;;  %v4600_v63 = vor.u32 %v4976_v1, %v4599_v57  ;;  %v9622_v51 = vld [vmem:[#allocation12_spill] sm:$0xff]  ;;  %v3010_v40 = vpack.c.bf16 %v2826_v31, %v2825_v24  ;;  %v1548_v22 = vmul.f32 %v9623_v43, %v64_v2  ;;  %v4942_v44 = vld [vmem:[%s9411_s2 + $0xc] sm:$0xf]  ;;  %v4663_v57 = vld [vmem:[%s9411_s2 + $0x158] sm:$0xf] }
 0x357   :  { %v7137_v30 = vpop.permute.xlu0 %1976  ;;  %3870 = vmatmul.bf16.gmra.mxu3 %v4884_v60  ;;  %v3011_v60 = vpack.c.bf16 %v2828_v39, %v2827_v52  ;;  %v2612_v42 = vadd.f32 %v6875_v56, %v1552_v54  ;;  %v1549_v13 = vmul.f32 %v9622_v51, %v65_v18  ;;  %v2610_v21 = vadd.f32 %v6954_v34, %v1550_v29  ;;  %v5191_v34 = vld [vmem:[%s9409_s1 + $0x390] sm:$0xff]  ;;  %v4497_v52 = vld [vmem:[%s9411_s2 + $0x40] sm:$0xf0]  ;;  %v92_v43 = vld [vmem:[%s9410_s0 + $0x268] sm:$0xff] }
 0x358   :  { %v2823_v56 = vmax.f32 %v2611_v27, 0.0  ;;  %v4492_v39 = vor.u32 %v4941_v5, %v4489_v50  ;;  %v4500_v9 = vor.u32 %v4942_v44, %v4497_v52  ;;  %v4655_v54 = vld [vmem:[%s9411_s2 + $0x150] sm:$0xf]  ;;  %v4990_v27 = vld [vmem:[%s9411_s2 + $0x184] sm:$0xf0]  ;;  %v91_v51 = vld [vmem:[%s9410_s0 + $0x260] sm:$0xff] }
 0x359   :  { %v2609_v11 = vadd.f32 %v6859_v59, %v1549_v13  ;;  %v2824_v4 = vmax.f32 %v2612_v42, 0.0  ;;  %3796 = vmatmul.bf16.gmra.mxu0 %v4600_v63  ;;  %v2608_v59 = vadd.f32 %v6948_v35, %v1548_v22  ;;  %v2822_v55 = vmax.f32 %v2610_v21, 0.0  ;;  %v5192_v35 = vld [vmem:[%s9409_s1 + $0x398] sm:$0xff]  ;;  %v5195_v31 = vld [vmem:[%s9409_s1 + $0x3b0] sm:$0xff]  ;;  %v95_v63 = vld [vmem:[%s9410_s0 + $0x280] sm:$0xff] }
 0x35a   :  { %3926 = vmatpush.bf16.msrb.mxu3 %v3013_v37  ;;  %v4607_v37 = vld [vmem:[%s9411_s2 + $0xe8] sm:$0xf]  ;;  %3835 = vmatmul.bf16.vlgmr.msra.gmra.mxu1 %v4492_v39  ;;  %v4656_v18 = vor.u32 %v4990_v27, %v4655_v54  ;;  %v4991_v1 = vld [vmem:[%s9411_s2 + $0x18c] sm:$0xf0]  ;;  %v94_v13 = vld [vmem:[%s9410_s0 + $0x278] sm:$0xff] }
 0x35b   :  { %v3009_v58 = vpack.c.bf16 %v2824_v4, %v2823_v56  ;;  %v2821_v7 = vmax.f32 %v2609_v11, 0.0  ;;  %v4608_v17 = vor.u32 %v4977_v36, %v4607_v37  ;;  %v93_v2 = vld [vmem:[%s9410_s0 + $0x270] sm:$0xff]  ;;  %v4545_v56 = vld [vmem:[%s9411_s2 + $0xa8] sm:$0xf0]  ;;  %v9626_v22 = vld [vmem:[#allocation42_spill] sm:$0xff] }
 0x35c   :  { %2148 = vperm.xlu1 %5076, %v5186_v61   ;;  %2152 = vperm.xlu2 %5074, %v5187_v33   ;;  %v2820_v61 = vmax.f32 %v2608_v59, 0.0  ;;  %v4955_v21 = vld [vmem:[%s9411_s2 + $0x74] sm:$0xf]  ;;  %v1579_v11 = vmul.f32 %v9626_v22, %v95_v63  ;;  %v5198_v4 = vld [vmem:[%s9409_s1 + $0x3c8] sm:$0xff]  ;;  %v9627_v36 = vld [vmem:[#allocation49_spill] sm:$0xff] }
 0x35d   :  { %2156 = vperm.xlu0 %5075, %v5188_v25   ;;  %3889 = vmatmul.bf16.gmra.mxu2 %v4552_v20  ;;  %v9624_v20 = vld [vmem:[#allocation23_spill] sm:$0xff]  ;;  %v3008_v33 = vpack.c.bf16 %v2822_v55, %v2821_v7  ;;  %v5199_v37 = vld [vmem:[%s9409_s1 + $0x3d0] sm:$0xff]  ;;  %v90_v7 = vld [vmem:[%s9410_s0 + $0x258] sm:$0xff] }
 0x35e   :  { %3927 = vmatpush.bf16.msrb.mxu3 %v3012_v12  ;;  %v7165_v32 = vpop.permute.xlu1 %1980  ;;  %v7167_v10 = vpop.permute.xlu2 %2020  ;;  %v1547_v16 = vmul.f32 %v9624_v20, %v63_v47  ;;  %v5194_v12 = vld [vmem:[%s9409_s1 + $0x3a8] sm:$0xff]  ;;  %v1575_v20 = vmul.f32 %v9627_v36, %v91_v51  ;;  %v4553_v44 = vld [vmem:[%s9411_s2 + $0xb0] sm:$0xf0] }
 0x35f   :  { %v7172_v45 = vpop.permute.xlu0 %1988  ;;  %v96_v47 = vld [vmem:[%s9410_s0 + $0x288] sm:$0xff] }
 0x360   :  { %v2607_v19 = vadd.f32 %v6920_v23, %v1547_v16  ;;  %v5193_v23 = vld [vmem:[%s9409_s1 + $0x3a0] sm:$0xff]  ;;  %v9628_v16 = vld [vmem:[#allocation52_spill] sm:$0xff] }
 0x361   :  { %v1578_v59 = vmul.f32 %v9628_v16, %v94_v13  ;;  %v87_v13 = vld [vmem:[%s9410_s0 + $0x240] sm:$0xff] }
 0x362   :  { %3928 = vmatpush.bf16.msrb.mxu3 %v3011_v60  ;;  %v2819_v38 = vmax.f32 %v2607_v19, 0.0  ;;  %v5196_v60 = vld [vmem:[%s9409_s1 + $0x3b8] sm:$0xff]  ;;  %v9629_v19 = vld [vmem:[#allocation56_spill] sm:$0xff] }
 0x363   :  { %v1580_v5 = vmul.f32 %v9629_v19, %v96_v47  ;;  %v5203_v47 = vld [vmem:[%s9409_s1 + $0x3f0] sm:$0xff] }
 0x364   :  { %2160 = vperm.xlu1 %5076, %v5189_v6   ;;  %2164 = vperm.xlu2 %5074, %v5190_v8   ;;  %v3007_v28 = vpack.c.bf16 %v2820_v61, %v2819_v38  ;;  %v4664_v6 = vor.u32 %v4991_v1, %v4663_v57  ;;  %v9625_v8 = vld [vmem:[#allocation53_spill] sm:$0xff]  ;;  %v9630_v61 = vld [vmem:[#allocation39_spill] sm:$0xff]  ;;  %v9632_v57 = vld [vmem:[#allocation36_spill] sm:$0xff] }
 0x365   :  { %2168 = vperm.xlu0 %5075, %v5191_v34   ;;  %v4548_v34 = vor.u32 %v4955_v21, %v4545_v56  ;;  %v4956_v38 = vld [vmem:[%s9411_s2 + $0x7c] sm:$0xf]  ;;  %v5202_v21 = vld [vmem:[%s9409_s1 + $0x3e8] sm:$0xff] }
 0x366   :  { %3929 = vmatpush.bf16.msrb.mxu3 %v3010_v40  ;;  %v7206_v0 = vpop.permute.xlu1 %1992  ;;  %v7208_v15 = vpop.permute.xlu2 %2032  ;;  %v1577_v40 = vmul.f32 %v9625_v8, %v93_v2 }
 0x367   :  { %v7210_v48 = vpop.permute.xlu0 %2000  ;;  %v2639_v50 = vadd.f32 %v7208_v15, %v1579_v11  ;;  %v89_v15 = vld [vmem:[%s9410_s0 + $0x250] sm:$0xff]  ;;  %v9634_v11 = vld [vmem:[#allocation47_spill] sm:$0xff] }
 0x368   :  { %v1573_v1 = vmul.f32 %v9632_v57, %v89_v15  ;;  %v83_v15 = vld [vmem:[%s9410_s0 + $0x220] sm:$0xff] }
 0x369   :  { %3801 = vmatmul.bf16.gmra.mxu0 %v4656_v18  ;;  %v88_v18 = vld [vmem:[%s9410_s0 + $0x248] sm:$0xff] }
 0x36a   :  { %3930 = vmatpush.bf16.msrb.mxu3 %v3009_v58  ;;  %v5200_v58 = vld [vmem:[%s9409_s1 + $0x3d8] sm:$0xff]  ;;  %3840 = vmatmul.bf16.gmra.mxu1 %v4548_v34  ;;  %v2633_v8 = vadd.f32 %v7126_v49, %v1573_v1  ;;  %v85_v34 = vld [vmem:[%s9410_s0 + $0x230] sm:$0xff] }
 0x36b   :  { %v86_v49 = vld [vmem:[%s9410_s0 + $0x238] sm:$0xff] }
 0x36c   :  { %2172 = vperm.xlu1 %5076, %v5192_v35   ;;  %2176 = vperm.xlu2 %5074, %v5193_v23   ;;  %v1576_v35 = vmul.f32 %v9630_v61, %v92_v43  ;;  %v2845_v19 = vmax.f32 %v2633_v8, 0.0  ;;  %v84_v61 = vld [vmem:[%s9410_s0 + $0x228] sm:$0xff]  ;;  %v79_v8 = vld [vmem:[%s9410_s0 + $0x200] sm:$0xff] }
 0x36d   :  { %2180 = vperm.xlu0 %5075, %v5194_v12   ;;  %3894 = vmatmul.bf16.gmra.mxu2 %v4608_v17 }
 0x36e   :  { %3931 = vmatpush.bf16.msrb.mxu3 %v3008_v33  ;;  %v7236_v25 = vpop.permute.xlu1 %2004  ;;  %v7238_v46 = vpop.permute.xlu2 %2044  ;;  %v2636_v27 = vadd.f32 %v7167_v10, %v1576_v35  ;;  %v5201_v10 = vld [vmem:[%s9409_s1 + $0x3e0] sm:$0xff] }
 0x36f   :  { %v7246_v26 = vpop.permute.xlu0 %2012  ;;  %v4969_v35 = vld [vmem:[%s9411_s2 + $0xe4] sm:$0xf] }
 0x372   :  { %3932 = vmatpush.bf16.msrb.mxu3 %v3007_v28 }
 0x374   :  { %2184 = vperm.xlu1 %5076, %v5195_v31   ;;  %2188 = vperm.xlu2 %5074, %v5196_v60  }
 0x375   :  { %2192 = vperm.xlu0 %5075, %v5197_v62   ;;  %3933 = vmatmul.bf16.vlgmr.msrb.gmra.mxu3 %v4500_v9  ;;  %v9631_v9 = vld [vmem:[#allocation50_spill] sm:$0xff]  ;;  %v2851_v62 = vmax.f32 %v2639_v50, 0.0 }
 0x376   :  { %v2017_v29 = vpop.permute.xlu1 %2016  ;;  %v7263_v42 = vpop.permute.xlu2 %2056  ;;  %v1574_v54 = vmul.f32 %v9631_v9, %v90_v7  ;;  %v5205_v9 = vld [vmem:[%s9409_s1 + $0x400] sm:$0xff] }
 0x377   :  { %v2025_v24 = vpop.permute.xlu0 %2024  ;;  %v2635_v23 = vadd.f32 %v2017_v29, %v1575_v20 }
 0x378   :  { %v2637_v55 = vadd.f32 %v2025_v24, %v1577_v40  ;;  %v7322_v52 = vpop.f32.mrf.mxu2  ;;  %v4556_v24 = vor.u32 %v4956_v38, %v4553_v44  ;;  %v2634_v2 = vadd.f32 %v7246_v26, %v1574_v54  ;;  %v2848_v40 = vmax.f32 %v2636_v27, 0.0  ;;  %v9637_v54 = vld [vmem:[#allocation44_spill] sm:$0xff] }
 0x379   :  { %v2847_v63 = vmax.f32 %v2635_v23, 0.0  ;;  %v4601_v23 = vld [vmem:[%s9411_s2 + $0x118] sm:$0xf0]  ;;  %v1568_v27 = vmul.f32 %v9637_v54, %v84_v61  ;;  %v5210_v54 = vld [vmem:[%s9409_s1 + $0x428] sm:$0xff] }
 0x37a   :  { %v2849_v31 = vmax.f32 %v2637_v55, 0.0  ;;  %v2846_v36 = vmax.f32 %v2634_v2, 0.0  ;;  %v5005_v55 = vld [vmem:[%s9411_s2 + $0x1fc] sm:$0xf0]  ;;  %v4604_v44 = vor.u32 %v4969_v35, %v4601_v23 }
 0x37b   :  { %v3021_v16 = vpack.c.bf16 %v2848_v40, %v2847_v63 }
 0x37c   :  { %2196 = vperm.xlu1 %5076, %v5198_v4   ;;  %2200 = vperm.xlu2 %5074, %v5199_v37   ;;  %v1571_v4 = vmul.f32 %v9634_v11, %v87_v13  ;;  %v3020_v38 = vpack.c.bf16 %v2846_v36, %v2845_v19  ;;  %v4609_v13 = vld [vmem:[%s9411_s2 + $0x120] sm:$0xf0]  ;;  %v80_v36 = vld [vmem:[%s9410_s0 + $0x208] sm:$0xff] }
 0x37d   :  { %2204 = vperm.xlu0 %5075, %v5200_v58   ;;  %3899 = vmatmul.bf16.gmra.mxu2 %v4664_v6  ;;  %v9633_v6 = vld [vmem:[#allocation46_spill] sm:$0xff]  ;;  %v9635_v58 = vld [vmem:[#allocation43_spill] sm:$0xff] }
 0x37e   :  { %v2029_v17 = vpop.permute.xlu1 %2028  ;;  %v7313_v39 = vpop.permute.xlu2 %2068  ;;  %v1572_v26 = vmul.f32 %v9633_v6, %v88_v18  ;;  %v1569_v7 = vmul.f32 %v9635_v58, %v85_v34  ;;  %v82_v18 = vld [vmem:[%s9410_s0 + $0x218] sm:$0xff]  ;;  %3845 = vmatmul.bf16.gmra.mxu1 %v4604_v44 }
 0x37f   :  { %v2638_v33 = vadd.f32 %v2029_v17, %v1578_v59  ;;  %v2037_v12 = vpop.permute.xlu0 %2036  ;;  %v4719_v59 = vld [vmem:[%s9411_s2 + $0x1c8] sm:$0xf] }
 0x380   :  { %v2640_v28 = vadd.f32 %v2037_v12, %v1580_v5  ;;  %v2632_v37 = vadd.f32 %v7236_v25, %v1572_v26  ;;  %v2631_v5 = vadd.f32 %v7210_v48, %v1571_v4  ;;  %v7372_v50 = vpop.f32.mrf.mxu2  ;;  %v9636_v25 = vld [vmem:[#allocation33_spill] sm:$0xff]  ;;  %v2629_v48 = vadd.f32 %v7206_v0, %v1569_v7  ;;  %v5209_v7 = vld [vmem:[%s9409_s1 + $0x420] sm:$0xff] }
 0x381   :  { %v2850_v60 = vmax.f32 %v2638_v33, 0.0  ;;  %v1570_v17 = vmul.f32 %v9636_v25, %v86_v49  ;;  %v4720_v33 = vor.u32 %v5005_v55, %v4719_v59  ;;  %v9641_v59 = vld [vmem:[#allocation37_spill] sm:$0xff]  ;;  %v9642_v25 = vld [vmem:[#allocation27_spill] sm:$0xff] }
 0x382   :  { %v2852_v29 = vmax.f32 %v2640_v28, 0.0  ;;  %v2844_v12 = vmax.f32 %v2632_v37, 0.0  ;;  %v5204_v28 = vld [vmem:[%s9409_s1 + $0x3f8] sm:$0xff]  ;;  %v2841_v1 = vmax.f32 %v2629_v48, 0.0  ;;  %v5019_v48 = vld [vmem:[%s9411_s2 + $0x26c] sm:$0xf0] }
 0x383   :  { %v3022_v51 = vpack.c.bf16 %v2850_v60, %v2849_v31  ;;  %v2630_v0 = vadd.f32 %v7084_v41, %v1570_v17  ;;  %v2843_v31 = vmax.f32 %v2631_v5, 0.0  ;;  %v5206_v60 = vld [vmem:[%s9409_s1 + $0x408] sm:$0xff]  ;;  %v2628_v41 = vadd.f32 %v7172_v45, %v1568_v27 }
 0x384   :  { %2208 = vperm.xlu1 %5076, %v5201_v10   ;;  %2212 = vperm.xlu2 %5074, %v5202_v21   ;;  %v7343_v56 = vpack.c.bf16 %v2852_v29, %v2851_v62  ;;  %v81_v10 = vld [vmem:[%s9410_s0 + $0x210] sm:$0xff]  ;;  %v1564_v17 = vmul.f32 %v9642_v25, %v80_v36 }
 0x385   :  { %2216 = vperm.xlu0 %5075, %v5203_v47   ;;  %3974 = vmatpush.bf16.msrb.mxu0 %v3022_v51  ;;  %v3019_v63 = vpack.c.bf16 %v2844_v12, %v2843_v31  ;;  %v4970_v51 = vld [vmem:[%s9411_s2 + $0xec] sm:$0xf]  ;;  %v9639_v21 = vld [vmem:[#allocation40_spill] sm:$0xff]  ;;  %v2842_v26 = vmax.f32 %v2630_v0, 0.0  ;;  %v9640_v47 = vld [vmem:[#allocation41_spill] sm:$0xff]  ;;  %v2840_v11 = vmax.f32 %v2628_v41, 0.0 }
 0x386   :  { %v7353_v43 = vpop.permute.xlu1 %2040  ;;  %v7355_v22 = vpop.permute.xlu2 %2080  ;;  %3938 = vmatmul.bf16.gmra.mxu3 %v4556_v24  ;;  %v9638_v24 = vld [vmem:[#allocation30_spill] sm:$0xff]  ;;  %v1566_v6 = vmul.f32 %v9639_v21, %v82_v18  ;;  %v4612_v40 = vor.u32 %v4970_v51, %v4609_v13  ;;  %v1565_v34 = vmul.f32 %v9640_v47, %v81_v10  ;;  %v2624_v12 = vadd.f32 %v7023_v53, %v1564_v17  ;;  %v5211_v53 = vld [vmem:[%s9409_s1 + $0x430] sm:$0xff]  ;;  %v5212_v31 = vld [vmem:[%s9409_s1 + $0x438] sm:$0xff] }
 0x387   :  { %v7362_v20 = vpop.permute.xlu0 %2048  ;;  %v1567_v57 = vmul.f32 %v9638_v24, %v83_v15  ;;  %v3018_v4 = vpack.c.bf16 %v2842_v26, %v2841_v1  ;;  %v4950_v41 = vld [vmem:[%s9411_s2 + $0x44] sm:$0xf0]  ;;  %v4984_v51 = vld [vmem:[%s9411_s2 + $0x15c] sm:$0xf]  ;;  %v4665_v13 = vld [vmem:[%s9411_s2 + $0x190] sm:$0xf0] }
 0x388   :  { %v2626_v49 = vadd.f32 %v7165_v32, %v1566_v6  ;;  %v1563_v32 = vmul.f32 %v9641_v59, %v79_v8  ;;  %v2625_v58 = vadd.f32 %v7137_v30, %v1565_v34  ;;  %v4775_v30 = vld [vmem:[%s9411_s2 + $0x238] sm:$0xf]  ;;  %v2836_v0 = vmax.f32 %v2624_v12, 0.0  ;;  %v109_v6 = vld [vmem:[%s9410_s0 + $0x2f0] sm:$0xff]  ;;  %v107_v47 = vld [vmem:[%s9410_s0 + $0x2e0] sm:$0xff] }
 0x389   :  { %3975 = vmatpush.bf16.msrb.mxu0 %v3021_v16  ;;  %v2627_v45 = vadd.f32 %v7051_v3, %v1567_v57  ;;  %v7426_v37 = vpop.f32.mrf.mxu2  ;;  %v5207_v3 = vld [vmem:[%s9409_s1 + $0x410] sm:$0xff]  ;;  %v5208_v16 = vld [vmem:[%s9409_s1 + $0x418] sm:$0xff]  ;;  %v4776_v44 = vor.u32 %v5019_v48, %v4775_v30  ;;  %v4668_v26 = vor.u32 %v4984_v51, %v4665_v13  ;;  %v5213_v34 = vld [vmem:[%s9409_s1 + $0x440] sm:$0xff] }
 0x38a   :  { %v2623_v61 = vadd.f32 %v7124_v14, %v1563_v32  ;;  %v2838_v35 = vmax.f32 %v2626_v49, 0.0  ;;  %v4983_v14 = vld [vmem:[%s9411_s2 + $0x154] sm:$0xf]  ;;  %v4503_v57 = vld [vmem:[%s9411_s2 + $0x10] sm:$0xf]  ;;  %v110_v10 = vld [vmem:[%s9410_s0 + $0x2f8] sm:$0xff] }
 0x38b   :  { %v2839_v55 = vmax.f32 %v2627_v45, 0.0  ;;  %v4504_v21 = vor.u32 %v4950_v41, %v4503_v57  ;;  %v108_v45 = vld [vmem:[%s9410_s0 + $0x2e8] sm:$0xff]  ;;  %v9643_v8 = vld [vmem:[#allocation57_spill] sm:$0xff]  ;;  %v5214_v49 = vld [vmem:[%s9409_s1 + $0x470] sm:$0xff] }
 0x38c   :  { %2220 = vperm.xlu1 %5076, %v5204_v28   ;;  %2224 = vperm.xlu2 %5074, %v5205_v9   ;;  %v2835_v15 = vmax.f32 %v2623_v61, 0.0  ;;  %v4657_v9 = vld [vmem:[%s9411_s2 + $0x188] sm:$0xf0]  ;;  %v9645_v36 = vld [vmem:[#allocation68_spill] sm:$0xff]  ;;  %v5215_v59 = vld [vmem:[%s9409_s1 + $0x478] sm:$0xff] }
 0x38d   :  { %2228 = vperm.xlu0 %5075, %v5206_v60   ;;  %3976 = vmatpush.bf16.msrb.mxu0 %v3020_v38  ;;  %v2837_v38 = vmax.f32 %v2625_v58, 0.0  ;;  %v4660_v27 = vor.u32 %v4983_v14, %v4657_v9  ;;  %v106_v32 = vld [vmem:[%s9410_s0 + $0x2d8] sm:$0xff]  ;;  %v105_v48 = vld [vmem:[%s9410_s0 + $0x2d0] sm:$0xff]  ;;  %v103_v9 = vld [vmem:[%s9410_s0 + $0x2c0] sm:$0xff] }
 0x38e   :  { %v7402_v62 = vpop.permute.xlu1 %2052  ;;  %v7404_v29 = vpop.permute.xlu2 %2092  ;;  %3904 = vmatmul.bf16.gmra.mxu2 %v4720_v33  ;;  %v3017_v33 = vpack.c.bf16 %v2840_v11, %v2839_v55  ;;  %v9644_v11 = vld [vmem:[#allocation67_spill] sm:$0xff] }
 0x38f   :  { %v7408_v2 = vpop.permute.xlu0 %2060  ;;  %v3016_v28 = vpack.c.bf16 %v2838_v35, %v2837_v38  ;;  %3850 = vmatmul.bf16.gmra.mxu1 %v4660_v27  ;;  %v9647_v38 = vld [vmem:[#allocation64_spill] sm:$0xff]  ;;  %v104_v41 = vld [vmem:[%s9410_s0 + $0x2c8] sm:$0xff] }
 0x391   :  { %3977 = vmatpush.bf16.msrb.mxu0 %v3019_v63  ;;  %v7472_v60 = vpop.f32.mrf.mxu2  ;;  %v3015_v63 = vpack.c.bf16 %v2836_v0, %v2835_v15 }
 0x394   :  { %2232 = vperm.xlu1 %5076, %v5207_v3   ;;  %2236 = vperm.xlu2 %5074, %v5208_v16   ;;  %v1592_v3 = vmul.f32 %v9645_v36, %v108_v45  ;;  %v4721_v36 = vld [vmem:[%s9411_s2 + $0x200] sm:$0xf0] }
 0x395   :  { %2240 = vperm.xlu0 %5075, %v5209_v7   ;;  %3978 = vmatpush.bf16.msrb.mxu0 %v3018_v4  ;;  %v1593_v4 = vmul.f32 %v9644_v11, %v109_v6  ;;  %v9646_v7 = vld [vmem:[#allocation54_spill] sm:$0xff] }
 0x396   :  { %v7442_v19 = vpop.permute.xlu1 %2064  ;;  %v7444_v5 = vpop.permute.xlu2 %2104  ;;  %3943 = vmatmul.bf16.gmra.mxu3 %v4612_v40  ;;  %v1594_v40 = vmul.f32 %v9643_v8, %v110_v10  ;;  %v1591_v25 = vmul.f32 %v9646_v7, %v107_v47  ;;  %v5218_v10 = vld [vmem:[%s9409_s1 + $0x460] sm:$0xff]  ;;  %v9650_v8 = vld [vmem:[#allocation51_spill] sm:$0xff] }
 0x397   :  { %v7448_v23 = vpop.permute.xlu0 %2072 }
 0x398   :  { %v2654_v16 = vadd.f32 %v7404_v29, %v1594_v40  ;;  %v4831_v29 = vld [vmem:[%s9411_s2 + $0x2a8] sm:$0xf]  ;;  %v2651_v15 = vadd.f32 %v7355_v22, %v1591_v25  ;;  %v5216_v22 = vld [vmem:[%s9409_s1 + $0x4f0] sm:$0xff]  ;;  %v1588_v40 = vmul.f32 %v9650_v8, %v104_v41 }
 0x399   :  { %3979 = vmatpush.bf16.msrb.mxu0 %v3017_v33  ;;  %v5033_v33 = vld [vmem:[%s9411_s2 + $0x2dc] sm:$0xf0]  ;;  %v7527_v30 = vpop.f32.mrf.mxu2  ;;  %v100_v25 = vld [vmem:[%s9410_s0 + $0x2a8] sm:$0xff] }
 0x39a   :  { %v2863_v13 = vmax.f32 %v2651_v15, 0.0  ;;  %v5219_v15 = vld [vmem:[%s9409_s1 + $0x468] sm:$0xff] }
 0x39c   :  { %2244 = vperm.xlu1 %5076, %v5210_v54   ;;  %2248 = vperm.xlu2 %5074, %v5211_v53   ;;  %v4832_v54 = vor.u32 %v5033_v33, %v4831_v29  ;;  %v9648_v53 = vld [vmem:[#allocation65_spill] sm:$0xff]  ;;  %v9652_v29 = vld [vmem:[#allocation48_spill] sm:$0xff] }
 0x39d   :  { %2252 = vperm.xlu0 %5075, %v5212_v31   ;;  %3980 = vmatpush.bf16.msrb.mxu0 %v3016_v28  ;;  %v2866_v28 = vmax.f32 %v2654_v16, 0.0  ;;  %v1589_v27 = vmul.f32 %v9648_v53, %v105_v48  ;;  %v9651_v16 = vld [vmem:[#allocation62_spill] sm:$0xff] }
 0x39e   :  { %v2077_v18 = vpop.permute.xlu1 %2076  ;;  %v7474_v24 = vpop.permute.xlu2 %2116  ;;  %3909 = vmatmul.bf16.gmra.mxu2 %v4776_v44  ;;  %v1590_v44 = vmul.f32 %v9647_v38, %v106_v32 }
 0x39f   :  { %v2085_v1 = vpop.permute.xlu0 %2084 }
 0x3a0   :  { %v2652_v17 = vadd.f32 %v2085_v1, %v1592_v3  ;;  %v2650_v0 = vadd.f32 %v2077_v18, %v1590_v44  ;;  %v5217_v1 = vld [vmem:[%s9409_s1 + $0x4f8] sm:$0xff]  ;;  %v2649_v18 = vadd.f32 %v7448_v23, %v1589_v27  ;;  %v101_v3 = vld [vmem:[%s9410_s0 + $0x2b0] sm:$0xff]  ;;  %v5221_v27 = vld [vmem:[%s9409_s1 + $0x4e8] sm:$0xff] }
 0x3a1   :  { %3981 = vmatpush.bf16.msrb.mxu0 %v3015_v63  ;;  %v9649_v63 = vld [vmem:[#allocation61_spill] sm:$0xff]  ;;  %v1585_v33 = vmul.f32 %v9652_v29, %v101_v3  ;;  %v5222_v3 = vld [vmem:[%s9409_s1 + $0x450] sm:$0xff]  ;;  %v4978_v29 = vld [vmem:[%s9411_s2 + $0x124] sm:$0xf0] }
 0x3a2   :  { %v2864_v31 = vmax.f32 %v2652_v17, 0.0  ;;  %v1587_v51 = vmul.f32 %v9649_v63, %v103_v9  ;;  %v4964_v23 = vld [vmem:[%s9411_s2 + $0xb4] sm:$0xf0]  ;;  %v2861_v32 = vmax.f32 %v2649_v18, 0.0 }
 0x3a3   :  { %v98_v18 = vld [vmem:[%s9410_s0 + $0x298] sm:$0xff] }
 0x3a4   :  { %2256 = vperm.xlu1 %5076, %v5213_v34   ;;  %2280 = vperm.xlu2 %5074, %v5214_v49   ;;  %v2647_v47 = vadd.f32 %v7442_v19, %v1587_v51  ;;  %v2862_v34 = vmax.f32 %v2650_v0, 0.0  ;;  %v3029_v11 = vpack.c.bf16 %v2864_v31, %v2863_v13  ;;  %v2648_v19 = vadd.f32 %v7313_v39, %v1588_v40  ;;  %v99_v39 = vld [vmem:[%s9410_s0 + $0x2a0] sm:$0xff]  ;;  %v4887_v51 = vld [vmem:[%s9411_s2 + $0x318] sm:$0xf]  ;;  %v5047_v13 = vld [vmem:[%s9411_s2 + $0x34c] sm:$0xf0] }
 0x3a5   :  { %2284 = vperm.xlu0 %5075, %v5215_v59   ;;  %3982 = vmatmul.bf16.vlgmr.msrb.gmra.mxu0 %v4504_v21  ;;  %v102_v21 = vld [vmem:[%s9410_s0 + $0x2b8] sm:$0xff]  ;;  %v4888_v8 = vor.u32 %v5047_v13, %v4887_v51  ;;  %v124_v51 = vld [vmem:[%s9410_s0 + $0x368] sm:$0xff] }
 0x3a6   :  { %v2089_v55 = vpop.permute.xlu1 %2088  ;;  %v7516_v58 = vpop.permute.xlu2 %2128  ;;  %3948 = vmatmul.bf16.gmra.mxu3 %v4668_v26  ;;  %v4559_v26 = vld [vmem:[%s9411_s2 + $0x80] sm:$0xf]  ;;  %v1586_v59 = vmul.f32 %v9651_v16, %v102_v21  ;;  %v2859_v38 = vmax.f32 %v2647_v47, 0.0  ;;  %v3028_v44 = vpack.c.bf16 %v2862_v34, %v2861_v32  ;;  %v2860_v53 = vmax.f32 %v2648_v19, 0.0  ;;  %v9656_v40 = vld [vmem:[#allocation45_spill] sm:$0xff] }
 0x3a7   :  { %v2653_v61 = vadd.f32 %v2089_v55, %v1593_v4  ;;  %v7519_v35 = vpop.permute.xlu0 %2096  ;;  %v4998_v4 = vld [vmem:[%s9411_s2 + $0x1cc] sm:$0xf]  ;;  %v7582_v55 = vpop.f32.mrf.mxu2  ;;  %v4560_v17 = vor.u32 %v4964_v23, %v4559_v26  ;;  %v1582_v47 = vmul.f32 %v9656_v40, %v98_v18  ;;  %v126_v13 = vld [vmem:[%s9410_s0 + $0x378] sm:$0xff]  ;;  %v9658_v18 = vld [vmem:[#allocation72_spill] sm:$0xff] }
 0x3a8   :  { %v7532_v12 = vpop.f32.mrf.mxu3  ;;  %v2646_v48 = vadd.f32 %v7408_v2, %v1586_v59  ;;  %v97_v2 = vld [vmem:[%s9410_s0 + $0x290] sm:$0xff] }
 0x3a9   :  { %v2865_v14 = vmax.f32 %v2653_v61, 0.0  ;;  %v4724_v61 = vor.u32 %v4998_v4, %v4721_v36  ;;  %v5224_v59 = vld [vmem:[%s9409_s1 + $0x4d0] sm:$0xff] }
 0x3ab   :  { %v3030_v57 = vpack.c.bf16 %v2866_v28, %v2865_v14  ;;  %v5220_v28 = vld [vmem:[%s9409_s1 + $0x4e0] sm:$0xff] }
 0x3ac   :  { %2344 = vperm.xlu1 %5076, %v5216_v22   ;;  %2348 = vperm.xlu2 %5074, %v5217_v1   ;;  %v9653_v14 = vld [vmem:[#allocation58_spill] sm:$0xff]  ;;  %v2858_v1 = vmax.f32 %v2646_v48, 0.0  ;;  %v4777_v48 = vld [vmem:[%s9411_s2 + $0x270] sm:$0xf0] }
 0x3ad   :  { %2272 = vperm.xlu0 %5075, %v5218_v10   ;;  %4023 = vmatpush.bf16.msrb.mxu1 %v3030_v57  ;;  %v1584_v9 = vmul.f32 %v9653_v14, %v100_v25  ;;  %v9654_v57 = vld [vmem:[#allocation59_spill] sm:$0xff]  ;;  %v5227_v14 = vld [vmem:[%s9409_s1 + $0x4c0] sm:$0xff] }
 0x3ae   :  { %v7557_v6 = vpop.permute.xlu1 %2100  ;;  %v7559_v45 = vpop.permute.xlu2 %2140  ;;  %3914 = vmatmul.bf16.gmra.mxu2 %v4832_v54  ;;  %v2645_v54 = vadd.f32 %v7263_v42, %v1585_v33  ;;  %v1583_v41 = vmul.f32 %v9654_v57, %v99_v39  ;;  %v3027_v42 = vpack.c.bf16 %v2860_v53, %v2859_v38  ;;  %v9655_v10 = vld [vmem:[#allocation55_spill] sm:$0xff]  ;;  %v5012_v33 = vld [vmem:[%s9411_s2 + $0x23c] sm:$0xf]  ;;  %v4943_v57 = vld [vmem:[%s9411_s2 + $0x14] sm:$0xf] }
 0x3af   :  { %v7569_v49 = vpop.permute.xlu0 %2108  ;;  %v2644_v22 = vadd.f32 %v7402_v62, %v1584_v9  ;;  %v1581_v21 = vmul.f32 %v9655_v10, %v97_v2  ;;  %v7629_v4 = vpop.f32.mrf.mxu2  ;;  %v4780_v39 = vor.u32 %v5012_v33, %v4777_v48  ;;  %v5226_v2 = vld [vmem:[%s9409_s1 + $0x448] sm:$0xff] }
 0x3b0   :  { %v7584_v7 = vpop.f32.mrf.mxu3  ;;  %v2857_v26 = vmax.f32 %v2645_v54, 0.0  ;;  %v2643_v62 = vadd.f32 %v7362_v20, %v1583_v41  ;;  %v5223_v20 = vld [vmem:[%s9409_s1 + $0x458] sm:$0xff]  ;;  %v4505_v41 = vld [vmem:[%s9411_s2 + $0x48] sm:$0xf0] }
 0x3b1   :  { %4024 = vmatpush.bf16.msrb.mxu1 %v3029_v11  ;;  %v2641_v23 = vadd.f32 %v7353_v43, %v1581_v21  ;;  %v2856_v34 = vmax.f32 %v2644_v22, 0.0  ;;  %v2642_v43 = vadd.f32 %v7238_v46, %v1582_v47  ;;  %v5228_v21 = vld [vmem:[%s9409_s1 + $0x4c8] sm:$0xff]  ;;  %v9660_v47 = vld [vmem:[#allocation86_spill] sm:$0xff] }
 0x3b2   :  { %v3026_v11 = vpack.c.bf16 %v2858_v1, %v2857_v26  ;;  %v2855_v16 = vmax.f32 %v2643_v62, 0.0  ;;  %v125_v1 = vld [vmem:[%s9410_s0 + $0x370] sm:$0xff]  ;;  %v123_v26 = vld [vmem:[%s9410_s0 + $0x360] sm:$0xff]  ;;  %v5230_v62 = vld [vmem:[%s9409_s1 + $0x4b8] sm:$0xff] }
 0x3b3   :  { %v2853_v19 = vmax.f32 %v2641_v23, 0.0  ;;  %v2854_v38 = vmax.f32 %v2642_v43, 0.0  ;;  %v1609_v10 = vmul.f32 %v9658_v18, %v125_v1  ;;  %v121_v23 = vld [vmem:[%s9410_s0 + $0x350] sm:$0xff]  ;;  %v120_v18 = vld [vmem:[%s9410_s0 + $0x348] sm:$0xff] }
 0x3b4   :  { %2276 = vperm.xlu1 %5076, %v5219_v15   ;;  %2336 = vperm.xlu2 %5074, %v5220_v28   ;;  %v3025_v46 = vpack.c.bf16 %v2856_v34, %v2855_v16  ;;  %v5225_v28 = vld [vmem:[%s9409_s1 + $0x4d8] sm:$0xff]  ;;  %v1610_v34 = vmul.f32 %v9660_v47, %v126_v13  ;;  %v4671_v16 = vld [vmem:[%s9411_s2 + $0x160] sm:$0xf] }
 0x3b5   :  { %2340 = vperm.xlu0 %5075, %v5221_v27   ;;  %4025 = vmatpush.bf16.msrb.mxu1 %v3028_v44  ;;  %v3024_v15 = vpack.c.bf16 %v2854_v38, %v2853_v19  ;;  %v5026_v38 = vld [vmem:[%s9411_s2 + $0x2ac] sm:$0xf]  ;;  %v9665_v47 = vld [vmem:[#allocation85_spill] sm:$0xff] }
 0x3b6   :  { %v7608_v0 = vpop.permute.xlu1 %2112  ;;  %v7610_v31 = vpop.permute.xlu2 %2152  ;;  %3987 = vmatmul.bf16.gmra.mxu0 %v4560_v17  ;;  %3953 = vmatmul.bf16.gmra.mxu3 %v4724_v61  ;;  %v4615_v17 = vld [vmem:[%s9411_s2 + $0xf0] sm:$0xf] }
 0x3b7   :  { %v7614_v63 = vpop.permute.xlu0 %2120  ;;  %v4616_v44 = vor.u32 %v4978_v29, %v4615_v17  ;;  %v7670_v9 = vpop.f32.mrf.mxu2  ;;  %v128_v17 = vld [vmem:[%s9410_s0 + $0x388] sm:$0xff] }
 0x3b8   :  { %9657 = vst [vmem:[#allocation9_spill] sm:$0xff] %v7670_v9 }
 0x3b9   :  { %4026 = vmatpush.bf16.msrb.mxu1 %v3027_v42  ;;  %v7631_v36 = vpop.f32.mrf.mxu3  ;;  %v4508_v42 = vor.u32 %v4943_v57, %v4505_v41 }
 0x3bc   :  { %2264 = vperm.xlu1 %5076, %v5222_v3   ;;  %2268 = vperm.xlu2 %5074, %v5223_v20  }
 0x3bd   :  { %2328 = vperm.xlu0 %5075, %v5224_v59   ;;  %4027 = vmatpush.bf16.msrb.mxu1 %v3026_v11  ;;  %v2669_v11 = vadd.f32 %v7610_v31, %v1609_v10  ;;  %v4992_v59 = vld [vmem:[%s9411_s2 + $0x194] sm:$0xf0] }
 0x3be   :  { %v7643_v32 = vpop.permute.xlu1 %2124  ;;  %v7645_v25 = vpop.permute.xlu2 %2164  ;;  %3919 = vmatmul.bf16.gmra.mxu2 %v4888_v8  ;;  %v9659_v8 = vld [vmem:[#allocation82_spill] sm:$0xff] }
 0x3bf   :  { %v7650_v61 = vpop.permute.xlu0 %2132  ;;  %v1608_v40 = vmul.f32 %v9659_v8, %v124_v51  ;;  %v2881_v57 = vmax.f32 %v2669_v11, 0.0  ;;  %v9663_v51 = vld [vmem:[#allocation75_spill] sm:$0xff]  ;;  %v5231_v8 = vld [vmem:[%s9409_s1 + $0x4a0] sm:$0xff]  ;;  %v5233_v11 = vld [vmem:[%s9409_s1 + $0x490] sm:$0xff] }
 0x3c0   :  { %v1612_v13 = vmul.f32 %v9663_v51, %v128_v17 }
 0x3c1   :  { %4028 = vmatpush.bf16.msrb.mxu1 %v3025_v46  ;;  %v7672_v54 = vpop.f32.mrf.mxu3  ;;  %v9661_v46 = vld [vmem:[#allocation83_spill] sm:$0xff] }
 0x3c2   :  { %v1607_v31 = vmul.f32 %v9661_v46, %v123_v26 }
 0x3c4   :  { %2332 = vperm.xlu1 %5076, %v5225_v28   ;;  %2260 = vperm.xlu2 %5074, %v5226_v2   ;;  %v7737_v2 = vpop.f32.mrf.mxu0 }
 0x3c5   :  { %2320 = vperm.xlu0 %5075, %v5227_v14   ;;  %4029 = vmatpush.bf16.msrb.mxu1 %v3024_v15  ;;  %v9662_v15 = vld [vmem:[#allocation79_spill] sm:$0xff]  ;;  %v127_v14 = vld [vmem:[%s9410_s0 + $0x380] sm:$0xff] }
 0x3c6   :  { %v2137_v53 = vpop.permute.xlu1 %2136  ;;  %v7674_v27 = vpop.permute.xlu2 %2176  ;;  %3992 = vmatmul.bf16.gmra.mxu0 %v4616_v44  ;;  %3958 = vmatmul.bf16.gmra.mxu3 %v4780_v39  ;;  %v4833_v44 = vld [vmem:[%s9411_s2 + $0x2e0] sm:$0xf0]  ;;  %v122_v39 = vld [vmem:[%s9410_s0 + $0x358] sm:$0xff]  ;;  %v1605_v28 = vmul.f32 %v9662_v15, %v121_v23 }
 0x3c7   :  { %v2145_v22 = vpop.permute.xlu0 %2144  ;;  %v4836_v10 = vor.u32 %v5026_v38, %v4833_v44  ;;  %v9667_v38 = vld [vmem:[#allocation66_spill] sm:$0xff] }
 0x3c8   :  { %v2667_v41 = vadd.f32 %v2145_v22, %v1607_v31  ;;  %v2665_v26 = vadd.f32 %v2137_v53, %v1605_v28  ;;  %v5232_v22 = vld [vmem:[%s9409_s1 + $0x4a8] sm:$0xff]  ;;  %v2672_v53 = vadd.f32 %v7645_v25, %v1612_v13  ;;  %v4957_v31 = vld [vmem:[%s9411_s2 + $0x84] sm:$0xf]  ;;  %v4561_v25 = vld [vmem:[%s9411_s2 + $0xb8] sm:$0xf0] }
 0x3c9   :  { %4030 = vmatpush.bf16.msrb.mxu1 %v7343_v56  ;;  %v5229_v56 = vld [vmem:[%s9409_s1 + $0x4b0] sm:$0xff]  ;;  %v7719_v19 = vpop.f32.mrf.mxu3 }
 0x3ca   :  { %v2877_v15 = vmax.f32 %v2665_v26, 0.0  ;;  %v9669_v13 = vld [vmem:[#allocation76_spill] sm:$0xff] }
 0x3cc   :  { %2324 = vperm.xlu1 %5076, %v5228_v21   ;;  %2312 = vperm.xlu2 %5074, %v5229_v56   ;;  %v9664_v21 = vld [vmem:[#allocation69_spill] sm:$0xff]  ;;  %v7792_v26 = vpop.f32.mrf.mxu0 }
 0x3cd   :  { %2316 = vperm.xlu0 %5075, %v5230_v62   ;;  %4031 = vmatmul.bf16.vlgmr.msrb.gmra.mxu1 %v4508_v42  ;;  %v4672_v42 = vor.u32 %v4992_v59, %v4671_v16  ;;  %v1606_v56 = vmul.f32 %v9664_v21, %v122_v39  ;;  %v2879_v59 = vmax.f32 %v2667_v41, 0.0  ;;  %v2884_v41 = vmax.f32 %v2672_v53, 0.0  ;;  %9670 = vst [vmem:[#allocation20_spill] sm:$0xff] %v7792_v26  ;;  %v9672_v53 = vld [vmem:[#allocation73_spill] sm:$0xff] }
 0x3ce   :  { %v2149_v3 = vpop.permute.xlu1 %2148  ;;  %v7711_v20 = vpop.permute.xlu2 %2188 }
 0x3cf   :  { %v2157_v43 = vpop.permute.xlu0 %2156  ;;  %v2668_v29 = vadd.f32 %v2149_v3, %v1608_v40  ;;  %v119_v40 = vld [vmem:[%s9410_s0 + $0x340] sm:$0xff]  ;;  %v9666_v3 = vld [vmem:[#allocation80_spill] sm:$0xff]  ;;  %v2666_v16 = vadd.f32 %v7559_v45, %v1606_v56 }
 0x3d0   :  { %v2670_v33 = vadd.f32 %v2157_v43, %v1610_v34  ;;  %v7725_v48 = vpop.f32.mrf.mxu2  ;;  %v1611_v34 = vmul.f32 %v9665_v47, %v127_v14  ;;  %v1604_v43 = vmul.f32 %v9666_v3, %v120_v18  ;;  %v1603_v44 = vmul.f32 %v9667_v38, %v119_v40  ;;  %v5235_v47 = vld [vmem:[%s9409_s1 + $0x480] sm:$0xff] }
 0x3d1   :  { %v2880_v62 = vmax.f32 %v2668_v29, 0.0  ;;  %v118_v29 = vld [vmem:[%s9410_s0 + $0x338] sm:$0xff]  ;;  %v7783_v51 = vpop.f32.mrf.mxu3  ;;  %v2878_v21 = vmax.f32 %v2666_v16, 0.0 }
 0x3d2   :  { %v2882_v1 = vmax.f32 %v2670_v33, 0.0  ;;  %v2664_v39 = vadd.f32 %v7650_v61, %v1604_v43  ;;  %v1602_v18 = vmul.f32 %v9669_v13, %v118_v29  ;;  %v115_v61 = vld [vmem:[%s9410_s0 + $0x320] sm:$0xff]  ;;  %v5006_v29 = vld [vmem:[%s9411_s2 + $0x204] sm:$0xf0] }
 0x3d3   :  { %v3037_v28 = vpack.c.bf16 %v2880_v62, %v2879_v59  ;;  %v9671_v62 = vld [vmem:[#allocation77_spill] sm:$0xff]  ;;  %v3036_v40 = vpack.c.bf16 %v2878_v21, %v2877_v15 }
 0x3d4   :  { %v3038_v23 = vpack.c.bf16 %v2882_v1, %v2881_v57  ;;  %2304 = vperm.xlu1 %5076, %v5231_v8   ;;  %2308 = vperm.xlu2 %5074, %v5232_v22   ;;  %v117_v57 = vld [vmem:[%s9410_s0 + $0x330] sm:$0xff]  ;;  %v2662_v8 = vadd.f32 %v7643_v32, %v1602_v18  ;;  %v2876_v22 = vmax.f32 %v2664_v39, 0.0  ;;  %v5236_v32 = vld [vmem:[%s9409_s1 + $0x488] sm:$0xff] }
 0x3d5   :  { %2296 = vperm.xlu0 %5075, %v5233_v11   ;;  %v1599_v11 = vmul.f32 %v9672_v53, %v115_v61 }
 0x3d6   :  { %4072 = vmatpush.bf16.msra.mxu2 %v3038_v23  ;;  %v2161_v17 = vpop.permute.xlu1 %2160  ;;  %v7763_v46 = vpop.permute.xlu2 %2200  ;;  %3997 = vmatmul.bf16.gmra.mxu0 %v4672_v42  ;;  %v4564_v42 = vor.u32 %v4957_v31, %v4561_v25  ;;  %v1601_v23 = vmul.f32 %v9671_v62, %v117_v57  ;;  %v4727_v25 = vld [vmem:[%s9411_s2 + $0x1d0] sm:$0xf]  ;;  %v4889_v57 = vld [vmem:[%s9411_s2 + $0x350] sm:$0xf0] }
 0x3d7   :  { %v2671_v33 = vadd.f32 %v2161_v17, %v1611_v34  ;;  %v7774_v45 = vpop.permute.xlu0 %2168  ;;  %3963 = vmatmul.bf16.gmra.mxu3 %v4836_v10  ;;  %v2663_v10 = vadd.f32 %v7516_v58, %v1603_v44  ;;  %v5234_v58 = vld [vmem:[%s9409_s1 + $0x498] sm:$0xff]  ;;  %v116_v34 = vld [vmem:[%s9410_s0 + $0x328] sm:$0xff]  ;;  %v2659_v38 = vadd.f32 %v7608_v0, %v1599_v11  ;;  %v2874_v44 = vmax.f32 %v2662_v8, 0.0  ;;  %v9675_v62 = vld [vmem:[#allocation60_spill] sm:$0xff] }
 0x3d8   :  { %v7778_v14 = vpop.f32.mrf.mxu2  ;;  %v2661_v43 = vadd.f32 %v7614_v63, %v1601_v23  ;;  %v114_v17 = vld [vmem:[%s9410_s0 + $0x318] sm:$0xff]  ;;  %v9673_v63 = vld [vmem:[#allocation63_spill] sm:$0xff]  ;;  %v4728_v18 = vor.u32 %v5006_v29, %v4727_v25  ;;  %v4971_v25 = vld [vmem:[%s9411_s2 + $0xf4] sm:$0xf] }
 0x3d9   :  { %9668 = vst [vmem:[#allocation19_spill] sm:$0xff] %v7778_v14  ;;  %v2883_v1 = vmax.f32 %v2671_v33, 0.0  ;;  %v2875_v3 = vmax.f32 %v2663_v10, 0.0  ;;  %v1600_v33 = vmul.f32 %v9673_v63, %v116_v34  ;;  %v112_v10 = vld [vmem:[%s9410_s0 + $0x308] sm:$0xff]  ;;  %v7859_v34 = vpop.f32.mrf.mxu0 }
 0x3da   :  { %4073 = vmatpush.bf16.msra.mxu2 %v3037_v28  ;;  %v5040_v28 = vld [vmem:[%s9411_s2 + $0x31c] sm:$0xf]  ;;  %v2873_v13 = vmax.f32 %v2661_v43, 0.0  ;;  %v7843_v61 = vpop.f32.mrf.mxu3  ;;  %v4617_v29 = vld [vmem:[%s9411_s2 + $0x128] sm:$0xf0] }
 0x3db   :  { %v7790_v56 = vpack.c.bf16 %v2884_v41, %v2883_v1  ;;  %v3035_v39 = vpack.c.bf16 %v2876_v22, %v2875_v3  ;;  %v113_v41 = vld [vmem:[%s9410_s0 + $0x310] sm:$0xff]  ;;  %v9674_v1 = vld [vmem:[#allocation74_spill] sm:$0xff]  ;;  %v2660_v0 = vadd.f32 %v7474_v24, %v1600_v33  ;;  %v4892_v21 = vor.u32 %v5040_v28, %v4889_v57  ;;  %v9677_v33 = vld [vmem:[#allocation71_spill] sm:$0xff] }
 0x3dc   :  { %2300 = vperm.xlu1 %5076, %v5234_v58   ;;  %2288 = vperm.xlu2 %5074, %v5235_v47   ;;  %v1597_v23 = vmul.f32 %v9675_v62, %v113_v41  ;;  %v2871_v22 = vmax.f32 %v2659_v38, 0.0  ;;  %v5237_v24 = vld [vmem:[%s9409_s1 + $0x570] sm:$0xff]  ;;  %v5238_v58 = vld [vmem:[%s9409_s1 + $0x578] sm:$0xff]  ;;  %v111_v47 = vld [vmem:[%s9410_s0 + $0x300] sm:$0xff]  ;;  %v4620_v57 = vor.u32 %v4971_v25, %v4617_v29 }
 0x3dd   :  { %2292 = vperm.xlu0 %5075, %v5236_v32   ;;  %4036 = vmatmul.bf16.gmra.mxu1 %v4564_v42  ;;  %v1598_v42 = vmul.f32 %v9674_v1, %v114_v17  ;;  %v9676_v32 = vld [vmem:[#allocation70_spill] sm:$0xff]  ;;  %v2872_v3 = vmax.f32 %v2660_v0, 0.0  ;;  %v5244_v25 = vld [vmem:[%s9409_s1 + $0x5e8] sm:$0xff] }
 0x3de   :  { %4074 = vmatpush.bf16.msra.mxu2 %v3036_v40  ;;  %v7810_v16 = vpop.permute.xlu1 %2172  ;;  %v7812_v59 = vpop.permute.xlu2 %2212  ;;  %v3034_v40 = vpack.c.bf16 %v2874_v44, %v2873_v13  ;;  %v1596_v53 = vmul.f32 %v9676_v32, %v112_v10  ;;  %v2657_v11 = vadd.f32 %v7444_v5, %v1597_v23  ;;  %v1595_v5 = vmul.f32 %v9677_v33, %v111_v47  ;;  %v5240_v13 = vld [vmem:[%s9409_s1 + $0x5f8] sm:$0xff]  ;;  %v5242_v10 = vld [vmem:[%s9409_s1 + $0x568] sm:$0xff]  ;;  %v5245_v33 = vld [vmem:[%s9409_s1 + $0x550] sm:$0xff] }
 0x3df   :  { %v7817_v31 = vpop.permute.xlu0 %2180  ;;  %v2658_v8 = vadd.f32 %v7569_v49, %v1598_v42  ;;  %v5239_v49 = vld [vmem:[%s9409_s1 + $0x5f0] sm:$0xff] }
 0x3e0   :  { %v7827_v15 = vpop.f32.mrf.mxu2  ;;  %v2656_v38 = vadd.f32 %v7557_v6, %v1596_v53  ;;  %v2869_v41 = vmax.f32 %v2657_v11, 0.0  ;;  %v2655_v1 = vadd.f32 %v7519_v35, %v1595_v5  ;;  %v5241_v6 = vld [vmem:[%s9409_s1 + $0x560] sm:$0xff] }
 0x3e1   :  { %v2870_v44 = vmax.f32 %v2658_v8, 0.0  ;;  %v7912_v47 = vpop.f32.mrf.mxu0 }
 0x3e2   :  { %4075 = vmatpush.bf16.msra.mxu2 %v3035_v39  ;;  %v3033_v39 = vpack.c.bf16 %v2872_v3, %v2871_v22  ;;  %v2868_v42 = vmax.f32 %v2656_v38, 0.0  ;;  %v2867_v62 = vmax.f32 %v2655_v1, 0.0  ;;  %v4511_v22 = vld [vmem:[%s9411_s2 + $0x18] sm:$0xf]  ;;  %9680 = vst [vmem:[#allocation17_spill] sm:$0xff] %v7912_v47  ;;  %v5243_v3 = vld [vmem:[%s9409_s1 + $0x5e0] sm:$0xff] }
 0x3e3   :  { %v3032_v0 = vpack.c.bf16 %v2870_v44, %v2869_v41  ;;  %v4985_v44 = vld [vmem:[%s9411_s2 + $0x164] sm:$0xf]  ;;  %v141_v41 = vld [vmem:[%s9410_s0 + $0x3f0] sm:$0xff] }
 0x3e4   :  { %2408 = vperm.xlu1 %5076, %v5237_v24   ;;  %2412 = vperm.xlu2 %5074, %v5238_v58   ;;  %v5020_v58 = vld [vmem:[%s9411_s2 + $0x274] sm:$0xf0] }
 0x3e5   :  { %2472 = vperm.xlu0 %5075, %v5239_v49   ;;  %v3031_v49 = vpack.c.bf16 %v2868_v42, %v2867_v62  ;;  %v143_v42 = vld [vmem:[%s9410_s0 + $0x400] sm:$0xff]  ;;  %v9683_v62 = vld [vmem:[#allocation101_spill] sm:$0xff] }
 0x3e6   :  { %4076 = vmatpush.bf16.msra.mxu2 %v3034_v40  ;;  %v7863_v43 = vpop.permute.xlu1 %2184  ;;  %v7865_v17 = vpop.permute.xlu2 %2224  ;;  %4002 = vmatmul.bf16.gmra.mxu0 %v4728_v18  ;;  %v4951_v40 = vld [vmem:[%s9411_s2 + $0x4c] sm:$0xf0] }
 0x3e7   :  { %v7873_v63 = vpop.permute.xlu0 %2192  ;;  %3968 = vmatmul.bf16.gmra.mxu3 %v4892_v21  ;;  %v3836_v18 = vpop.f32.mrf.mxu1  ;;  %v4512_v32 = vor.u32 %v4951_v40, %v4511_v22  ;;  %v1625_v22 = vmul.f32 %v9683_v62, %v141_v41  ;;  %v144_v40 = vld [vmem:[%s9410_s0 + $0x408] sm:$0xff] }
 0x3e8   :  { %v7877_v28 = vpop.f32.mrf.mxu2  ;;  %v7890_v35 = vadd.f32 %v3836_v18, %v7737_v2  ;;  %v7892_v21 = vpop.f32.mrf.mxu3  ;;  %v4783_v2 = vld [vmem:[%s9411_s2 + $0x240] sm:$0xf]  ;;  %v142_v18 = vld [vmem:[%s9410_s0 + $0x3f8] sm:$0xff] }
 0x3e9   :  { %9678 = vst [vmem:[#allocation6_spill] sm:$0xff] %v7877_v28  ;;  %v4784_v11 = vor.u32 %v5020_v58, %v4783_v2  ;;  %v9684_v2 = vld [vmem:[#allocation90_spill] sm:$0xff] }
 0x3ea   :  { %4077 = vmatpush.bf16.msra.mxu2 %v3033_v39  ;;  %9679 = vst [vmem:[#allocation16_spill] sm:$0xff] %v7892_v21  ;;  %v4673_v39 = vld [vmem:[%s9411_s2 + $0x198] sm:$0xf0]  ;;  %v1627_v58 = vmul.f32 %v9684_v2, %v143_v42 }
 0x3eb   :  { %v9686_v42 = vld [vmem:[#allocation97_spill] sm:$0xff] }
 0x3ec   :  { %2476 = vperm.xlu1 %5076, %v5240_v13   ;;  %2400 = vperm.xlu2 %5074, %v5241_v6   ;;  %v7945_v6 = vpop.f32.mrf.mxu0  ;;  %v138_v2 = vld [vmem:[%s9410_s0 + $0x3d8] sm:$0xff] }
 0x3ed   :  { %2404 = vperm.xlu0 %5075, %v5242_v10   ;;  %4041 = vmatmul.bf16.gmra.mxu1 %v4620_v57  ;;  %v139_v10 = vld [vmem:[%s9410_s0 + $0x3e0] sm:$0xff] }
 0x3ee   :  { %4078 = vmatpush.bf16.msra.mxu2 %v3032_v0  ;;  %v7894_v23 = vpop.permute.xlu1 %2196  ;;  %v7896_v8 = vpop.permute.xlu2 %2236  ;;  %v4676_v0 = vor.u32 %v4985_v44, %v4673_v39  ;;  %v5248_v39 = vld [vmem:[%s9409_s1 + $0x5d8] sm:$0xff]  ;;  %v1623_v62 = vmul.f32 %v9686_v42, %v139_v10 }
 0x3ef   :  { %v7904_v24 = vpop.permute.xlu0 %2204  ;;  %v7922_v29 = vpop.f32.mrf.mxu1 }
 0x3f0   :  { %v7914_v53 = vpop.f32.mrf.mxu2  ;;  %9681 = vst [vmem:[#allocation13_spill] sm:$0xff] %v7922_v29 }
 0x3f2   :  { %4079 = vmatpush.bf16.msra.mxu2 %v3031_v49  ;;  %v5246_v49 = vld [vmem:[%s9409_s1 + $0x558] sm:$0xff] }
 0x3f4   :  { %2464 = vperm.xlu1 %5076, %v5243_v3   ;;  %2468 = vperm.xlu2 %5074, %v5244_v25   ;;  %v140_v3 = vld [vmem:[%s9410_s0 + $0x3e8] sm:$0xff]  ;;  %v9685_v25 = vld [vmem:[#allocation100_spill] sm:$0xff] }
 0x3f5   :  { %2392 = vperm.xlu0 %5075, %v5245_v33   ;;  %4080 = vmatmul.bf16.vlgmr.msra.gmra.mxu2 %v4512_v32  ;;  %v5247_v32 = vld [vmem:[%s9409_s1 + $0x5d0] sm:$0xff]  ;;  %v1626_v33 = vmul.f32 %v9685_v25, %v142_v18  ;;  %v2687_v18 = vadd.f32 %v7865_v17, %v1627_v58  ;;  %v5034_v17 = vld [vmem:[%s9411_s2 + $0x2e4] sm:$0xf0] }
 0x3f6   :  { %v2209_v5 = vpop.permute.xlu1 %2208  ;;  %v7927_v38 = vpop.permute.xlu2 %2248  ;;  %4007 = vmatmul.bf16.gmra.mxu0 %v4784_v11  ;;  %v4839_v25 = vld [vmem:[%s9411_s2 + $0x2b0] sm:$0xf] }
 0x3f7   :  { %v2217_v57 = vpop.permute.xlu0 %2216  ;;  %v3841_v11 = vpop.f32.mrf.mxu1  ;;  %v2899_v21 = vmax.f32 %v2687_v18, 0.0  ;;  %v5250_v18 = vld [vmem:[%s9409_s1 + $0x678] sm:$0xff] }
 0x3f8   :  { %v7938_v1 = vpop.f32.mrf.mxu3  ;;  %v7943_v13 = vpop.f32.mrf.mxu2  ;;  %v2685_v44 = vadd.f32 %v2217_v57, %v1625_v22  ;;  %v7972_v41 = vadd.f32 %v3841_v11, %v7859_v34  ;;  %v4965_v34 = vld [vmem:[%s9411_s2 + $0xbc] sm:$0xf0] }
 0x3f9   :  { %9682 = vst [vmem:[#allocation5_spill] sm:$0xff] %v7943_v13  ;;  %v137_v13 = vld [vmem:[%s9410_s0 + $0x3d0] sm:$0xff] }
 0x3fa   :  { %v2897_v28 = vmax.f32 %v2685_v44, 0.0 }
 0x3fc   :  { %2396 = vperm.xlu1 %5076, %v5246_v49   ;;  %2456 = vperm.xlu2 %5074, %v5247_v32   ;;  %v9687_v49 = vld [vmem:[#allocation104_spill] sm:$0xff] }
 0x3fd   :  { %2460 = vperm.xlu0 %5075, %v5248_v39   ;;  %4046 = vmatmul.bf16.gmra.mxu1 %v4676_v0  ;;  %v1628_v32 = vmul.f32 %v9687_v49, %v144_v40  ;;  %v4567_v0 = vld [vmem:[%s9411_s2 + $0x88] sm:$0xf]  ;;  %v2683_v39 = vadd.f32 %v2209_v5, %v1623_v62 }
 0x3fe   :  { %v2221_v57 = vpop.permute.xlu1 %2220  ;;  %v7980_v22 = vpop.permute.xlu2 %2280  ;;  %v9688_v40 = vld [vmem:[#allocation87_spill] sm:$0xff]  ;;  %v4568_v14 = vor.u32 %v4965_v34, %v4567_v0 }
 0x3ff   :  { %v2686_v10 = vadd.f32 %v2221_v57, %v1626_v33  ;;  %v2229_v11 = vpop.permute.xlu0 %2228  ;;  %v1624_v58 = vmul.f32 %v9688_v40, %v140_v3  ;;  %v9689_v33 = vld [vmem:[#allocation98_spill] sm:$0xff]  ;;  %v4840_v3 = vor.u32 %v5034_v17, %v4839_v25  ;;  %v136_v5 = vld [vmem:[%s9410_s0 + $0x3c8] sm:$0xff]  ;;  %v4999_v17 = vld [vmem:[%s9411_s2 + $0x1d4] sm:$0xf] }
 0x400   :  { %v2688_v42 = vadd.f32 %v2229_v11, %v1628_v32  ;;  %v7995_v49 = vpop.f32.mrf.mxu3  ;;  %v1622_v57 = vmul.f32 %v9689_v33, %v138_v2  ;;  %v8001_v29 = vpop.f32.mrf.mxu2  ;;  %v9691_v11 = vld [vmem:[#allocation84_spill] sm:$0xff]  ;;  %v2895_v2 = vmax.f32 %v2683_v39, 0.0 }
 0x401   :  { %v2898_v47 = vmax.f32 %v2686_v10, 0.0  ;;  %v2684_v26 = vadd.f32 %v7812_v59, %v1624_v58  ;;  %v8007_v32 = vpop.f32.mrf.mxu0  ;;  %v1621_v40 = vmul.f32 %v9691_v11, %v137_v13  ;;  %v5249_v59 = vld [vmem:[%s9409_s1 + $0x670] sm:$0xff]  ;;  %v4729_v58 = vld [vmem:[%s9411_s2 + $0x208] sm:$0xf0] }
 0x402   :  { %v2900_v9 = vmax.f32 %v2688_v42, 0.0  ;;  %9690 = vst [vmem:[#allocation14_spill] sm:$0xff] %v8007_v32  ;;  %v2682_v44 = vadd.f32 %v7904_v24, %v1622_v57 }
 0x403   :  { %v3046_v62 = vpack.c.bf16 %v2898_v47, %v2897_v28  ;;  %v8019_v28 = vpop.f32.mrf.mxu1  ;;  %v135_v47 = vld [vmem:[%s9410_s0 + $0x3c0] sm:$0xff]  ;;  %v2681_v13 = vadd.f32 %v7763_v46, %v1621_v40  ;;  %v2896_v34 = vmax.f32 %v2684_v26, 0.0  ;;  %v9693_v26 = vld [vmem:[#allocation95_spill] sm:$0xff] }
 0x404   :  { %v8011_v0 = vpack.c.bf16 %v2900_v9, %v2899_v21  ;;  %2536 = vperm.xlu1 %5076, %v5249_v59   ;;  %2540 = vperm.xlu2 %5074, %v5250_v18   ;;  %v5251_v9 = vld [vmem:[%s9409_s1 + $0x540] sm:$0xff]  ;;  %v1619_v39 = vmul.f32 %v9693_v26, %v135_v47  ;;  %v2894_v33 = vmax.f32 %v2682_v44, 0.0  ;;  %v9695_v59 = vld [vmem:[#allocation91_spill] sm:$0xff]  ;;  %v9697_v26 = vld [vmem:[#allocation92_spill] sm:$0xff] }
 0x405   :  { %2384 = vperm.xlu0 %5075, %v5251_v9   ;;  %4085 = vmatmul.bf16.gmra.mxu2 %v4568_v14  ;;  %v9692_v21 = vld [vmem:[#allocation94_spill] sm:$0xff]  ;;  %v133_v14 = vld [vmem:[%s9410_s0 + $0x3b0] sm:$0xff]  ;;  %v3045_v57 = vpack.c.bf16 %v2896_v34, %v2895_v2  ;;  %v2893_v9 = vmax.f32 %v2681_v13, 0.0  ;;  %v9696_v2 = vld [vmem:[#allocation81_spill] sm:$0xff] }
 0x406   :  { %v1620_v24 = vmul.f32 %v9692_v21, %v136_v5  ;;  %4121 = vmatpush.bf16.msra.mxu3 %v3046_v62  ;;  %v8029_v10 = vpop.permute.xlu1 %2232  ;;  %v8031_v25 = vpop.permute.xlu2 %2348  ;;  %4012 = vmatmul.bf16.gmra.mxu0 %v4840_v3  ;;  %v134_v5 = vld [vmem:[%s9410_s0 + $0x3b8] sm:$0xff]  ;;  %v4732_v62 = vor.u32 %v4999_v17, %v4729_v58  ;;  %v3886_v3 = vadd.f32 %v7725_v48, %v7890_v35  ;;  %v5252_v13 = vld [vmem:[%s9409_s1 + $0x548] sm:$0xff] }
 0x407   :  { %v8042_v46 = vpop.permute.xlu0 %2240  ;;  %v1617_v18 = vmul.f32 %v9695_v59, %v133_v14  ;;  %v2679_v47 = vadd.f32 %v7873_v63, %v1619_v39  ;;  %v1618_v21 = vmul.f32 %v9696_v2, %v134_v5  ;;  %v5253_v63 = vld [vmem:[%s9409_s1 + $0x5c0] sm:$0xff]  ;;  %v130_v14 = vld [vmem:[%s9410_s0 + $0x398] sm:$0xff] }
 0x408   :  { %v2680_v42 = vadd.f32 %v7894_v23, %v1620_v24  ;;  %v8051_v11 = vpop.f32.mrf.mxu2  ;;  %v132_v23 = vld [vmem:[%s9410_s0 + $0x3a8] sm:$0xff]  ;;  %v8061_v44 = vadd.f32 %v7938_v1, %v3886_v3  ;;  %v3044_v24 = vpack.c.bf16 %v2894_v33, %v2893_v9  ;;  %v131_v1 = vld [vmem:[%s9410_s0 + $0x3a0] sm:$0xff]  ;;  %v4979_v3 = vld [vmem:[%s9411_s2 + $0x12c] sm:$0xf0] }
 0x409   :  { %9694 = vst [vmem:[#allocation4_spill] sm:$0xff] %v8051_v11  ;;  %v8053_v40 = vpop.f32.mrf.mxu3  ;;  %v2677_v48 = vadd.f32 %v7863_v43, %v1617_v18  ;;  %v5254_v43 = vld [vmem:[%s9409_s1 + $0x5c8] sm:$0xff]  ;;  %v8080_v58 = vpop.f32.mrf.mxu0  ;;  %v1616_v39 = vmul.f32 %v9697_v26, %v132_v23  ;;  %v2891_v33 = vmax.f32 %v2679_v47, 0.0  ;;  %v129_v9 = vld [vmem:[%s9410_s0 + $0x390] sm:$0xff] }
 0x40a   :  { %4122 = vmatpush.bf16.msra.mxu3 %v3045_v57  ;;  %v2892_v35 = vmax.f32 %v2680_v42, 0.0  ;;  %v2678_v42 = vadd.f32 %v7711_v20, %v1618_v21  ;;  %v3857_v57 = vadd.f32 %v7532_v12, %v7322_v52  ;;  %v4895_v20 = vld [vmem:[%s9411_s2 + $0x320] sm:$0xf]  ;;  %v5048_v52 = vld [vmem:[%s9411_s2 + $0x354] sm:$0xf0]  ;;  %v9699_v21 = vld [vmem:[#allocation88_spill] sm:$0xff] }
 0x40b   :  { %v3846_v34 = vpop.f32.mrf.mxu1  ;;  %v9698_v12 = vld [vmem:[#allocation78_spill] sm:$0xff]  ;;  %v2676_v47 = vadd.f32 %v7817_v31, %v1616_v39  ;;  %v2889_v23 = vmax.f32 %v2677_v48, 0.0  ;;  %v4896_v11 = vor.u32 %v5048_v52, %v4895_v20  ;;  %v9700_v31 = vld [vmem:[#allocation89_spill] sm:$0xff]  ;;  %v5257_v20 = vld [vmem:[%s9409_s1 + $0x530] sm:$0xff] }
 0x40c   :  { %2388 = vperm.xlu1 %5076, %v5252_v13   ;;  %2448 = vperm.xlu2 %5074, %v5253_v63   ;;  %v8078_v17 = vadd.f32 %v3846_v34, %v7945_v6  ;;  %v4623_v6 = vld [vmem:[%s9411_s2 + $0xf8] sm:$0xf]  ;;  %v1615_v18 = vmul.f32 %v9698_v12, %v131_v1  ;;  %v3043_v2 = vpack.c.bf16 %v2892_v35, %v2891_v33  ;;  %v157_v13 = vld [vmem:[%s9410_s0 + $0x470] sm:$0xff]  ;;  %v2890_v26 = vmax.f32 %v2678_v42, 0.0  ;;  %v5256_v42 = vld [vmem:[%s9409_s1 + $0x668] sm:$0xff] }
 0x40d   :  { %2452 = vperm.xlu0 %5075, %v5254_v43   ;;  %4051 = vmatmul.bf16.gmra.mxu1 %v4732_v62  ;;  %v4624_v63 = vor.u32 %v4979_v3, %v4623_v6  ;;  %v1613_v48 = vmul.f32 %v9700_v31, %v129_v9  ;;  %v158_v35 = vld [vmem:[%s9410_s0 + $0x478] sm:$0xff]  ;;  %v2888_v6 = vmax.f32 %v2676_v47, 0.0  ;;  %v3891_v31 = vadd.f32 %v7827_v15, %v7972_v41  ;;  %v5259_v41 = vld [vmem:[%s9409_s1 + $0x5b0] sm:$0xff] }
 0x40e   :  { %4123 = vmatpush.bf16.msra.mxu3 %v3044_v24  ;;  %v8089_v5 = vpop.permute.xlu1 %2244  ;;  %v8091_v62 = vpop.permute.xlu2 %2336  ;;  %v1614_v24 = vmul.f32 %v9699_v21, %v130_v14  ;;  %v2675_v1 = vadd.f32 %v7674_v27, %v1615_v18  ;;  %v9701_v14 = vld [vmem:[#allocation115_spill] sm:$0xff]  ;;  %v3042_v3 = vpack.c.bf16 %v2890_v26, %v2889_v23  ;;  %v5255_v27 = vld [vmem:[%s9409_s1 + $0x660] sm:$0xff]  ;;  %v5258_v15 = vld [vmem:[%s9409_s1 + $0x538] sm:$0xff] }
 0x40f   :  { %v8099_v59 = vpop.permute.xlu0 %2252  ;;  %v1641_v39 = vmul.f32 %v9701_v14, %v157_v13  ;;  %v2673_v9 = vadd.f32 %v7774_v45, %v1613_v48  ;;  %v5013_v21 = vld [vmem:[%s9411_s2 + $0x244] sm:$0xf]  ;;  %v174_v45 = vld [vmem:[%s9410_s0 + $0x4f8] sm:$0xff] }
 0x410   :  { %v2674_v33 = vadd.f32 %v7810_v16, %v1614_v24  ;;  %v9703_v16 = vld [vmem:[#allocation105_spill] sm:$0xff]  ;;  %v2887_v18 = vmax.f32 %v2675_v1, 0.0 }
 0x411   :  { %v3905_v34 = vpop.f32.mrf.mxu2  ;;  %v8116_v43 = vpop.f32.mrf.mxu3  ;;  %v1642_v52 = vmul.f32 %v9703_v16, %v158_v35  ;;  %v2701_v47 = vadd.f32 %v7980_v22, %v1641_v39  ;;  %v4785_v24 = vld [vmem:[%s9411_s2 + $0x278] sm:$0xf0]  ;;  %v2885_v14 = vmax.f32 %v2673_v9, 0.0 }
 0x412   :  { %4124 = vmatpush.bf16.msra.mxu3 %v3043_v2  ;;  %v8119_v12 = vadd.f32 %v3905_v34, %v3857_v57  ;;  %v2886_v22 = vmax.f32 %v2674_v33, 0.0  ;;  %v8154_v1 = vpop.f32.mrf.mxu0  ;;  %v4788_v26 = vor.u32 %v5013_v21, %v4785_v24  ;;  %v9705_v33 = vld [vmem:[#allocation134_spill] sm:$0xff]  ;;  %v3862_v21 = vadd.f32 %v7631_v36, %v7426_v37  ;;  %v4513_v37 = vld [vmem:[%s9411_s2 + $0x50] sm:$0xf0] }
 0x413   :  { %v8133_v57 = vpop.f32.mrf.mxu1  ;;  %9704 = vst [vmem:[#allocation11_spill] sm:$0xff] %v8154_v1  ;;  %v2913_v39 = vmax.f32 %v2701_v47, 0.0  ;;  %v155_v36 = vld [vmem:[%s9410_s0 + $0x460] sm:$0xff] }
 0x414   :  { %2528 = vperm.xlu1 %5076, %v5255_v27   ;;  %2532 = vperm.xlu2 %5074, %v5256_v42   ;;  %9702 = vst [vmem:[#allocation10_spill] sm:$0xff] %v8133_v57  ;;  %v8167_v27 = vadd.f32 %v8053_v40, %v3891_v31  ;;  %v3040_v42 = vpack.c.bf16 %v2886_v22, %v2885_v14  ;;  %v5260_v40 = vld [vmem:[%s9409_s1 + $0x5b8] sm:$0xff]  ;;  %v5043_v57 = vld [vmem:[%s9411_s2 + $0x334] sm:$0xf] }
 0x415   :  { %2376 = vperm.xlu0 %5075, %v5257_v20   ;;  %4090 = vmatmul.bf16.gmra.mxu2 %v4624_v63  ;;  %v3041_v63 = vpack.c.bf16 %v2888_v6, %v2887_v18  ;;  %v1658_v6 = vmul.f32 %v9705_v33, %v174_v45  ;;  %v4993_v45 = vld [vmem:[%s9411_s2 + $0x19c] sm:$0xf0] }
 0x416   :  { %4125 = vmatpush.bf16.msra.mxu3 %v3042_v3  ;;  %v8141_v23 = vpop.permute.xlu1 %2256  ;;  %v8143_v2 = vpop.permute.xlu2 %2268  ;;  %4017 = vmatmul.bf16.gmra.mxu0 %v4896_v11  ;;  %v173_v11 = vld [vmem:[%s9410_s0 + $0x4f0] sm:$0xff] }
 0x417   :  { %v2285_v13 = vpop.permute.xlu0 %2284  ;;  %v2718_v9 = vadd.f32 %v8031_v25, %v1658_v6  ;;  %v4679_v25 = vld [vmem:[%s9411_s2 + $0x168] sm:$0xf] }
 0x418   :  { %v2702_v34 = vadd.f32 %v2285_v13, %v1642_v52  ;;  %v9706_v52 = vld [vmem:[#allocation120_spill] sm:$0xff] }
 0x419   :  { %v8158_v48 = vpop.f32.mrf.mxu2  ;;  %v8160_v35 = vpop.f32.mrf.mxu3  ;;  %v1657_v18 = vmul.f32 %v9706_v52, %v173_v11  ;;  %v4680_v11 = vor.u32 %v4993_v45, %v4679_v25  ;;  %v9711_v45 = vld [vmem:[#allocation130_spill] sm:$0xff] }
 0x41a   :  { %v2914_v3 = vmax.f32 %v2702_v34, 0.0  ;;  %4126 = vmatpush.bf16.msra.mxu3 %v3041_v63  ;;  %v171_v34 = vld [vmem:[%s9410_s0 + $0x4e0] sm:$0xff] }
 0x41b   :  { %v3851_v16 = vpop.f32.mrf.mxu1 }
 0x41c   :  { %v3054_v20 = vpack.c.bf16 %v2914_v3, %v2913_v39  ;;  %2380 = vperm.xlu1 %5076, %v5258_v15   ;;  %2440 = vperm.xlu2 %5074, %v5259_v41   ;;  %v8181_v47 = vadd.f32 %v3851_v16, %v8080_v58  ;;  %v4944_v58 = vld [vmem:[%s9411_s2 + $0x1c] sm:$0xf]  ;;  %v156_v3 = vld [vmem:[%s9410_s0 + $0x468] sm:$0xff] }
 0x41d   :  { %2444 = vperm.xlu0 %5075, %v5260_v40   ;;  %4056 = vmatmul.bf16.gmra.mxu1 %v4788_v26  ;;  %v2930_v26 = vmax.f32 %v2718_v9, 0.0  ;;  %v4516_v33 = vor.u32 %v4944_v58, %v4513_v37  ;;  %v172_v41 = vld [vmem:[%s9410_s0 + $0x4e8] sm:$0xff]  ;;  %v5262_v40 = vld [vmem:[%s9409_s1 + $0x658] sm:$0xff] }
 0x41e   :  { %4127 = vmatpush.bf16.msra.mxu3 %v3040_v42  ;;  %4170 = vmatpush.bf16.msra.mxu0 %v3054_v20  ;;  %v2345_v24 = vpop.permute.xlu1 %2344  ;;  %v8185_v13 = vpop.permute.xlu2 %2260  ;;  %v9708_v20 = vld [vmem:[#allocation102_spill] sm:$0xff] }
 0x41f   :  { %v2717_v22 = vadd.f32 %v2345_v24, %v1657_v18  ;;  %v2273_v63 = vpop.permute.xlu0 %2272  ;;  %v1639_v15 = vmul.f32 %v9708_v20, %v155_v36  ;;  %v9709_v18 = vld [vmem:[#allocation131_spill] sm:$0xff] }
 0x420   :  { %v1655_v9 = vmul.f32 %v9709_v18, %v171_v34 }
 0x421   :  { %v2929_v31 = vmax.f32 %v2717_v22, 0.0  ;;  %v3910_v14 = vpop.f32.mrf.mxu2  ;;  %v8205_v39 = vpop.f32.mrf.mxu3  ;;  %v2699_v25 = vadd.f32 %v2273_v63, %v1639_v15  ;;  %v1656_v22 = vmul.f32 %v9711_v45, %v172_v41  ;;  %v154_v63 = vld [vmem:[%s9410_s0 + $0x458] sm:$0xff]  ;;  %v153_v15 = vld [vmem:[%s9410_s0 + $0x450] sm:$0xff]  ;;  %v151_v45 = vld [vmem:[%s9410_s0 + $0x440] sm:$0xff] }
 0x422   :  { %9707 = vst [vmem:[#allocation7_spill] sm:$0xff] %v8205_v39  ;;  %4128 = vmatpush.bf16.msra.mxu3 %v7790_v56  ;;  %v8211_v6 = vadd.f32 %v3910_v14, %v3862_v21  ;;  %v3983_v42 = vpop.f32.mrf.mxu0  ;;  %v5261_v56 = vld [vmem:[%s9409_s1 + $0x650] sm:$0xff]  ;;  %v2715_v58 = vadd.f32 %v8091_v62, %v1655_v9  ;;  %v4841_v62 = vld [vmem:[%s9411_s2 + $0x2e8] sm:$0xf0] }
 0x423   :  { %v3062_v16 = vpack.c.bf16 %v2930_v26, %v2929_v31  ;;  %v8218_v52 = vadd.f32 %v3983_v42, %v8061_v44  ;;  %v9710_v21 = vld [vmem:[#allocation116_spill] sm:$0xff]  ;;  %v5263_v44 = vld [vmem:[%s9409_s1 + $0x520] sm:$0xff]  ;;  %v2911_v14 = vmax.f32 %v2699_v25, 0.0  ;;  %v152_v9 = vld [vmem:[%s9410_s0 + $0x448] sm:$0xff] }
 0x424   :  { %2520 = vperm.xlu1 %5076, %v5261_v56   ;;  %2524 = vperm.xlu2 %5074, %v5262_v40   ;;  %v1640_v24 = vmul.f32 %v9710_v21, %v156_v3  ;;  %v2927_v41 = vmax.f32 %v2715_v58, 0.0  ;;  %v9712_v56 = vld [vmem:[#allocation112_spill] sm:$0xff]  ;;  %v5264_v25 = vld [vmem:[%s9409_s1 + $0x528] sm:$0xff] }
 0x425   :  { %2368 = vperm.xlu0 %5075, %v5263_v44   ;;  %4095 = vmatmul.bf16.gmra.mxu2 %v4680_v11  ;;  %v5027_v11 = vld [vmem:[%s9411_s2 + $0x2b4] sm:$0xf]  ;;  %v1638_v40 = vmul.f32 %v9712_v56, %v154_v63  ;;  %v5265_v44 = vld [vmem:[%s9409_s1 + $0x5a0] sm:$0xff]  ;;  %v3867_v63 = vadd.f32 %v7719_v19, %v7527_v30  ;;  %v4958_v30 = vld [vmem:[%s9411_s2 + $0x8c] sm:$0xf] }
 0x426   :  { %4129 = vmatmul.bf16.vlgmr.msra.gmra.mxu3 %v4516_v33  ;;  %4219 = vmatpush.bf16.msra.mxu1 %v3062_v16  ;;  %v2277_v37 = vpop.permute.xlu1 %2276  ;;  %v8233_v36 = vpop.permute.xlu2 %2312  ;;  %v3896_v33 = vadd.f32 %v7914_v53, %v8078_v17  ;;  %v4844_v53 = vor.u32 %v5027_v11, %v4841_v62  ;;  %v4735_v62 = vld [vmem:[%s9411_s2 + $0x1d8] sm:$0xf]  ;;  %v4569_v19 = vld [vmem:[%s9411_s2 + $0xc0] sm:$0xf0]  ;;  %v149_v56 = vld [vmem:[%s9410_s0 + $0x430] sm:$0xff] }
 0x427   :  { %v2700_v34 = vadd.f32 %v2277_v37, %v1640_v24  ;;  %v2341_v26 = vpop.permute.xlu0 %2340  ;;  %v5266_v37 = vld [vmem:[%s9409_s1 + $0x5a8] sm:$0xff] }
 0x428   :  { %v2716_v31 = vadd.f32 %v2341_v26, %v1656_v22  ;;  %v8260_v17 = vadd.f32 %v8160_v35, %v3896_v33  ;;  %v9713_v22 = vld [vmem:[#allocation113_spill] sm:$0xff]  ;;  %v2698_v35 = vadd.f32 %v8143_v2, %v1638_v40  ;;  %v5007_v2 = vld [vmem:[%s9411_s2 + $0x20c] sm:$0xf0] }
 0x429   :  { %v2912_v3 = vmax.f32 %v2700_v34, 0.0  ;;  %v8246_v42 = vpop.f32.mrf.mxu2  ;;  %v8248_v20 = vpop.f32.mrf.mxu3  ;;  %v1637_v58 = vmul.f32 %v9713_v22, %v153_v15  ;;  %v9714_v34 = vld [vmem:[#allocation99_spill] sm:$0xff]  ;;  %v9715_v15 = vld [vmem:[#allocation109_spill] sm:$0xff] }
 0x42a   :  { %v2928_v16 = vmax.f32 %v2716_v31, 0.0  ;;  %v8253_v18 = vpop.f32.mrf.mxu0  ;;  %v1636_v26 = vmul.f32 %v9714_v34, %v152_v9  ;;  %v2910_v40 = vmax.f32 %v2698_v35, 0.0  ;;  %v148_v35 = vld [vmem:[%s9410_s0 + $0x428] sm:$0xff] }
 0x42b   :  { %v3053_v21 = vpack.c.bf16 %v2912_v3, %v2911_v14  ;;  %v150_v14 = vld [vmem:[%s9410_s0 + $0x438] sm:$0xff]  ;;  %v9718_v34 = vld [vmem:[#allocation127_spill] sm:$0xff] }
 0x42c   :  { %v3061_v24 = vpack.c.bf16 %v2928_v16, %v2927_v41  ;;  %2372 = vperm.xlu1 %5076, %v5264_v25   ;;  %2432 = vperm.xlu2 %5074, %v5265_v44   ;;  %v1635_v41 = vmul.f32 %v9715_v15, %v151_v45  ;;  %v169_v16 = vld [vmem:[%s9410_s0 + $0x4d0] sm:$0xff]  ;;  %v2696_v9 = vadd.f32 %v8185_v13, %v1636_v26  ;;  %v9717_v44 = vld [vmem:[#allocation110_spill] sm:$0xff]  ;;  %v170_v45 = vld [vmem:[%s9410_s0 + $0x4d8] sm:$0xff] }
 0x42d   :  { %2436 = vperm.xlu0 %5075, %v5266_v37   ;;  %4171 = vmatpush.bf16.msra.mxu0 %v3053_v21  ;;  %v1634_v22 = vmul.f32 %v9717_v44, %v150_v14  ;;  %v4572_v37 = vor.u32 %v4958_v30, %v4569_v19  ;;  %v1653_v26 = vmul.f32 %v9718_v34, %v169_v16  ;;  %v147_v19 = vld [vmem:[%s9410_s0 + $0x420] sm:$0xff]  ;;  %v9722_v34 = vld [vmem:[#allocation107_spill] sm:$0xff] }
 0x42e   :  { %4220 = vmatpush.bf16.msra.mxu1 %v3061_v24  ;;  %v2265_v31 = vpop.permute.xlu1 %2264  ;;  %v8279_v11 = vpop.permute.xlu2 %2308  ;;  %v2908_v15 = vmax.f32 %v2696_v9, 0.0  ;;  %v5269_v9 = vld [vmem:[%s9409_s1 + $0x510] sm:$0xff] }
 0x42f   :  { %v2697_v3 = vadd.f32 %v2265_v31, %v1637_v58  ;;  %v2329_v33 = vpop.permute.xlu0 %2328  ;;  %4061 = vmatmul.bf16.gmra.mxu1 %v4844_v53  ;;  %v4736_v53 = vor.u32 %v5007_v2, %v4735_v62  ;;  %v2695_v58 = vadd.f32 %v8141_v23, %v1635_v41  ;;  %v9719_v2 = vld [vmem:[#allocation96_spill] sm:$0xff]  ;;  %v2694_v14 = vadd.f32 %v8099_v59, %v1634_v22  ;;  %v5267_v23 = vld [vmem:[%s9409_s1 + $0x640] sm:$0xff]  ;;  %v9720_v41 = vld [vmem:[#allocation117_spill] sm:$0xff] }
 0x430   :  { %v1654_v59 = vmul.f32 %v9720_v41, %v170_v45  ;;  %v2713_v16 = vadd.f32 %v2329_v33, %v1653_v26  ;;  %v145_v33 = vld [vmem:[%s9410_s0 + $0x410] sm:$0xff]  ;;  %v1631_v26 = vmul.f32 %v9722_v34, %v147_v19  ;;  %v168_v19 = vld [vmem:[%s9410_s0 + $0x4c8] sm:$0xff]  ;;  %v5270_v34 = vld [vmem:[%s9409_s1 + $0x518] sm:$0xff] }
 0x431   :  { %v2909_v21 = vmax.f32 %v2697_v3, 0.0  ;;  %v3915_v24 = vpop.f32.mrf.mxu2  ;;  %v8304_v25 = vpop.f32.mrf.mxu3  ;;  %v1633_v3 = vmul.f32 %v9719_v2, %v149_v56  ;;  %v9721_v56 = vld [vmem:[#allocation106_spill] sm:$0xff] }
 0x432   :  { %9716 = vst [vmem:[#allocation3_spill] sm:$0xff] %v8304_v25  ;;  %v8311_v13 = vadd.f32 %v3915_v24, %v3867_v63  ;;  %v5268_v63 = vld [vmem:[%s9409_s1 + $0x648] sm:$0xff]  ;;  %v2907_v24 = vmax.f32 %v2695_v58, 0.0  ;;  %v2906_v58 = vmax.f32 %v2694_v14, 0.0  ;;  %v2925_v2 = vmax.f32 %v2713_v16, 0.0  ;;  %v9724_v16 = vld [vmem:[#allocation114_spill] sm:$0xff] }
 0x433   :  { %v3052_v31 = vpack.c.bf16 %v2910_v40, %v2909_v21  ;;  %v3988_v62 = vpop.f32.mrf.mxu0  ;;  %v1632_v40 = vmul.f32 %v9721_v56, %v148_v35  ;;  %v2693_v21 = vadd.f32 %v7927_v38, %v1633_v3  ;;  %v5041_v35 = vld [vmem:[%s9411_s2 + $0x324] sm:$0xf] }
 0x434   :  { %2512 = vperm.xlu1 %5076, %v5267_v23   ;;  %2516 = vperm.xlu2 %5074, %v5268_v63   ;;  %v8326_v30 = vadd.f32 %v3988_v62, %v8167_v27  ;;  %v146_v62 = vld [vmem:[%s9410_s0 + $0x418] sm:$0xff]  ;;  %v3901_v23 = vadd.f32 %v8001_v29, %v8181_v47 }
 0x435   :  { %2360 = vperm.xlu0 %5075, %v5269_v9   ;;  %4100 = vmatmul.bf16.gmra.mxu2 %v4736_v53  ;;  %v167_v53 = vld [vmem:[%s9410_s0 + $0x4c0] sm:$0xff]  ;;  %v2692_v38 = vadd.f32 %v8089_v5, %v1632_v40  ;;  %v2905_v41 = vmax.f32 %v2693_v21, 0.0  ;;  %v166_v21 = vld [vmem:[%s9410_s0 + $0x4b8] sm:$0xff] }
 0x436   :  { %4134 = vmatmul.bf16.gmra.mxu3 %v4572_v37  ;;  %4172 = vmatpush.bf16.msra.mxu0 %v3052_v31  ;;  %v2333_v27 = vpop.permute.xlu1 %2332  ;;  %v8337_v44 = vpop.permute.xlu2 %2288  ;;  %v3051_v37 = vpack.c.bf16 %v2908_v15, %v2907_v24  ;;  %v4897_v31 = vld [vmem:[%s9411_s2 + $0x358] sm:$0xf0]  ;;  %v9723_v15 = vld [vmem:[#allocation103_spill] sm:$0xff]  ;;  %v1651_v56 = vmul.f32 %v9724_v16, %v167_v53  ;;  %v8370_v47 = vadd.f32 %v8248_v20, %v3901_v23  ;;  %v5271_v20 = vld [vmem:[%s9409_s1 + $0x590] sm:$0xff] }
 0x437   :  { %v2714_v22 = vadd.f32 %v2333_v27, %v1654_v59  ;;  %v2321_v45 = vpop.permute.xlu0 %2320  ;;  %v1629_v63 = vmul.f32 %v9723_v15, %v145_v33  ;;  %v2691_v59 = vadd.f32 %v8042_v46, %v1631_v26  ;;  %v4900_v29 = vor.u32 %v5041_v35, %v4897_v31  ;;  %v9726_v27 = vld [vmem:[#allocation93_spill] sm:$0xff]  ;;  %v165_v26 = vld [vmem:[%s9410_s0 + $0x4b0] sm:$0xff] }
 0x438   :  { %v1630_v33 = vmul.f32 %v9726_v27, %v146_v62  ;;  %v9727_v53 = vld [vmem:[#allocation128_spill] sm:$0xff]  ;;  %v2711_v35 = vadd.f32 %v2321_v45, %v1651_v56  ;;  %v3872_v31 = vadd.f32 %v7843_v61, %v7629_v4  ;;  %v4791_v45 = vld [vmem:[%s9411_s2 + $0x248] sm:$0xf]  ;;  %v4972_v4 = vld [vmem:[%s9411_s2 + $0xfc] sm:$0xf]  ;;  %v8414_v56 = vpop.f32.mrf.mxu1 }
 0x439   :  { %v2926_v3 = vmax.f32 %v2714_v22, 0.0  ;;  %v8358_v5 = vpop.f32.mrf.mxu2  ;;  %v3954_v14 = vpop.f32.mrf.mxu3  ;;  %v2689_v46 = vadd.f32 %v8029_v10, %v1629_v63  ;;  %v2904_v22 = vmax.f32 %v2692_v38, 0.0  ;;  %v5272_v10 = vld [vmem:[%s9409_s1 + $0x598] sm:$0xff]  ;;  %v9728_v23 = vld [vmem:[#allocation124_spill] sm:$0xff]  ;;  %v164_v63 = vld [vmem:[%s9410_s0 + $0x4a8] sm:$0xff]  ;;  %9730 = vst [vmem:[#allocation2_spill] sm:$0xff] %v8414_v56 }
 0x43a   :  { %4173 = vmatpush.bf16.msra.mxu0 %v3051_v37  ;;  %v8366_v9 = vadd.f32 %v3954_v14, %v8119_v12  ;;  %v3050_v12 = vpack.c.bf16 %v2906_v58, %v2905_v41  ;;  %v1652_v37 = vmul.f32 %v9727_v53, %v168_v19  ;;  %v2690_v38 = vadd.f32 %v7896_v8, %v1630_v33  ;;  %v4625_v61 = vld [vmem:[%s9411_s2 + $0x130] sm:$0xf0]  ;;  %v9729_v19 = vld [vmem:[#allocation125_spill] sm:$0xff]  ;;  %v9772_v56 = vld [vmem:[#allocation154_spill] sm:$0xff] }
 0x43b   :  { %v3060_v40 = vpack.c.bf16 %v2926_v3, %v2925_v2  ;;  %v8372_v24 = vpop.f32.mrf.mxu0  ;;  %v2903_v58 = vmax.f32 %v2691_v59, 0.0  ;;  %v5021_v3 = vld [vmem:[%s9411_s2 + $0x27c] sm:$0xf0]  ;;  %v1650_v14 = vmul.f32 %v9728_v23, %v166_v21  ;;  %v1649_v41 = vmul.f32 %v9729_v19, %v165_v26  ;;  %v161_v19 = vld [vmem:[%s9410_s0 + $0x490] sm:$0xff] }
 0x43c   :  { %9725 = vst [vmem:[#allocation8_spill] sm:$0xff] %v8372_v24  ;;  %2364 = vperm.xlu1 %5076, %v5270_v34   ;;  %2424 = vperm.xlu2 %5074, %v5271_v20   ;;  %v2901_v59 = vmax.f32 %v2689_v46, 0.0  ;;  %v4792_v33 = vor.u32 %v5021_v3, %v4791_v45  ;;  %v163_v34 = vld [vmem:[%s9410_s0 + $0x4a0] sm:$0xff]  ;;  %v2902_v20 = vmax.f32 %v2690_v38, 0.0  ;;  %v4628_v53 = vor.u32 %v4972_v4, %v4625_v61  ;;  %v9731_v46 = vld [vmem:[#allocation111_spill] sm:$0xff]  ;;  %v5274_v38 = vld [vmem:[%s9409_s1 + $0x638] sm:$0xff] }
 0x43d   :  { %2428 = vperm.xlu0 %5075, %v5272_v10   ;;  %4221 = vmatpush.bf16.msra.mxu1 %v3060_v40  ;;  %v3049_v16 = vpack.c.bf16 %v2904_v22, %v2903_v58  ;;  %v2923_v40 = vmax.f32 %v2711_v35, 0.0  ;;  %v1648_v22 = vmul.f32 %v9731_v46, %v164_v63  ;;  %v2709_v26 = vadd.f32 %v8233_v36, %v1649_v41  ;;  %v9732_v45 = vld [vmem:[#allocation121_spill] sm:$0xff] }
 0x43e   :  { %4174 = vmatpush.bf16.msra.mxu0 %v3050_v12  ;;  %v2325_v62 = vpop.permute.xlu1 %2324  ;;  %v8395_v2 = vpop.permute.xlu2 %2412  ;;  %v3048_v58 = vpack.c.bf16 %v2902_v20, %v2901_v59  ;;  %v1647_v3 = vmul.f32 %v9732_v45, %v163_v34  ;;  %v9733_v34 = vld [vmem:[#allocation108_spill] sm:$0xff] }
 0x43f   :  { %v2712_v15 = vadd.f32 %v2325_v62, %v1652_v37  ;;  %v2317_v8 = vpop.permute.xlu0 %2316  ;;  %4066 = vmatmul.bf16.gmra.mxu1 %v4900_v29  ;;  %v5273_v62 = vld [vmem:[%s9409_s1 + $0x630] sm:$0xff]  ;;  %v2708_v36 = vadd.f32 %v8279_v11, %v1648_v22  ;;  %v4952_v11 = vld [vmem:[%s9411_s2 + $0x54] sm:$0xf0]  ;;  %v2921_v4 = vmax.f32 %v2709_v26, 0.0  ;;  %v1645_v20 = vmul.f32 %v9733_v34, %v161_v19 }
 0x440   :  { %v2710_v27 = vadd.f32 %v2317_v8, %v1650_v14  ;;  %v5275_v14 = vld [vmem:[%s9409_s1 + $0x500] sm:$0xff]  ;;  %v190_v19 = vld [vmem:[%s9410_s0 + $0x578] sm:$0xff] }
 0x441   :  { %v2924_v29 = vmax.f32 %v2712_v15, 0.0  ;;  %v3920_v21 = vpop.f32.mrf.mxu2  ;;  %v8416_v12 = vpop.f32.mrf.mxu3  ;;  %v2920_v41 = vmax.f32 %v2708_v36, 0.0 }
 0x442   :  { %4175 = vmatpush.bf16.msra.mxu0 %v3049_v16  ;;  %v8421_v37 = vadd.f32 %v3920_v21, %v3872_v31  ;;  %v2922_v23 = vmax.f32 %v2710_v27, 0.0  ;;  %v162_v27 = vld [vmem:[%s9410_s0 + $0x498] sm:$0xff] }
 0x443   :  { %v3059_v35 = vpack.c.bf16 %v2924_v29, %v2923_v40  ;;  %v3993_v10 = vpop.f32.mrf.mxu0 }
 0x444   :  { %2504 = vperm.xlu1 %5076, %v5273_v62   ;;  %2508 = vperm.xlu2 %5074, %v5274_v38   ;;  %v8432_v31 = vadd.f32 %v3993_v10, %v8260_v17  ;;  %v4519_v17 = vld [vmem:[%s9411_s2 + $0x20] sm:$0xf]  ;;  %v3058_v59 = vpack.c.bf16 %v2922_v23, %v2921_v4  ;;  %v5278_v62 = vld [vmem:[%s9409_s1 + $0x588] sm:$0xff]  ;;  %v4847_v23 = vld [vmem:[%s9411_s2 + $0x2b8] sm:$0xf] }
 0x445   :  { %2352 = vperm.xlu0 %5075, %v5275_v14   ;;  %4105 = vmatmul.bf16.gmra.mxu2 %v4792_v33  ;;  %v4520_v40 = vor.u32 %v4952_v11, %v4519_v17  ;;  %v9735_v10 = vld [vmem:[#allocation122_spill] sm:$0xff]  ;;  %v5035_v14 = vld [vmem:[%s9411_s2 + $0x2ec] sm:$0xf0]  ;;  %v4986_v11 = vld [vmem:[%s9411_s2 + $0x16c] sm:$0xf] }
 0x446   :  { %4139 = vmatmul.bf16.gmra.mxu3 %v4628_v53  ;;  %4176 = vmatpush.bf16.msra.mxu0 %v3048_v58  ;;  %v2305_v15 = vpop.permute.xlu1 %2304  ;;  %v8439_v8 = vpop.permute.xlu2 %2400  ;;  %v160_v53 = vld [vmem:[%s9410_s0 + $0x488] sm:$0xff]  ;;  %v1646_v58 = vmul.f32 %v9735_v10, %v162_v27  ;;  %v9736_v38 = vld [vmem:[#allocation118_spill] sm:$0xff]  ;;  %v189_v27 = vld [vmem:[%s9410_s0 + $0x570] sm:$0xff] }
 0x447   :  { %4222 = vmatpush.bf16.msra.mxu1 %v3059_v35  ;;  %v2707_v61 = vadd.f32 %v2305_v15, %v1647_v3  ;;  %v2297_v63 = vpop.permute.xlu0 %2296  ;;  %v159_v35 = vld [vmem:[%s9410_s0 + $0x480] sm:$0xff]  ;;  %v1644_v45 = vmul.f32 %v9736_v38, %v160_v53  ;;  %v9738_v53 = vld [vmem:[#allocation148_spill] sm:$0xff] }
 0x448   :  { %v4681_v4 = vld [vmem:[%s9411_s2 + $0x1a0] sm:$0xf0] }
 0x449   :  { %v2919_v16 = vmax.f32 %v2707_v61, 0.0  ;;  %v3959_v29 = vpop.f32.mrf.mxu3  ;;  %v9737_v61 = vld [vmem:[#allocation119_spill] sm:$0xff]  ;;  %v5279_v10 = vld [vmem:[%s9409_s1 + $0x620] sm:$0xff] }
 0x44a   :  { %4177 = vmatpush.bf16.msra.mxu0 %v8011_v0  ;;  %v4032_v33 = vpop.f32.mrf.mxu1  ;;  %v8455_v21 = vadd.f32 %v3959_v29, %v8211_v6  ;;  %v5276_v0 = vld [vmem:[%s9409_s1 + $0x508] sm:$0xff]  ;;  %v5277_v6 = vld [vmem:[%s9409_s1 + $0x580] sm:$0xff] }
 0x44b   :  { %v3057_v46 = vpack.c.bf16 %v2920_v41, %v2919_v16  ;;  %4223 = vmatpush.bf16.msra.mxu1 %v3058_v59  ;;  %v8462_v22 = vadd.f32 %v4032_v33, %v8218_v52  ;;  %v8464_v26 = vpop.f32.mrf.mxu0  ;;  %v2705_v52 = vadd.f32 %v2297_v63, %v1645_v20  ;;  %v1643_v63 = vmul.f32 %v9737_v61, %v159_v35  ;;  %v205_v61 = vld [vmem:[%s9410_s0 + $0x5f0] sm:$0xff] }
 0x44c   :  { %9734 = vst [vmem:[#allocation24_spill] sm:$0xff] %v8464_v26  ;;  %2356 = vperm.xlu1 %5076, %v5276_v0   ;;  %2416 = vperm.xlu2 %5074, %v5277_v6   ;;  %v4684_v20 = vor.u32 %v4986_v11, %v4681_v4  ;;  %v4945_v11 = vld [vmem:[%s9411_s2 + $0x24] sm:$0xf]  ;;  %v4521_v4 = vld [vmem:[%s9411_s2 + $0x58] sm:$0xf0] }
 0x44d   :  { %2420 = vperm.xlu0 %5075, %v5278_v62   ;;  %4178 = vmatmul.bf16.vlgmr.msra.gmra.mxu0 %v4520_v40  ;;  %v2917_v59 = vmax.f32 %v2705_v52, 0.0  ;;  %v4848_v40 = vor.u32 %v5035_v14, %v4847_v23  ;;  %v2703_v33 = vadd.f32 %v8337_v44, %v1643_v63  ;;  %v9739_v52 = vld [vmem:[#allocation149_spill] sm:$0xff] }
 0x44e   :  { %v2301_v3 = vpop.permute.xlu1 %2300  ;;  %v8480_v36 = vpop.permute.xlu2 %2468  ;;  %v1673_v62 = vmul.f32 %v9739_v52, %v189_v27  ;;  %v9742_v52 = vld [vmem:[#allocation145_spill] sm:$0xff] }
 0x44f   :  { %4224 = vmatpush.bf16.msra.mxu1 %v3057_v46  ;;  %v2706_v15 = vadd.f32 %v2301_v3, %v1646_v58  ;;  %v2293_v17 = vpop.permute.xlu0 %2292  ;;  %v1674_v46 = vmul.f32 %v9738_v53, %v190_v19  ;;  %v5280_v58 = vld [vmem:[%s9409_s1 + $0x628] sm:$0xff]  ;;  %v2915_v3 = vmax.f32 %v2703_v33, 0.0  ;;  %v187_v19 = vld [vmem:[%s9410_s0 + $0x560] sm:$0xff]  ;;  %v4524_v33 = vor.u32 %v4945_v11, %v4521_v4 }
 0x450   :  { %v2704_v41 = vadd.f32 %v2293_v17, %v1644_v45  ;;  %v5281_v45 = vld [vmem:[%s9409_s1 + $0x610] sm:$0xff]  ;;  %v188_v53 = vld [vmem:[%s9410_s0 + $0x568] sm:$0xff] }
 0x451   :  { %v2918_v16 = vmax.f32 %v2706_v15, 0.0  ;;  %v8498_v29 = vpop.f32.mrf.mxu3  ;;  %v2734_v38 = vadd.f32 %v8395_v2, %v1674_v46  ;;  %v4966_v2 = vld [vmem:[%s9411_s2 + $0xc4] sm:$0xf0] }
 0x452   :  { %v8504_v34 = vpop.f32.mrf.mxu1  ;;  %v2916_v35 = vmax.f32 %v2704_v41, 0.0  ;;  %v9740_v46 = vld [vmem:[#allocation163_spill] sm:$0xff] }
 0x453   :  { %v3056_v0 = vpack.c.bf16 %v2918_v16, %v2917_v59  ;;  %v3998_v6 = vpop.f32.mrf.mxu0  ;;  %v2946_v41 = vmax.f32 %v2734_v38, 0.0  ;;  %v5282_v38 = vld [vmem:[%s9409_s1 + $0x618] sm:$0xff] }
 0x454   :  { %2496 = vperm.xlu1 %5076, %v5279_v10   ;;  %2500 = vperm.xlu2 %5074, %v5280_v58   ;;  %v8514_v44 = vadd.f32 %v3998_v6, %v8370_v47  ;;  %v4575_v47 = vld [vmem:[%s9411_s2 + $0x90] sm:$0xf]  ;;  %v3055_v63 = vpack.c.bf16 %v2916_v35, %v2915_v3  ;;  %v9743_v3 = vld [vmem:[#allocation153_spill] sm:$0xff] }
 0x455   :  { %2488 = vperm.xlu0 %5075, %v5281_v45   ;;  %4110 = vmatmul.bf16.gmra.mxu2 %v4848_v40  ;;  %v4576_v16 = vor.u32 %v4966_v2, %v4575_v47  ;;  %v206_v40 = vld [vmem:[%s9410_s0 + $0x5f8] sm:$0xff]  ;;  %v5283_v45 = vld [vmem:[%s9409_s1 + $0x690] sm:$0xff]  ;;  %v9744_v47 = vld [vmem:[#allocation135_spill] sm:$0xff] }
 0x456   :  { %4144 = vmatmul.bf16.gmra.mxu3 %v4684_v20  ;;  %4225 = vmatpush.bf16.msra.mxu1 %v3056_v0  ;;  %v2409_v23 = vpop.permute.xlu1 %2408  ;;  %v8521_v14 = vpop.permute.xlu2 %2456  ;;  %v1689_v0 = vmul.f32 %v9740_v46, %v205_v61  ;;  %v1672_v2 = vmul.f32 %v9744_v47, %v188_v53  ;;  %v4903_v61 = vld [vmem:[%s9411_s2 + $0x328] sm:$0xf] }
 0x457   :  { %v2733_v15 = vadd.f32 %v2409_v23, %v1673_v62  ;;  %v2473_v17 = vpop.permute.xlu0 %2472  ;;  %v1671_v62 = vmul.f32 %v9742_v52, %v187_v19 }
 0x458   :  { %v2749_v23 = vadd.f32 %v2473_v17, %v1689_v0  ;;  %v5049_v17 = vld [vmem:[%s9411_s2 + $0x35c] sm:$0xf0] }
 0x459   :  { %v2945_v59 = vmax.f32 %v2733_v15, 0.0  ;;  %v2731_v15 = vadd.f32 %v8439_v8, %v1671_v62  ;;  %v4737_v8 = vld [vmem:[%s9411_s2 + $0x210] sm:$0xf0] }
 0x45a   :  { %4226 = vmatpush.bf16.msra.mxu1 %v3055_v63  ;;  %v4037_v27 = vpop.f32.mrf.mxu1  ;;  %v3964_v20 = vpop.f32.mrf.mxu3  ;;  %v9746_v62 = vld [vmem:[#allocation164_spill] sm:$0xff] }
 0x45b   :  { %v3070_v6 = vpack.c.bf16 %v2946_v41, %v2945_v59  ;;  %v8549_v35 = vadd.f32 %v4037_v27, %v8326_v30  ;;  %v8551_v10 = vpop.f32.mrf.mxu0  ;;  %v8554_v58 = vadd.f32 %v3964_v20, %v8311_v13  ;;  %v1690_v30 = vmul.f32 %v9743_v3, %v206_v40  ;;  %v5284_v13 = vld [vmem:[%s9409_s1 + $0x698] sm:$0xff]  ;;  %v204_v59 = vld [vmem:[%s9410_s0 + $0x5e8] sm:$0xff]  ;;  %v203_v20 = vld [vmem:[%s9410_s0 + $0x5e0] sm:$0xff] }
 0x45c   :  { %9741 = vst [vmem:[#allocation34_spill] sm:$0xff] %v8551_v10  ;;  %2492 = vperm.xlu1 %5076, %v5282_v38   ;;  %2552 = vperm.xlu2 %5074, %v5283_v45   ;;  %v5000_v41 = vld [vmem:[%s9411_s2 + $0x1dc] sm:$0xf]  ;;  %v2961_v40 = vmax.f32 %v2749_v23, 0.0  ;;  %v2943_v53 = vmax.f32 %v2731_v15, 0.0  ;;  %v1688_v38 = vmul.f32 %v9746_v62, %v204_v59  ;;  %v5285_v23 = vld [vmem:[%s9409_s1 + $0x600] sm:$0xff] }
 0x45d   :  { %2556 = vperm.xlu0 %5075, %v5284_v13   ;;  %4183 = vmatmul.bf16.gmra.mxu0 %v4576_v16  ;;  %v5286_v13 = vld [vmem:[%s9409_s1 + $0x608] sm:$0xff] }
 0x45e   :  { %4227 = vmatmul.bf16.vlgmr.msra.gmra.mxu1 %v4524_v33  ;;  %4268 = vmatpush.bf16.msrb.mxu2 %v3070_v6  ;;  %v2477_v11 = vpop.permute.xlu1 %2476  ;;  %v8569_v4 = vpop.permute.xlu2 %2540  ;;  %v4904_v33 = vor.u32 %v5049_v17, %v4903_v61  ;;  %v4740_v6 = vor.u32 %v5000_v41, %v4737_v8  ;;  %v5287_v61 = vld [vmem:[%s9409_s1 + $0x680] sm:$0xff]  ;;  %v4959_v8 = vld [vmem:[%s9411_s2 + $0x94] sm:$0xf]  ;;  %v4577_v59 = vld [vmem:[%s9411_s2 + $0xc8] sm:$0xf0] }
 0x45f   :  { %v2750_v63 = vadd.f32 %v2477_v11, %v1690_v30  ;;  %v2405_v19 = vpop.permute.xlu0 %2404  ;;  %v2748_v11 = vadd.f32 %v8480_v36, %v1688_v38  ;;  %v9748_v38 = vld [vmem:[#allocation132_spill] sm:$0xff] }
 0x460   :  { %v2732_v16 = vadd.f32 %v2405_v19, %v1672_v2  ;;  %v9747_v2 = vld [vmem:[#allocation150_spill] sm:$0xff]  ;;  %v4980_v19 = vld [vmem:[%s9411_s2 + $0x134] sm:$0xf0] }
 0x461   :  { %v2962_v27 = vmax.f32 %v2750_v63, 0.0  ;;  %v1687_v15 = vmul.f32 %v9747_v2, %v203_v20 }
 0x462   :  { %v2944_v46 = vmax.f32 %v2732_v16, 0.0  ;;  %v8589_v0 = vpop.f32.mrf.mxu1  ;;  %v8591_v52 = vpop.f32.mrf.mxu3  ;;  %v185_v16 = vld [vmem:[%s9410_s0 + $0x550] sm:$0xff] }
 0x463   :  { %9745 = vst [vmem:[#allocation38_spill] sm:$0xff] %v8589_v0  ;;  %v3078_v45 = vpack.c.bf16 %v2962_v27, %v2961_v40  ;;  %v4003_v3 = vpop.f32.mrf.mxu0  ;;  %v201_v40 = vld [vmem:[%s9410_s0 + $0x5d0] sm:$0xff]  ;;  %v2960_v27 = vmax.f32 %v2748_v11, 0.0  ;;  %v223_v0 = vld [vmem:[%s9410_s0 + $0x680] sm:$0xff] }
 0x464   :  { %v3069_v30 = vpack.c.bf16 %v2944_v46, %v2943_v53  ;;  %2480 = vperm.xlu1 %5076, %v5285_v23   ;;  %2484 = vperm.xlu2 %5074, %v5286_v13   ;;  %v8601_v47 = vadd.f32 %v4003_v3, %v8366_v9  ;;  %v4631_v9 = vld [vmem:[%s9411_s2 + $0x100] sm:$0xf]  ;;  %v186_v53 = vld [vmem:[%s9410_s0 + $0x558] sm:$0xff] }
 0x465   :  { %2544 = vperm.xlu0 %5075, %v5287_v61   ;;  %4115 = vmatmul.bf16.gmra.mxu2 %v4904_v33  ;;  %v4632_v20 = vor.u32 %v4980_v19, %v4631_v9  ;;  %v202_v3 = vld [vmem:[%s9410_s0 + $0x5d8] sm:$0xff]  ;;  %v5288_v61 = vld [vmem:[%s9409_s1 + $0x688] sm:$0xff] }
 0x466   :  { %4149 = vmatmul.bf16.gmra.mxu3 %v4740_v6  ;;  %4269 = vmatpush.bf16.msrb.mxu2 %v3069_v30  ;;  %v2465_v17 = vpop.permute.xlu1 %2464  ;;  %v8608_v63 = vpop.permute.xlu2 %2448  ;;  %v4580_v6 = vor.u32 %v4959_v8, %v4577_v59 }
 0x467   :  { %4317 = vmatpush.bf16.msrb.mxu3 %v3078_v45  ;;  %v2747_v36 = vadd.f32 %v2465_v17, %v1687_v15  ;;  %v2393_v41 = vpop.permute.xlu0 %2392  ;;  %v1669_v45 = vmul.f32 %v9748_v38, %v185_v16  ;;  %v9749_v15 = vld [vmem:[#allocation161_spill] sm:$0xff]  ;;  %v9750_v17 = vld [vmem:[#allocation146_spill] sm:$0xff] }
 0x468   :  { %v1685_v11 = vmul.f32 %v9749_v15, %v201_v40  ;;  %v1670_v9 = vmul.f32 %v9750_v17, %v186_v53 }
 0x469   :  { %v2959_v33 = vmax.f32 %v2747_v36, 0.0  ;;  %v2729_v19 = vadd.f32 %v2393_v41, %v1669_v45  ;;  %v9751_v36 = vld [vmem:[#allocation160_spill] sm:$0xff]  ;;  %v4793_v41 = vld [vmem:[%s9411_s2 + $0x280] sm:$0xf0] }
 0x46a   :  { %v4042_v46 = vpop.f32.mrf.mxu1  ;;  %v3969_v62 = vpop.f32.mrf.mxu3  ;;  %v2745_v8 = vadd.f32 %v8521_v14, %v1685_v11 }
 0x46b   :  { %v3077_v30 = vpack.c.bf16 %v2960_v27, %v2959_v33  ;;  %v8636_v23 = vadd.f32 %v4042_v46, %v8432_v31  ;;  %v8638_v13 = vpop.f32.mrf.mxu0  ;;  %v8641_v2 = vadd.f32 %v3969_v62, %v8421_v37  ;;  %v1686_v31 = vmul.f32 %v9751_v36, %v202_v3  ;;  %v5014_v27 = vld [vmem:[%s9411_s2 + $0x24c] sm:$0xf]  ;;  %v222_v33 = vld [vmem:[%s9410_s0 + $0x678] sm:$0xff]  ;;  %v8661_v14 = vpop.f32.mrf.mxu2  ;;  %v9754_v36 = vld [vmem:[#allocation168_spill] sm:$0xff] }
 0x46c   :  { %2548 = vperm.xlu1 %5076, %v5288_v61   ;;  %v2941_v53 = vmax.f32 %v2729_v19, 0.0  ;;  %v2957_v62 = vmax.f32 %v2745_v8, 0.0  ;;  %v4796_v3 = vor.u32 %v5014_v27, %v4793_v41  ;;  %v4687_v8 = vld [vmem:[%s9411_s2 + $0x170] sm:$0xf]  ;;  %v183_v41 = vld [vmem:[%s9410_s0 + $0x540] sm:$0xff] }
 0x46d   :  { %4188 = vmatmul.bf16.gmra.mxu0 %v4632_v20  ;;  %4318 = vmatpush.bf16.msrb.mxu3 %v3077_v30  ;;  %v9753_v30 = vld [vmem:[#allocation179_spill] sm:$0xff] }
 0x46e   :  { %4232 = vmatmul.bf16.gmra.mxu1 %v4580_v6  ;;  %v2397_v59 = vpop.permute.xlu1 %2396  ;;  %v8650_v37 = vpop.permute.xlu2 %2532  ;;  %v221_v6 = vld [vmem:[%s9410_s0 + $0x670] sm:$0xff]  ;;  %v1706_v15 = vmul.f32 %v9753_v30, %v222_v33 }
 0x46f   :  { %v2730_v16 = vadd.f32 %v2397_v59, %v1670_v9  ;;  %v2461_v40 = vpop.permute.xlu0 %2460  ;;  %v1705_v19 = vmul.f32 %v9754_v36, %v221_v6 }
 0x470   :  { %v2746_v20 = vadd.f32 %v2461_v40, %v1686_v31  ;;  %v2766_v31 = vadd.f32 %v8569_v4, %v1706_v15  ;;  %v4633_v4 = vld [vmem:[%s9411_s2 + $0x138] sm:$0xf0] }
 0x471   :  { %v2942_v46 = vmax.f32 %v2730_v16, 0.0  ;;  %v4994_v16 = vld [vmem:[%s9411_s2 + $0x1a4] sm:$0xf0] }
 0x472   :  { %v2958_v38 = vmax.f32 %v2746_v20, 0.0  ;;  %v8666_v45 = vpop.f32.mrf.mxu1 }
 0x473   :  { %9752 = vst [vmem:[#allocation35_spill] sm:$0xff] %v8666_v45  ;;  %v3068_v11 = vpack.c.bf16 %v2942_v46, %v2941_v53  ;;  %v4008_v61 = vpop.f32.mrf.mxu0  ;;  %v199_v53 = vld [vmem:[%s9410_s0 + $0x5c0] sm:$0xff]  ;;  %v2978_v46 = vmax.f32 %v2766_v31, 0.0 }
 0x474   :  { %v3076_v17 = vpack.c.bf16 %v2958_v38, %v2957_v62  ;;  %v8670_v9 = vadd.f32 %v4008_v61, %v8455_v21  ;;  %v4973_v21 = vld [vmem:[%s9411_s2 + $0x104] sm:$0xf]  ;;  %v4688_v38 = vor.u32 %v4994_v16, %v4687_v8 }
 0x475   :  { %4270 = vmatpush.bf16.msrb.mxu2 %v3068_v11  ;;  %v4636_v15 = vor.u32 %v4973_v21, %v4633_v4  ;;  %v9755_v11 = vld [vmem:[#allocation143_spill] sm:$0xff]  ;;  %v9757_v8 = vld [vmem:[#allocation142_spill] sm:$0xff] }
 0x476   :  { %4154 = vmatmul.bf16.gmra.mxu3 %v4796_v3  ;;  %v2537_v59 = vpop.permute.xlu1 %2536  ;;  %v8689_v33 = vpop.permute.xlu2 %2440  ;;  %v184_v3 = vld [vmem:[%s9410_s0 + $0x548] sm:$0xff]  ;;  %v1667_v61 = vmul.f32 %v9755_v11, %v183_v41 }
 0x477   :  { %4319 = vmatpush.bf16.msrb.mxu3 %v3076_v17  ;;  %v2765_v40 = vadd.f32 %v2537_v59, %v1705_v19  ;;  %v2385_v27 = vpop.permute.xlu0 %2384  ;;  %v200_v17 = vld [vmem:[%s9410_s0 + $0x5c8] sm:$0xff]  ;;  %v1668_v16 = vmul.f32 %v9757_v8, %v184_v3 }
 0x478   :  { %v4081_v20 = vpop.f32.mrf.mxu2 }
 0x479   :  { %v2977_v6 = vmax.f32 %v2765_v40, 0.0  ;;  %v8695_v62 = vadd.f32 %v4081_v20, %v8462_v22  ;;  %v9756_v22 = vld [vmem:[#allocation157_spill] sm:$0xff]  ;;  %v2727_v40 = vadd.f32 %v2385_v27, %v1667_v61  ;;  %v9758_v20 = vld [vmem:[#allocation147_spill] sm:$0xff] }
 0x47a   :  { %v4047_v30 = vpop.f32.mrf.mxu1  ;;  %v1683_v59 = vmul.f32 %v9756_v22, %v199_v53  ;;  %v1684_v21 = vmul.f32 %v9758_v20, %v200_v17  ;;  %v4849_v53 = vld [vmem:[%s9411_s2 + $0x2f0] sm:$0xf0]  ;;  %v220_v27 = vld [vmem:[%s9410_s0 + $0x668] sm:$0xff] }
 0x47b   :  { %v3086_v36 = vpack.c.bf16 %v2978_v46, %v2977_v6  ;;  %v8705_v19 = vadd.f32 %v4047_v30, %v8514_v44  ;;  %v8707_v31 = vpop.f32.mrf.mxu0  ;;  %v5028_v44 = vld [vmem:[%s9411_s2 + $0x2bc] sm:$0xf]  ;;  %v219_v30 = vld [vmem:[%s9410_s0 + $0x660] sm:$0xff] }
 0x47c   :  { %v2743_v4 = vadd.f32 %v8608_v63, %v1683_v59  ;;  %v2939_v63 = vmax.f32 %v2727_v40, 0.0  ;;  %v4852_v22 = vor.u32 %v5028_v44, %v4849_v53  ;;  %v9760_v59 = vld [vmem:[#allocation176_spill] sm:$0xff]  ;;  %v9761_v40 = vld [vmem:[#allocation177_spill] sm:$0xff] }
 0x47d   :  { %4193 = vmatmul.bf16.gmra.mxu0 %v4688_v38  ;;  %v1704_v8 = vmul.f32 %v9760_v59, %v220_v27  ;;  %v5008_v44 = vld [vmem:[%s9411_s2 + $0x214] sm:$0xf0] }
 0x47e   :  { %4237 = vmatmul.bf16.gmra.mxu1 %v4636_v15  ;;  %4366 = vmatpush.bf16.msrb.mxu0 %v3086_v36  ;;  %v2389_v41 = vpop.permute.xlu1 %2388  ;;  %v2955_v15 = vmax.f32 %v2743_v4, 0.0  ;;  %v8727_v61 = vpop.permute.xlu2 %2524 }
 0x47f   :  { %v2728_v11 = vadd.f32 %v2389_v41, %v1668_v16  ;;  %v2453_v46 = vpop.permute.xlu0 %2452 }
 0x480   :  { %v2744_v6 = vadd.f32 %v2453_v46, %v1684_v21  ;;  %v8722_v38 = vpop.f32.mrf.mxu2  ;;  %v2764_v46 = vadd.f32 %v8650_v37, %v1704_v8  ;;  %v4689_v37 = vld [vmem:[%s9411_s2 + $0x1a8] sm:$0xf0]  ;;  %v182_v8 = vld [vmem:[%s9410_s0 + $0x538] sm:$0xff] }
 0x481   :  { %v2940_v3 = vmax.f32 %v2728_v11, 0.0  ;;  %v1703_v11 = vmul.f32 %v9761_v40, %v219_v30  ;;  %v197_v30 = vld [vmem:[%s9410_s0 + $0x5b0] sm:$0xff] }
 0x482   :  { %v2956_v17 = vmax.f32 %v2744_v6, 0.0  ;;  %v8729_v36 = vpop.f32.mrf.mxu1  ;;  %v4743_v6 = vld [vmem:[%s9411_s2 + $0x1e0] sm:$0xf] }
 0x483   :  { %9759 = vst [vmem:[#allocation31_spill] sm:$0xff] %v8729_v36  ;;  %v3067_v16 = vpack.c.bf16 %v2940_v3, %v2939_v63  ;;  %v4013_v20 = vpop.f32.mrf.mxu0  ;;  %v181_v63 = vld [vmem:[%s9410_s0 + $0x530] sm:$0xff]  ;;  %v4744_v59 = vor.u32 %v5008_v44, %v4743_v6 }
 0x484   :  { %v3075_v21 = vpack.c.bf16 %v2956_v17, %v2955_v15  ;;  %v8733_v41 = vadd.f32 %v4013_v20, %v8554_v58  ;;  %v4987_v58 = vld [vmem:[%s9411_s2 + $0x174] sm:$0xf]  ;;  %v2976_v15 = vmax.f32 %v2764_v46, 0.0 }
 0x485   :  { %4271 = vmatpush.bf16.msrb.mxu2 %v3067_v16  ;;  %v4692_v20 = vor.u32 %v4987_v58, %v4689_v37  ;;  %v9765_v58 = vld [vmem:[#allocation158_spill] sm:$0xff] }
 0x486   :  { %4159 = vmatmul.bf16.gmra.mxu3 %v4852_v22  ;;  %v2529_v4 = vpop.permute.xlu1 %2528  ;;  %v2433_v44 = vpop.permute.xlu2 %2432 }
 0x487   :  { %4320 = vmatpush.bf16.msrb.mxu3 %v3075_v21  ;;  %v2763_v53 = vadd.f32 %v2529_v4, %v1703_v11  ;;  %v2377_v27 = vpop.permute.xlu0 %2376  ;;  %v9762_v21 = vld [vmem:[#allocation139_spill] sm:$0xff]  ;;  %v198_v11 = vld [vmem:[%s9410_s0 + $0x5b8] sm:$0xff] }
 0x488   :  { %v4086_v3 = vpop.f32.mrf.mxu2  ;;  %v1665_v40 = vmul.f32 %v9762_v21, %v181_v63  ;;  %v1682_v37 = vmul.f32 %v9765_v58, %v198_v11 }
 0x489   :  { %v2975_v17 = vmax.f32 %v2763_v53, 0.0  ;;  %v8756_v22 = vadd.f32 %v4086_v3, %v8549_v35  ;;  %v9763_v35 = vld [vmem:[#allocation144_spill] sm:$0xff]  ;;  %v9764_v3 = vld [vmem:[#allocation129_spill] sm:$0xff] }
 0x48a   :  { %v4052_v16 = vpop.f32.mrf.mxu1  ;;  %v1681_v6 = vmul.f32 %v9763_v35, %v197_v30  ;;  %v1666_v36 = vmul.f32 %v9764_v3, %v182_v8  ;;  %v2725_v10 = vadd.f32 %v2377_v27, %v1665_v40  ;;  %v4905_v30 = vld [vmem:[%s9411_s2 + $0x360] sm:$0xf0]  ;;  %v218_v27 = vld [vmem:[%s9410_s0 + $0x658] sm:$0xff] }
 0x48b   :  { %v3085_v4 = vpack.c.bf16 %v2976_v15, %v2975_v17  ;;  %v8766_v46 = vadd.f32 %v4052_v16, %v8601_v47  ;;  %v8768_v53 = vpop.f32.mrf.mxu0  ;;  %v5042_v47 = vld [vmem:[%s9411_s2 + $0x32c] sm:$0xf]  ;;  %v9767_v35 = vld [vmem:[#allocation165_spill] sm:$0xff] }
 0x48c   :  { %v2741_v63 = vadd.f32 %v8689_v33, %v1681_v6  ;;  %v2937_v33 = vmax.f32 %v2725_v10, 0.0  ;;  %v1702_v6 = vmul.f32 %v9767_v35, %v218_v27 }
 0x48d   :  { %4198 = vmatmul.bf16.gmra.mxu0 %v4744_v59 }
 0x48e   :  { %4242 = vmatmul.bf16.gmra.mxu1 %v4692_v20  ;;  %4367 = vmatpush.bf16.msrb.mxu0 %v3085_v4  ;;  %v2381_v21 = vpop.permute.xlu1 %2380  ;;  %v2953_v20 = vmax.f32 %v2741_v63, 0.0  ;;  %v4908_v4 = vor.u32 %v5042_v47, %v4905_v30  ;;  %v2517_v25 = vpop.permute.xlu2 %2516  ;;  %v4799_v47 = vld [vmem:[%s9411_s2 + $0x250] sm:$0xf]  ;;  %v5022_v30 = vld [vmem:[%s9411_s2 + $0x284] sm:$0xf0] }
 0x48f   :  { %v2726_v15 = vadd.f32 %v2381_v21, %v1666_v36  ;;  %v2445_v17 = vpop.permute.xlu0 %2444  ;;  %v217_v36 = vld [vmem:[%s9410_s0 + $0x650] sm:$0xff]  ;;  %v4800_v35 = vor.u32 %v5022_v30, %v4799_v47 }
 0x490   :  { %v2742_v59 = vadd.f32 %v2445_v17, %v1682_v37  ;;  %v8783_v8 = vpop.f32.mrf.mxu2  ;;  %v9768_v17 = vld [vmem:[#allocation174_spill] sm:$0xff] }
 0x491   :  { %9766 = vst [vmem:[#allocation21_spill] sm:$0xff] %v8783_v8  ;;  %v2938_v16 = vmax.f32 %v2726_v15, 0.0  ;;  %v1701_v10 = vmul.f32 %v9768_v17, %v217_v36  ;;  %v2762_v15 = vadd.f32 %v8727_v61, %v1702_v6  ;;  %v4745_v61 = vld [vmem:[%s9411_s2 + $0x218] sm:$0xf0]  ;;  %v195_v36 = vld [vmem:[%s9410_s0 + $0x5a0] sm:$0xff]  ;;  %v180_v6 = vld [vmem:[%s9410_s0 + $0x528] sm:$0xff] }
 0x492   :  { %v2954_v40 = vmax.f32 %v2742_v59, 0.0  ;;  %v8788_v11 = vpop.f32.mrf.mxu1  ;;  %v5001_v59 = vld [vmem:[%s9411_s2 + $0x1e4] sm:$0xf] }
 0x493   :  { %v3066_v3 = vpack.c.bf16 %v2938_v16, %v2937_v33  ;;  %v4018_v58 = vpop.f32.mrf.mxu0  ;;  %v179_v33 = vld [vmem:[%s9410_s0 + $0x520] sm:$0xff] }
 0x494   :  { %v3074_v21 = vpack.c.bf16 %v2954_v40, %v2953_v20  ;;  %v8792_v37 = vadd.f32 %v4018_v58, %v8641_v2  ;;  %v2974_v20 = vmax.f32 %v2762_v15, 0.0  ;;  %v4748_v58 = vor.u32 %v5001_v59, %v4745_v61 }
 0x495   :  { %4272 = vmatpush.bf16.msrb.mxu2 %v3066_v3 }
 0x496   :  { %4164 = vmatmul.bf16.gmra.mxu3 %v4908_v4  ;;  %v2521_v63 = vpop.permute.xlu1 %2520 }
 0x497   :  { %4321 = vmatpush.bf16.msrb.mxu3 %v3074_v21  ;;  %v2761_v27 = vadd.f32 %v2521_v63, %v1701_v10  ;;  %v2369_v2 = vpop.permute.xlu0 %2368  ;;  %v9769_v21 = vld [vmem:[#allocation126_spill] sm:$0xff]  ;;  %v196_v10 = vld [vmem:[%s9410_s0 + $0x5a8] sm:$0xff] }
 0x498   :  { %v4091_v16 = vpop.f32.mrf.mxu2  ;;  %v1663_v17 = vmul.f32 %v9769_v21, %v179_v33  ;;  %v1680_v1 = vmul.f32 %v9772_v56, %v196_v10  ;;  %v215_v56 = vld [vmem:[%s9410_s0 + $0x640] sm:$0xff]  ;;  %v9774_v21 = vld [vmem:[#allocation175_spill] sm:$0xff] }
 0x499   :  { %v2973_v40 = vmax.f32 %v2761_v27, 0.0  ;;  %v8815_v4 = vadd.f32 %v4091_v16, %v8636_v23  ;;  %v9770_v27 = vld [vmem:[#allocation155_spill] sm:$0xff]  ;;  %v9771_v16 = vld [vmem:[#allocation140_spill] sm:$0xff] }
 0x49a   :  { %v4057_v3 = vpop.f32.mrf.mxu1  ;;  %v1679_v23 = vmul.f32 %v9770_v27, %v195_v36  ;;  %v1664_v47 = vmul.f32 %v9771_v16, %v180_v6  ;;  %v2723_v30 = vadd.f32 %v2369_v2, %v1663_v17  ;;  %v8835_v2 = vpop.f32.mrf.mxu3  ;;  %v9775_v27 = vld [vmem:[#allocation162_spill] sm:$0xff] }
 0x49b   :  { %v3084_v63 = vpack.c.bf16 %v2974_v20, %v2973_v40  ;;  %v8825_v15 = vadd.f32 %v4057_v3, %v8670_v9  ;;  %v216_v20 = vld [vmem:[%s9410_s0 + $0x648] sm:$0xff]  ;;  %v2425_v9 = vpop.permute.xlu2 %2424 }
 0x49c   :  { %v2739_v45 = vadd.f32 %v2433_v44, %v1679_v23  ;;  %v2935_v36 = vmax.f32 %v2723_v30, 0.0  ;;  %v1700_v17 = vmul.f32 %v9774_v21, %v216_v20  ;;  %v178_v21 = vld [vmem:[%s9410_s0 + $0x518] sm:$0xff] }
 0x49d   :  { %4203 = vmatmul.bf16.gmra.mxu0 %v4800_v35 }
 0x49e   :  { %4247 = vmatmul.bf16.gmra.mxu1 %v4748_v58  ;;  %4368 = vmatpush.bf16.msrb.mxu0 %v3084_v63  ;;  %v2373_v59 = vpop.permute.xlu1 %2372  ;;  %v2951_v44 = vmax.f32 %v2739_v45, 0.0  ;;  %v2760_v23 = vadd.f32 %v2517_v25, %v1700_v17  ;;  %v5036_v45 = vld [vmem:[%s9411_s2 + $0x2f4] sm:$0xf0]  ;;  %v4801_v25 = vld [vmem:[%s9411_s2 + $0x288] sm:$0xf0] }
 0x49f   :  { %v2724_v61 = vadd.f32 %v2373_v59, %v1664_v47  ;;  %v2437_v33 = vpop.permute.xlu0 %2436  ;;  %v4855_v47 = vld [vmem:[%s9411_s2 + $0x2c0] sm:$0xf] }
 0x4a0   :  { %v2740_v40 = vadd.f32 %v2437_v33, %v1680_v1  ;;  %v8833_v3 = vpop.f32.mrf.mxu2  ;;  %v1699_v1 = vmul.f32 %v9775_v27, %v215_v56  ;;  %v177_v33 = vld [vmem:[%s9410_s0 + $0x510] sm:$0xff]  ;;  %v9776_v27 = vld [vmem:[#allocation137_spill] sm:$0xff] }
 0x4a1   :  { %9773 = vst [vmem:[#allocation32_spill] sm:$0xff] %v8833_v3  ;;  %v2936_v6 = vmax.f32 %v2724_v61, 0.0  ;;  %v5015_v61 = vld [vmem:[%s9411_s2 + $0x254] sm:$0xf] }
 0x4a2   :  { %v2952_v35 = vmax.f32 %v2740_v40, 0.0  ;;  %v8840_v58 = vpop.f32.mrf.mxu1  ;;  %v193_v40 = vld [vmem:[%s9410_s0 + $0x590] sm:$0xff] }
 0x4a3   :  { %v3065_v10 = vpack.c.bf16 %v2936_v6, %v2935_v36  ;;  %v2972_v36 = vmax.f32 %v2760_v23, 0.0  ;;  %v2509_v17 = vpop.permute.xlu2 %2508  ;;  %v194_v23 = vld [vmem:[%s9410_s0 + $0x598] sm:$0xff] }
 0x4a4   :  { %v3073_v63 = vpack.c.bf16 %v2952_v35, %v2951_v44  ;;  %v4856_v35 = vor.u32 %v5036_v45, %v4855_v47  ;;  %v9778_v47 = vld [vmem:[#allocation136_spill] sm:$0xff] }
 0x4a5   :  { %4273 = vmatpush.bf16.msrb.mxu2 %v3065_v10  ;;  %v1662_v45 = vmul.f32 %v9778_v47, %v178_v21  ;;  %v9782_v47 = vld [vmem:[#allocation173_spill] sm:$0xff] }
 0x4a6   :  { %4322 = vmatpush.bf16.msrb.mxu3 %v3073_v63  ;;  %v2513_v16 = vpop.permute.xlu1 %2512  ;;  %v4804_v63 = vor.u32 %v5015_v61, %v4801_v25 }
 0x4a7   :  { %v2759_v30 = vadd.f32 %v2513_v16, %v1699_v1  ;;  %v2361_v59 = vpop.permute.xlu0 %2360  ;;  %v1661_v1 = vmul.f32 %v9776_v27, %v177_v33 }
 0x4a8   :  { %v4096_v20 = vpop.f32.mrf.mxu2 }
 0x4a9   :  { %v2971_v6 = vmax.f32 %v2759_v30, 0.0  ;;  %v8863_v56 = vadd.f32 %v4096_v20, %v8705_v19  ;;  %v4130_v44 = vpop.f32.mrf.mxu3  ;;  %v9777_v19 = vld [vmem:[#allocation151_spill] sm:$0xff]  ;;  %v2721_v3 = vadd.f32 %v2361_v59, %v1661_v1  ;;  %v9781_v1 = vld [vmem:[#allocation172_spill] sm:$0xff] }
 0x4aa   :  { %v8869_v10 = vadd.f32 %v4130_v44, %v8695_v62  ;;  %v1677_v30 = vmul.f32 %v9777_v19, %v193_v40  ;;  %v9779_v62 = vld [vmem:[#allocation141_spill] sm:$0xff] }
 0x4ab   :  { %v3083_v16 = vpack.c.bf16 %v2972_v36, %v2971_v6  ;;  %v1678_v44 = vmul.f32 %v9779_v62, %v194_v23  ;;  %v214_v40 = vld [vmem:[%s9410_s0 + $0x638] sm:$0xff]  ;;  %v2933_v59 = vmax.f32 %v2721_v3, 0.0  ;;  %v2417_v19 = vpop.permute.xlu2 %2416 }
 0x4ac   :  { %v4062_v20 = vpop.f32.mrf.mxu1  ;;  %v2737_v61 = vadd.f32 %v2425_v9, %v1677_v30  ;;  %v213_v9 = vld [vmem:[%s9410_s0 + $0x630] sm:$0xff]  ;;  %v1698_v23 = vmul.f32 %v9781_v1, %v214_v40  ;;  %v175_v40 = vld [vmem:[%s9410_s0 + $0x500] sm:$0xff] }
 0x4ad   :  { %v8878_v26 = vadd.f32 %v4062_v20, %v8733_v41  ;;  %4208 = vmatmul.bf16.gmra.mxu0 %v4856_v35 }
 0x4ae   :  { %4252 = vmatmul.bf16.gmra.mxu1 %v4804_v63  ;;  %4369 = vmatpush.bf16.msrb.mxu0 %v3083_v16  ;;  %v2365_v25 = vpop.permute.xlu1 %2364  ;;  %v2949_v35 = vmax.f32 %v2737_v61, 0.0  ;;  %v2758_v62 = vadd.f32 %v2509_v17, %v1698_v23  ;;  %v5050_v61 = vld [vmem:[%s9411_s2 + $0x364] sm:$0xf0]  ;;  %v4857_v17 = vld [vmem:[%s9411_s2 + $0x2f8] sm:$0xf0] }
 0x4af   :  { %v2722_v33 = vadd.f32 %v2365_v25, %v1662_v45  ;;  %v2429_v27 = vpop.permute.xlu0 %2428  ;;  %v1697_v45 = vmul.f32 %v9782_v47, %v213_v9  ;;  %v176_v23 = vld [vmem:[%s9410_s0 + $0x508] sm:$0xff]  ;;  %v9783_v47 = vld [vmem:[#allocation133_spill] sm:$0xff] }
 0x4b0   :  { %v2738_v36 = vadd.f32 %v2429_v27, %v1678_v44  ;;  %v8884_v6 = vpop.f32.mrf.mxu2  ;;  %v4911_v44 = vld [vmem:[%s9411_s2 + $0x330] sm:$0xf]  ;;  %v5029_v27 = vld [vmem:[%s9411_s2 + $0x2c4] sm:$0xf] }
 0x4b1   :  { %9780 = vst [vmem:[#allocation18_spill] sm:$0xff] %v8884_v6  ;;  %v2934_v21 = vmax.f32 %v2722_v33, 0.0  ;;  %v8886_v41 = vpop.f32.mrf.mxu3  ;;  %v4912_v1 = vor.u32 %v5050_v61, %v4911_v44  ;;  %v9785_v6 = vld [vmem:[#allocation123_spill] sm:$0xff] }
 0x4b2   :  { %v2950_v63 = vmax.f32 %v2738_v36, 0.0  ;;  %v1660_v44 = vmul.f32 %v9785_v6, %v176_v23  ;;  %v211_v6 = vld [vmem:[%s9410_s0 + $0x620] sm:$0xff] }
 0x4b3   :  { %v3064_v16 = vpack.c.bf16 %v2934_v21, %v2933_v59  ;;  %v191_v59 = vld [vmem:[%s9410_s0 + $0x580] sm:$0xff]  ;;  %v2970_v21 = vmax.f32 %v2758_v62, 0.0  ;;  %v192_v62 = vld [vmem:[%s9410_s0 + $0x588] sm:$0xff] }
 0x4b4   :  { %v3072_v30 = vpack.c.bf16 %v2950_v63, %v2949_v35  ;;  %v8892_v20 = vpop.f32.mrf.mxu1  ;;  %v4953_v23 = vld [vmem:[%s9411_s2 + $0x5c] sm:$0xf0] }
 0x4b5   :  { %4274 = vmatpush.bf16.msrb.mxu2 %v3064_v16 }
 0x4b6   :  { %4323 = vmatpush.bf16.msrb.mxu3 %v3072_v30  ;;  %v2505_v3 = vpop.permute.xlu1 %2504  ;;  %v4860_v30 = vor.u32 %v5029_v27, %v4857_v17  ;;  %v2501_v17 = vpop.permute.xlu2 %2500 }
 0x4b7   :  { %v2757_v25 = vadd.f32 %v2505_v3, %v1697_v45  ;;  %v2353_v33 = vpop.permute.xlu0 %2352  ;;  %v1659_v45 = vmul.f32 %v9783_v47, %v175_v40 }
 0x4b8   :  { %v4101_v36 = vpop.f32.mrf.mxu2 }
 0x4b9   :  { %v2969_v9 = vmax.f32 %v2757_v25, 0.0  ;;  %v8914_v35 = vadd.f32 %v4101_v36, %v8766_v46  ;;  %v4135_v63 = vpop.f32.mrf.mxu3  ;;  %v9784_v25 = vld [vmem:[#allocation138_spill] sm:$0xff]  ;;  %v2719_v61 = vadd.f32 %v2353_v33, %v1659_v45 }
 0x4ba   :  { %v8920_v16 = vadd.f32 %v4135_v63, %v8756_v22  ;;  %v1675_v46 = vmul.f32 %v9784_v25, %v191_v59  ;;  %v9786_v22 = vld [vmem:[#allocation152_spill] sm:$0xff]  ;;  %v212_v59 = vld [vmem:[%s9410_s0 + $0x628] sm:$0xff] }
 0x4bb   :  { %v3082_v3 = vpack.c.bf16 %v2970_v21, %v2969_v9  ;;  %v1676_v63 = vmul.f32 %v9786_v22, %v192_v62  ;;  %v2931_v21 = vmax.f32 %v2719_v61, 0.0  ;;  %v8948_v62 = vpop.f32.mrf.mxu0  ;;  %v9788_v25 = vld [vmem:[#allocation159_spill] sm:$0xff]  ;;  %v9789_v22 = vld [vmem:[#allocation169_spill] sm:$0xff] }
 0x4bc   :  { %v4067_v36 = vpop.f32.mrf.mxu1  ;;  %v2735_v27 = vadd.f32 %v2417_v19, %v1675_v46  ;;  %v1696_v46 = vmul.f32 %v9788_v25, %v212_v59  ;;  %v4913_v59 = vld [vmem:[%s9411_s2 + $0x368] sm:$0xf0] }
 0x4bd   :  { %v8929_v39 = vadd.f32 %v4067_v36, %v8792_v37  ;;  %4213 = vmatmul.bf16.gmra.mxu0 %v4912_v1  ;;  %v4527_v1 = vld [vmem:[%s9411_s2 + $0x28] sm:$0xf] }
 0x4be   :  { %4257 = vmatmul.bf16.gmra.mxu1 %v4860_v30  ;;  %4370 = vmatpush.bf16.msrb.mxu0 %v3082_v3  ;;  %v2357_v40 = vpop.permute.xlu1 %2356  ;;  %v2947_v30 = vmax.f32 %v2735_v27, 0.0  ;;  %v4529_v3 = vld [vmem:[%s9411_s2 + $0x60] sm:$0xf0]  ;;  %v4528_v61 = vor.u32 %v4953_v23, %v4527_v1 }
 0x4bf   :  { %v2720_v47 = vadd.f32 %v2357_v40, %v1660_v44  ;;  %v2421_v8 = vpop.permute.xlu0 %2420  ;;  %v2756_v40 = vadd.f32 %v2501_v17, %v1696_v46  ;;  %v4916_v46 = vor.u32 %v5043_v57, %v4913_v59 }
 0x4c0   :  { %v2736_v37 = vadd.f32 %v2421_v8, %v1676_v63  ;;  %v8938_v33 = vpop.f32.mrf.mxu2  ;;  %v4946_v8 = vld [vmem:[%s9411_s2 + $0x2c] sm:$0xf]  ;;  %v1695_v63 = vmul.f32 %v9789_v22, %v211_v6  ;;  %v2553_v6 = vpop.permute.xlu2 %2552 }
 0x4c1   :  { %v2932_v9 = vmax.f32 %v2720_v47, 0.0  ;;  %v8940_v19 = vpop.f32.mrf.mxu3  ;;  %v4532_v27 = vor.u32 %v4946_v8, %v4529_v3  ;;  %v2968_v1 = vmax.f32 %v2756_v40, 0.0  ;;  %v210_v8 = vld [vmem:[%s9410_s0 + $0x618] sm:$0xff] }
 0x4c2   :  { %9787 = vst [vmem:[#allocation28_spill] sm:$0xff] %v8940_v19  ;;  %v2948_v45 = vmax.f32 %v2736_v37, 0.0 }
 0x4c3   :  { %v3063_v36 = vpack.c.bf16 %v2932_v9, %v2931_v21  ;;  %v209_v21 = vld [vmem:[%s9410_s0 + $0x610] sm:$0xff] }
 0x4c4   :  { %v3071_v44 = vpack.c.bf16 %v2948_v45, %v2947_v30  ;;  %v225_v9 = vld [vmem:[%s9410_s0 + $0x690] sm:$0xff] }
 0x4c5   :  { %4275 = vmatpush.bf16.msrb.mxu2 %v3063_v36  ;;  %v9790_v36 = vld [vmem:[#allocation156_spill] sm:$0xff] }
 0x4c6   :  { %4324 = vmatpush.bf16.msrb.mxu3 %v3071_v44  ;;  %v2497_v47 = vpop.permute.xlu1 %2496  ;;  %v1693_v44 = vmul.f32 %v9790_v36, %v209_v21  ;;  %v208_v36 = vld [vmem:[%s9410_s0 + $0x608] sm:$0xff] }
 0x4c7   :  { %v2755_v37 = vadd.f32 %v2497_v47, %v1695_v63  ;;  %v2489_v19 = vpop.permute.xlu0 %2488  ;;  %v9791_v63 = vld [vmem:[#allocation181_spill] sm:$0xff] }
 0x4c8   :  { %v4106_v17 = vpop.f32.mrf.mxu2  ;;  %4276 = vmatmul.bf16.vlgmr.msrb.gmra.mxu2 %v4528_v61  ;;  %v226_v61 = vld [vmem:[%s9410_s0 + $0x698] sm:$0xff]  ;;  %v1709_v40 = vmul.f32 %v9791_v63, %v225_v9 }
 0x4c9   :  { %v2967_v23 = vmax.f32 %v2755_v37, 0.0  ;;  %v8971_v30 = vadd.f32 %v4106_v17, %v8825_v15  ;;  %v4140_v45 = vpop.f32.mrf.mxu3  ;;  %4325 = vmatmul.bf16.vlgmr.msrb.gmra.mxu3 %v4532_v27  ;;  %v9792_v27 = vld [vmem:[#allocation170_spill] sm:$0xff]  ;;  %v2753_v37 = vadd.f32 %v2489_v19, %v1693_v44  ;;  %v9793_v17 = vld [vmem:[#allocation180_spill] sm:$0xff]  ;;  %v2485_v44 = vpop.permute.xlu2 %2484  ;;  %v4960_v63 = vld [vmem:[%s9411_s2 + $0x9c] sm:$0xf] }
 0x4ca   :  { %v8977_v3 = vadd.f32 %v4140_v45, %v8815_v4  ;;  %v4179_v25 = vpop.f32.mrf.mxu0  ;;  %v1694_v47 = vmul.f32 %v9792_v27, %v210_v8  ;;  %v1710_v4 = vmul.f32 %v9793_v17, %v226_v61  ;;  %v2769_v45 = vadd.f32 %v2553_v6, %v1709_v40  ;;  %v4583_v6 = vld [vmem:[%s9411_s2 + $0x98] sm:$0xf]  ;;  %v4585_v40 = vld [vmem:[%s9411_s2 + $0xd0] sm:$0xf0]  ;;  %v9795_v27 = vld [vmem:[#allocation166_spill] sm:$0xff] }
 0x4cb   :  { %v3081_v22 = vpack.c.bf16 %v2968_v1, %v2967_v23  ;;  %v4180_v15 = vadd.f32 %v4179_v25, %v8869_v10  ;;  %v207_v10 = vld [vmem:[%s9410_s0 + $0x600] sm:$0xff]  ;;  %v2965_v19 = vmax.f32 %v2753_v37, 0.0  ;;  %v4967_v25 = vld [vmem:[%s9411_s2 + $0xcc] sm:$0xf0]  ;;  %v9012_v37 = vpop.f32.mrf.mxu1 }
 0x4cd   :  { %4371 = vmatpush.bf16.msrb.mxu0 %v3081_v22 }
 0x4ce   :  { %4262 = vmatmul.bf16.gmra.mxu1 %v4916_v46  ;;  %v2493_v57 = vpop.permute.xlu1 %2492  ;;  %v2981_v46 = vmax.f32 %v2769_v45, 0.0  ;;  %v9796_v45 = vld [vmem:[#allocation167_spill] sm:$0xff] }
 0x4cf   :  { %v2754_v59 = vadd.f32 %v2493_v57, %v1694_v47  ;;  %v2557_v21 = vpop.permute.xlu0 %2556  ;;  %v1692_v47 = vmul.f32 %v9795_v27, %v208_v36  ;;  %v4584_v57 = vor.u32 %v4967_v25, %v4583_v6  ;;  %v224_v6 = vld [vmem:[%s9410_s0 + $0x688] sm:$0xff] }
 0x4d0   :  { %v2770_v9 = vadd.f32 %v2557_v21, %v1710_v4  ;;  %v8993_v1 = vpop.f32.mrf.mxu2 }
 0x4d1   :  { %v2966_v23 = vmax.f32 %v2754_v59, 0.0  ;;  %v8995_v8 = vpop.f32.mrf.mxu3  ;;  %v1691_v59 = vmul.f32 %v9796_v45, %v207_v10  ;;  %v2752_v21 = vadd.f32 %v2485_v44, %v1692_v47  ;;  %v4535_v10 = vld [vmem:[%s9411_s2 + $0x30] sm:$0xf] }
 0x4d2   :  { %9794 = vst [vmem:[#allocation29_spill] sm:$0xff] %v8995_v8  ;;  %v2982_v61 = vmax.f32 %v2770_v9, 0.0  ;;  %v9003_v22 = vpop.f32.mrf.mxu0  ;;  %v4588_v9 = vor.u32 %v4960_v63, %v4585_v40 }
 0x4d3   :  { %v3080_v17 = vpack.c.bf16 %v2966_v23, %v2965_v19  ;;  %v2964_v36 = vmax.f32 %v2752_v21, 0.0 }
 0x4d4   :  { %v3088_v4 = vpack.c.bf16 %v2982_v61, %v2981_v46 }
 0x4d5   :  { %4372 = vmatpush.bf16.msrb.mxu0 %v3080_v17  ;;  %v9798_v17 = vld [vmem:[#allocation171_spill] sm:$0xff] }
 0x4d6   :  { %4421 = vmatpush.bf16.msrb.mxu1 %v3088_v4  ;;  %v2481_v8 = vpop.permute.xlu1 %2480  ;;  %v1708_v4 = vmul.f32 %v9798_v17, %v224_v6 }
 0x4d7   :  { %v2751_v32 = vadd.f32 %v2481_v8, %v1691_v59  ;;  %v4954_v8 = vld [vmem:[%s9411_s2 + $0x64] sm:$0xf0]  ;;  %v2545_v25 = vpop.permute.xlu0 %2544 }
 0x4d8   :  { %v4111_v24 = vpop.f32.mrf.mxu2  ;;  %4281 = vmatmul.bf16.gmra.mxu2 %v4584_v57  ;;  %v4536_v47 = vor.u32 %v4954_v8, %v4535_v10  ;;  %v4974_v10 = vld [vmem:[%s9411_s2 + $0x10c] sm:$0xf]  ;;  %v4641_v8 = vld [vmem:[%s9411_s2 + $0x140] sm:$0xf0] }
 0x4d9   :  { %v2963_v27 = vmax.f32 %v2751_v32, 0.0  ;;  %v9019_v19 = vadd.f32 %v4111_v24, %v8878_v26  ;;  %v4145_v23 = vpop.f32.mrf.mxu3  ;;  %4330 = vmatmul.bf16.gmra.mxu3 %v4588_v9  ;;  %v9797_v26 = vld [vmem:[#allocation178_spill] sm:$0xff] }
 0x4da   :  { %v9031_v32 = vadd.f32 %v4145_v23, %v8863_v56  ;;  %v4184_v24 = vpop.f32.mrf.mxu0  ;;  %v1707_v46 = vmul.f32 %v9797_v26, %v223_v0  ;;  %v4639_v0 = vld [vmem:[%s9411_s2 + $0x108] sm:$0xf]  ;;  %v4981_v56 = vld [vmem:[%s9411_s2 + $0x13c] sm:$0xf0] }
 0x4db   :  { %v3079_v44 = vpack.c.bf16 %v2964_v36, %v2963_v27  ;;  %v4185_v61 = vadd.f32 %v4184_v24, %v8920_v16  ;;  %v4228_v63 = vpop.f32.mrf.mxu1  ;;  %v4947_v36 = vld [vmem:[%s9411_s2 + $0x34] sm:$0xf]  ;;  %v4537_v27 = vld [vmem:[%s9411_s2 + $0x68] sm:$0xf0]  ;;  %v3859_v24 = vadd.f32 %v7584_v7, %v7372_v50  ;;  %v4640_v26 = vor.u32 %v4981_v56, %v4639_v0  ;;  %v4591_v50 = vld [vmem:[%s9411_s2 + $0xa0] sm:$0xf] }
 0x4dc   :  { %v9035_v40 = vadd.f32 %v4228_v63, %v4180_v15  ;;  %v2767_v57 = vadd.f32 %v2545_v25, %v1707_v46  ;;  %v4540_v46 = vor.u32 %v4947_v36, %v4537_v27  ;;  %v4968_v7 = vld [vmem:[%s9411_s2 + $0xd4] sm:$0xf0]  ;;  %v4988_v27 = vld [vmem:[%s9411_s2 + $0x17c] sm:$0xf] }
 0x4dd   :  { %4373 = vmatpush.bf16.msrb.mxu0 %v3079_v44  ;;  %v4644_v44 = vor.u32 %v4974_v10, %v4641_v8  ;;  %v3908_v63 = vadd.f32 %v8158_v48, %v3859_v24  ;;  %v4697_v10 = vld [vmem:[%s9411_s2 + $0x1b0] sm:$0xf0] }
 0x4de   :  { %v2549_v45 = vpop.permute.xlu1 %2548  ;;  %v2979_v16 = vmax.f32 %v2767_v57, 0.0 }
 0x4df   :  { %v2768_v59 = vadd.f32 %v2549_v45, %v1708_v4  ;;  %v3957_v57 = vadd.f32 %v8416_v12, %v3908_v63  ;;  %v4695_v12 = vld [vmem:[%s9411_s2 + $0x178] sm:$0xf] }
 0x4e0   :  { %v9038_v21 = vpop.f32.mrf.mxu2  ;;  %4374 = vmatmul.bf16.vlgmr.msrb.gmra.mxu0 %v4536_v47 }
 0x4e1   :  { %v2980_v15 = vmax.f32 %v2768_v59, 0.0  ;;  %v9046_v9 = vpop.f32.mrf.mxu3  ;;  %v4006_v0 = vadd.f32 %v8638_v13, %v3957_v57  ;;  %v4961_v13 = vld [vmem:[%s9411_s2 + $0xa4] sm:$0xf] }
 0x4e2   :  { %v9054_v23 = vpop.f32.mrf.mxu0 }
 0x4e3   :  { %v3087_v6 = vpack.c.bf16 %v2980_v15, %v2979_v16  ;;  %v9062_v25 = vpop.f32.mrf.mxu1  ;;  %v4592_v16 = vor.u32 %v4968_v7, %v4591_v50  ;;  %v4055_v15 = vadd.f32 %v8788_v11, %v4006_v0  ;;  %v4593_v11 = vld [vmem:[%s9411_s2 + $0xd8] sm:$0xf0] }
 0x4e5   :  { %4422 = vmatpush.bf16.msrb.mxu1 %v3087_v6  ;;  %v4104_v36 = vadd.f32 %v8938_v33, %v4055_v15  ;;  %v3864_v6 = vadd.f32 %v7672_v54, %v7472_v60  ;;  %v5002_v15 = vld [vmem:[%s9411_s2 + $0x1ec] sm:$0xf] }
 0x4e8   :  { %v4116_v47 = vpop.f32.mrf.mxu2  ;;  %4286 = vmatmul.bf16.gmra.mxu2 %v4640_v26  ;;  %4933 = vmatmul.msk.bf16.vlgmr.msrb.gmra.mxu1 %vm3753_vm0, %v4540_v46  ;;  %v4596_v26 = vor.u32 %v4961_v13, %v4593_v11  ;;  %v4700_v46 = vor.u32 %v4988_v27, %v4697_v10 }
 0x4e9   :  { %v9069_v17 = vadd.f32 %v4116_v47, %v8929_v39  ;;  %v4150_v4 = vpop.f32.mrf.mxu3  ;;  %4335 = vmatmul.bf16.gmra.mxu3 %v4644_v44  ;;  %v3913_v44 = vadd.f32 %v8246_v42, %v3864_v6  ;;  %v4647_v47 = vld [vmem:[%s9411_s2 + $0x110] sm:$0xf]  ;;  %v4703_v6 = vld [vmem:[%s9411_s2 + $0x180] sm:$0xf] }
 0x4ea   :  { %v9079_v48 = vadd.f32 %v4150_v4, %v8914_v35  ;;  %v4189_v45 = vpop.f32.mrf.mxu0  ;;  %v4982_v4 = vld [vmem:[%s9411_s2 + $0x144] sm:$0xf0] }
 0x4eb   :  { %v4190_v59 = vadd.f32 %v4189_v45, %v8977_v3  ;;  %v4233_v39 = vpop.f32.mrf.mxu1  ;;  %v4995_v3 = vld [vmem:[%s9411_s2 + $0x1ac] sm:$0xf0]  ;;  %v3962_v60 = vadd.f32 %v8498_v29, %v3913_v44  ;;  %v4751_v29 = vld [vmem:[%s9411_s2 + $0x1e8] sm:$0xf] }
 0x4ec   :  { %v9083_v56 = vadd.f32 %v4233_v39, %v4185_v61  ;;  %v4696_v24 = vor.u32 %v4995_v3, %v4695_v12  ;;  %v4648_v39 = vor.u32 %v4982_v4, %v4647_v47 }
 0x4ed   :  { %v4011_v57 = vadd.f32 %v8707_v31, %v3962_v60  ;;  %v4975_v31 = vld [vmem:[%s9411_s2 + $0x114] sm:$0xf] }
 0x4ef   :  { %v4060_v0 = vadd.f32 %v8840_v58, %v4011_v57  ;;  %v4649_v58 = vld [vmem:[%s9411_s2 + $0x148] sm:$0xf0] }
 0x4f0   :  { %4379 = vmatmul.bf16.gmra.mxu0 %v4592_v16  ;;  %v4652_v13 = vor.u32 %v4975_v31, %v4649_v58  ;;  %v5010_v31 = vld [vmem:[%s9411_s2 + $0x224] sm:$0xf0] }
 0x4f1   :  { %v4152_v35 = vpop.f32.mrf.mxu3  ;;  %v4109_v16 = vadd.f32 %v8993_v1, %v4060_v0 }
 0x4f2   :  { %v9099_v61 = vadd.f32 %v4152_v35, %v4104_v36  ;;  %v9101_v33 = vpop.f32.mrf.mxu0  ;;  %v4753_v36 = vld [vmem:[%s9411_s2 + $0x220] sm:$0xf0]  ;;  %v3869_v35 = vadd.f32 %v7783_v51, %v7582_v55 }
 0x4f3   :  { %v9109_v8 = vpop.f32.mrf.mxu1  ;;  %v4756_v11 = vor.u32 %v5002_v15, %v4753_v36 }
 0x4f4   :  { %v3918_v27 = vadd.f32 %v8358_v5, %v3869_v35 }
 0x4f6   :  { %v3967_v55 = vadd.f32 %v8591_v52, %v3918_v27  ;;  %v4807_v52 = vld [vmem:[%s9411_s2 + $0x258] sm:$0xf] }
 0x4f8   :  { %4291 = vmatmul.bf16.gmra.mxu2 %v4696_v24  ;;  %4934 = vmatmul.msk.bf16.gmra.mxu1 %vm3753_vm0, %v4596_v26  ;;  %v4996_v24 = vld [vmem:[%s9411_s2 + $0x1b4] sm:$0xf0]  ;;  %v4016_v44 = vadd.f32 %v8768_v53, %v3967_v55  ;;  %v4989_v53 = vld [vmem:[%s9411_s2 + $0x184] sm:$0xf] }
 0x4f9   :  { %v4155_v63 = vpop.f32.mrf.mxu3  ;;  %4340 = vmatmul.bf16.gmra.mxu3 %v4700_v46  ;;  %v4704_v47 = vor.u32 %v4996_v24, %v4703_v6  ;;  %v4865_v6 = vld [vmem:[%s9411_s2 + $0x300] sm:$0xf0] }
 0x4fa   :  { %v9123_v54 = vadd.f32 %v4155_v63, %v8971_v30  ;;  %v4194_v50 = vpop.f32.mrf.mxu0  ;;  %v4065_v4 = vadd.f32 %v8892_v20, %v4016_v44  ;;  %v4705_v20 = vld [vmem:[%s9411_s2 + $0x1b8] sm:$0xf0] }
 0x4fb   :  { %v4195_v42 = vadd.f32 %v4194_v50, %v9031_v32  ;;  %v4238_v7 = vpop.f32.mrf.mxu1  ;;  %v5009_v32 = vld [vmem:[%s9411_s2 + $0x21c] sm:$0xf0] }
 0x4fc   :  { %v9127_v45 = vadd.f32 %v4238_v7, %v4190_v59  ;;  %v4752_v3 = vor.u32 %v5009_v32, %v4751_v29  ;;  %v4114_v60 = vadd.f32 %v9038_v21, %v4065_v4  ;;  %v4809_v7 = vld [vmem:[%s9411_s2 + $0x290] sm:$0xf0]  ;;  %v4759_v32 = vld [vmem:[%s9411_s2 + $0x1f0] sm:$0xf]  ;;  %v5024_v4 = vld [vmem:[%s9411_s2 + $0x294] sm:$0xf0] }
 0x500   :  { %4384 = vmatmul.bf16.gmra.mxu0 %v4648_v39 }
 0x501   :  { %v4157_v30 = vpop.f32.mrf.mxu3 }
 0x502   :  { %v4158_v59 = vadd.f32 %v4157_v30, %v4109_v16  ;;  %v9143_v1 = vpop.f32.mrf.mxu0  ;;  %v4708_v16 = vor.u32 %v4989_v53, %v4705_v20  ;;  %v4919_v53 = vld [vmem:[%s9411_s2 + $0x338] sm:$0xf]  ;;  %v5051_v20 = vld [vmem:[%s9411_s2 + $0x36c] sm:$0xf0] }
 0x503   :  { %v9151_v12 = vpop.f32.mrf.mxu1 }
 0x508   :  { %4296 = vmatmul.bf16.gmra.mxu2 %v4752_v3  ;;  %4935 = vmatmul.msk.bf16.gmra.mxu1 %vm3753_vm0, %v4652_v13  ;;  %v4760_v3 = vor.u32 %v5010_v31, %v4759_v32  ;;  %v4863_v13 = vld [vmem:[%s9411_s2 + $0x2c8] sm:$0xf] }
 0x509   :  { %v4160_v10 = vpop.f32.mrf.mxu3  ;;  %4345 = vmatmul.bf16.gmra.mxu3 %v4756_v11  ;;  %v5037_v11 = vld [vmem:[%s9411_s2 + $0x2fc] sm:$0xf0] }
 0x50a   :  { %v4161_v51 = vadd.f32 %v4160_v10, %v9019_v19  ;;  %v4199_v26 = vpop.f32.mrf.mxu0  ;;  %v5023_v19 = vld [vmem:[%s9411_s2 + $0x28c] sm:$0xf0]  ;;  %v5030_v10 = vld [vmem:[%s9411_s2 + $0x2cc] sm:$0xf] }
 0x50b   :  { %v4200_v5 = vadd.f32 %v4199_v26, %v9079_v48  ;;  %v4243_v46 = vpop.f32.mrf.mxu1  ;;  %v4808_v0 = vor.u32 %v5023_v19, %v4807_v52  ;;  %v4868_v44 = vor.u32 %v5030_v10, %v4865_v6 }
 0x50c   :  { %v9167_v63 = vadd.f32 %v4243_v46, %v4195_v42  ;;  %v5016_v42 = vld [vmem:[%s9411_s2 + $0x25c] sm:$0xf] }
 0x50d   :  { %v4812_v29 = vor.u32 %v5016_v42, %v4809_v7  ;;  %v5044_v7 = vld [vmem:[%s9411_s2 + $0x33c] sm:$0xf] }
 0x510   :  { %4389 = vmatmul.bf16.gmra.mxu0 %v4704_v47  ;;  %v4815_v47 = vld [vmem:[%s9411_s2 + $0x260] sm:$0xf] }
 0x511   :  { %v4162_v50 = vpop.f32.mrf.mxu3  ;;  %v4816_v19 = vor.u32 %v5024_v4, %v4815_v47 }
 0x512   :  { %v4163_v48 = vadd.f32 %v4162_v50, %v4114_v60  ;;  %v4201_v21 = vpop.f32.mrf.mxu0 }
 0x513   :  { %v4202_v57 = vadd.f32 %v4201_v21, %v9099_v61  ;;  %v9190_v39 = vpop.f32.mrf.mxu1  ;;  %v5017_v21 = vld [vmem:[%s9411_s2 + $0x264] sm:$0xf] }
 0x518   :  { %4301 = vmatmul.bf16.gmra.mxu2 %v4808_v0  ;;  %4936 = vmatmul.msk.bf16.gmra.mxu1 %vm3753_vm0, %v4708_v16  ;;  %v9799_v0 = vld [vmem:[#allocation9_spill] sm:$0xff]  ;;  %v9800_v16 = vld [vmem:[#allocation16_spill] sm:$0xff] }
 0x519   :  { %v4165_v30 = vpop.f32.mrf.mxu3  ;;  %4350 = vmatmul.bf16.gmra.mxu3 %v4812_v29  ;;  %v3874_v29 = vadd.f32 %v9800_v16, %v9799_v0  ;;  %v5045_v0 = vld [vmem:[%s9411_s2 + $0x344] sm:$0xf]  ;;  %v4929_v16 = vld [vmem:[%s9411_s2 + $0x378] sm:$0xf0] }
 0x51a   :  { %v4166_v61 = vadd.f32 %v4165_v30, %v9069_v17  ;;  %v4204_v58 = vpop.f32.mrf.mxu0  ;;  %v5003_v17 = vld [vmem:[%s9411_s2 + $0x1f4] sm:$0xf] }
 0x51b   :  { %v4205_v15 = vadd.f32 %v4204_v58, %v9123_v54  ;;  %v4248_v36 = vpop.f32.mrf.mxu1  ;;  %v4761_v54 = vld [vmem:[%s9411_s2 + $0x228] sm:$0xf0]  ;;  %v4920_v58 = vor.u32 %v5051_v20, %v4919_v53 }
 0x51c   :  { %v9201_v35 = vadd.f32 %v4248_v36, %v4200_v5  ;;  %v4864_v5 = vor.u32 %v5037_v11, %v4863_v13  ;;  %v4764_v46 = vor.u32 %v5003_v17, %v4761_v54  ;;  %v4871_v11 = vld [vmem:[%s9411_s2 + $0x2d0] sm:$0xf] }
 0x520   :  { %4394 = vmatmul.bf16.gmra.mxu0 %v4760_v3  ;;  %v3923_v3 = vadd.f32 %v8661_v14, %v3874_v29  ;;  %v4118_v14 = vpop.f32.mrf.mxu2  ;;  %v9803_v29 = vld [vmem:[#allocation19_spill] sm:$0xff] }
 0x522   :  { %v4206_v27 = vpop.f32.mrf.mxu0  ;;  %v3972_v13 = vadd.f32 %v8835_v2, %v3923_v3  ;;  %v4932_v3 = vor.u32 %v5045_v0, %v4929_v16 }
 0x523   :  { %v4207_v24 = vadd.f32 %v4206_v27, %v4158_v59  ;;  %v4250_v55 = vpop.f32.mrf.mxu1 }
 0x524   :  { %v9221_v26 = vadd.f32 %v4250_v55, %v4202_v57  ;;  %v4921_v57 = vld [vmem:[%s9411_s2 + $0x370] sm:$0xf0]  ;;  %v4021_v54 = vadd.f32 %v8948_v62, %v3972_v13  ;;  %v4167_v55 = vpop.f32.mrf.mxu3  ;;  %v4873_v62 = vld [vmem:[%s9411_s2 + $0x308] sm:$0xf0] }
 0x525   :  { %v4924_v36 = vor.u32 %v5044_v7, %v4921_v57  ;;  %v9802_v7 = vld [vmem:[#allocation13_spill] sm:$0xff] }
 0x526   :  { %v4070_v2 = vadd.f32 %v9012_v37, %v4021_v54  ;;  %v4927_v37 = vld [vmem:[%s9411_s2 + $0x340] sm:$0xf] }
 0x528   :  { %4306 = vmatmul.bf16.gmra.mxu2 %v4864_v5  ;;  %4937 = vmatmul.msk.bf16.gmra.mxu1 %vm3753_vm0, %v4764_v46  ;;  %v4119_v5 = vadd.f32 %v4118_v14, %v4070_v2 }
 0x529   :  { %4355 = vmatmul.bf16.gmra.mxu3 %v4868_v44  ;;  %v5031_v44 = vld [vmem:[%s9411_s2 + $0x2d4] sm:$0xf] }
 0x52a   :  { %v4209_v60 = vpop.f32.mrf.mxu0  ;;  %v4168_v46 = vadd.f32 %v4167_v55, %v4119_v5  ;;  %v9805_v5 = vld [vmem:[#allocation6_spill] sm:$0xff] }
 0x52b   :  { %v4210_v59 = vadd.f32 %v4209_v60, %v4161_v51  ;;  %v4253_v52 = vpop.f32.mrf.mxu1  ;;  %v4817_v51 = vld [vmem:[%s9411_s2 + $0x298] sm:$0xf0] }
 0x52c   :  { %v9230_v50 = vadd.f32 %v4253_v52, %v4205_v15  ;;  %v4820_v15 = vor.u32 %v5017_v21, %v4817_v51  ;;  %v5052_v52 = vld [vmem:[%s9411_s2 + $0x374] sm:$0xf0] }
 0x52d   :  { %v4928_v51 = vor.u32 %v5052_v52, %v4927_v37  ;;  %v9807_v52 = vld [vmem:[#allocation38_spill] sm:$0xff] }
 0x530   :  { %4399 = vmatmul.bf16.gmra.mxu0 %v4816_v19 }
 0x532   :  { %v4211_v42 = vpop.f32.mrf.mxu0 }
 0x533   :  { %v4212_v30 = vadd.f32 %v4211_v42, %v4163_v48  ;;  %v4255_v32 = vpop.f32.mrf.mxu1  ;;  %v5038_v48 = vld [vmem:[%s9411_s2 + $0x304] sm:$0xf0]  ;;  %v9801_v42 = vld [vmem:[#allocation20_spill] sm:$0xff] }
 0x534   :  { %v9252_v31 = vadd.f32 %v4255_v32, %v4207_v24  ;;  %v4872_v24 = vor.u32 %v5038_v48, %v4871_v11  ;;  %v3839_v57 = vadd.f32 %v9802_v7, %v9801_v42  ;;  %v9808_v42 = vld [vmem:[#allocation14_spill] sm:$0xff] }
 0x535   :  { %v9809_v7 = vld [vmem:[#allocation10_spill] sm:$0xff] }
 0x538   :  { %4311 = vmatmul.bf16.gmra.mxu2 %v4920_v58  ;;  %4938 = vmatmul.msk.bf16.gmra.mxu1 %vm3753_vm0, %v4820_v15 }
 0x539   :  { %4360 = vmatmul.bf16.gmra.mxu3 %v4924_v36 }
 0x53a   :  { %v4214_v17 = vpop.f32.mrf.mxu0 }
 0x53b   :  { %v4215_v27 = vadd.f32 %v4214_v17, %v4166_v61  ;;  %v4258_v10 = vpop.f32.mrf.mxu1 }
 0x53c   :  { %v9264_v6 = vadd.f32 %v4258_v10, %v4210_v59  ;;  %v4876_v59 = vor.u32 %v5031_v44, %v4873_v62  ;;  %v9804_v10 = vld [vmem:[#allocation17_spill] sm:$0xff] }
 0x53d   :  { %v3844_v14 = vadd.f32 %v8019_v28, %v9804_v10 }
 0x540   :  { %4404 = vmatmul.bf16.gmra.mxu0 %v4872_v24 }
 0x542   :  { %v4216_v61 = vpop.f32.mrf.mxu0 }
 0x543   :  { %v4217_v47 = vadd.f32 %v4216_v61, %v4168_v46  ;;  %v4260_v4 = vpop.f32.mrf.mxu1 }
 0x544   :  { %v9273_v60 = vadd.f32 %v4260_v4, %v4212_v30  ;;  %v3888_v30 = vadd.f32 %v9803_v29, %v3839_v57  ;;  %v9810_v57 = vld [vmem:[#allocation21_spill] sm:$0xff] }
 0x546   :  { %v3937_v13 = vadd.f32 %v7995_v49, %v3888_v30  ;;  %v3893_v49 = vadd.f32 %v9805_v5, %v3844_v14  ;;  %v9811_v30 = vld [vmem:[#allocation28_spill] sm:$0xff] }
 0x547   :  { %v9814_v5 = vld [vmem:[#allocation24_spill] sm:$0xff] }
 0x548   :  { %4939 = vmatmul.msk.bf16.gmra.mxu1 %vm3753_vm0, %v4876_v59  ;;  %v3986_v11 = vadd.f32 %v8253_v18, %v3937_v13  ;;  %v3942_v28 = vadd.f32 %v8116_v43, %v3893_v49  ;;  %v3849_v43 = vadd.f32 %v9809_v7, %v9808_v42 }
 0x54a   :  { %v4035_v17 = vadd.f32 %v8504_v34, %v3986_v11 }
 0x54b   :  { %v4263_v19 = vpop.f32.mrf.mxu1  ;;  %v4277_v53 = vpop.f32.mrf.mxu2 }
 0x54c   :  { %v9282_v20 = vadd.f32 %v4263_v19, %v4215_v27  ;;  %v4326_v21 = vpop.f32.mrf.mxu3  ;;  %v4084_v24 = vadd.f32 %v8722_v38, %v4035_v17  ;;  %v4278_v2 = vadd.f32 %v4277_v53, %v9035_v40 }
 0x54e   :  { %v4133_v55 = vadd.f32 %v8886_v41, %v4084_v24  ;;  %v4327_v44 = vadd.f32 %v4326_v21, %v4278_v2  ;;  %v9806_v41 = vld [vmem:[#allocation8_spill] sm:$0xff] }
 0x550   :  { %4409 = vmatmul.bf16.gmra.mxu0 %v4928_v51  ;;  %v4182_v46 = vadd.f32 %v9003_v22, %v4133_v55  ;;  %v3991_v22 = vadd.f32 %v9806_v41, %v3942_v28  ;;  %v9817_v28 = vld [vmem:[#allocation2_spill] sm:$0xff] }
 0x552   :  { %v4231_v62 = vadd.f32 %v9062_v25, %v4182_v46  ;;  %v4040_v25 = vadd.f32 %v9807_v52, %v3991_v22  ;;  %v9815_v46 = vld [vmem:[#allocation35_spill] sm:$0xff] }
 0x553   :  { %v4265_v32 = vpop.f32.mrf.mxu1  ;;  %v4279_v58 = vpop.f32.mrf.mxu2 }
 0x554   :  { %v9293_v15 = vadd.f32 %v4265_v32, %v4217_v47  ;;  %v4328_v36 = vpop.f32.mrf.mxu3  ;;  %v4280_v38 = vadd.f32 %v4279_v58, %v4231_v62  ;;  %v4089_v0 = vadd.f32 %v9810_v57, %v4040_v25  ;;  %v9812_v58 = vld [vmem:[#allocation5_spill] sm:$0xff] }
 0x556   :  { %v4329_v40 = vadd.f32 %v4328_v36, %v4280_v38  ;;  %v4138_v32 = vadd.f32 %v9811_v30, %v4089_v0  ;;  %v3898_v36 = vadd.f32 %v9812_v58, %v3849_v43  ;;  %v9822_v30 = vld [vmem:[#allocation34_spill] sm:$0xff] }
 0x558   :  { %4940 = vmatmul.msk.bf16.gmra.mxu1 %vm3753_vm0, %v4932_v3  ;;  %v4187_v3 = vadd.f32 %v9054_v23, %v4138_v32 }
 0x55a   :  { %v4236_v17 = vadd.f32 %v9109_v8, %v4187_v3 }
 0x55b   :  { %v4282_v48 = vpop.f32.mrf.mxu2 }
 0x55c   :  { %v4331_v54 = vpop.f32.mrf.mxu3  ;;  %v4283_v16 = vadd.f32 %v4282_v48, %v9083_v56  ;;  %v9813_v48 = vld [vmem:[#allocation7_spill] sm:$0xff] }
 0x55d   :  { %v4375_v27 = vpop.f32.mrf.mxu0  ;;  %v3947_v24 = vadd.f32 %v9813_v48, %v3898_v36 }
 0x55e   :  { %v4376_v34 = vadd.f32 %v4375_v27, %v4327_v44  ;;  %v4332_v13 = vadd.f32 %v4331_v54, %v4283_v16 }
 0x55f   :  { %v3996_v49 = vadd.f32 %v9814_v5, %v3947_v24 }
 0x561   :  { %v4045_v44 = vadd.f32 %v9815_v46, %v3996_v49 }
 0x563   :  { %v4284_v18 = vpop.f32.mrf.mxu2 }
 0x564   :  { %v4333_v61 = vpop.f32.mrf.mxu3  ;;  %v4285_v2 = vadd.f32 %v4284_v18, %v4236_v17  ;;  %v9818_v18 = vld [vmem:[#allocation32_spill] sm:$0xff]  ;;  %v9824_v17 = vld [vmem:[#allocation18_spill] sm:$0xff] }
 0x565   :  { %v4377_v47 = vpop.f32.mrf.mxu0  ;;  %v4424_v4 = vpop.f32.mrf.mxu1 }
 0x566   :  { %v4425_v59 = vadd.f32 %v4424_v4, %v4376_v34  ;;  %v4378_v19 = vadd.f32 %v4377_v47, %v4329_v40  ;;  %v4334_v23 = vadd.f32 %v4333_v61, %v4285_v2  ;;  %v9816_v4 = vld [vmem:[#allocation11_spill] sm:$0xff]  ;;  %v9819_v40 = vld [vmem:[#allocation29_spill] sm:$0xff]  ;;  %v9820_v61 = vld [vmem:[#allocation4_spill] sm:$0xff] }
 0x567   :  { %v3854_v38 = vadd.f32 %v9817_v28, %v9816_v4 }
 0x568   :  { %4465 = vst.msk [vmem:[%s9412_s3] sm:$0xff] %vm4464_vm1, %v4425_v59  ;;  %v4094_v59 = vadd.f32 %v9818_v18, %v4045_v44 }
 0x569   :  { %v3903_v25 = vadd.f32 %v9820_v61, %v3854_v38 }
 0x56a   :  { %v4143_v52 = vadd.f32 %v9819_v40, %v4094_v59 }
 0x56b   :  { %v4287_v37 = vpop.f32.mrf.mxu2 }
 0x56c   :  { %v4336_v53 = vpop.f32.mrf.mxu3  ;;  %v4288_v41 = vadd.f32 %v4287_v37, %v9127_v45  ;;  %v9821_v45 = vld [vmem:[#allocation3_spill] sm:$0xff] }
 0x56d   :  { %v4380_v21 = vpop.f32.mrf.mxu0  ;;  %v4426_v51 = vpop.f32.mrf.mxu1  ;;  %v3952_v37 = vadd.f32 %v9821_v45, %v3903_v25 }
 0x56e   :  { %v4427_v29 = vadd.f32 %v4426_v51, %v4378_v19  ;;  %v4381_v27 = vadd.f32 %v4380_v21, %v4332_v13  ;;  %v4192_v19 = vadd.f32 %v9101_v33, %v4143_v52  ;;  %v4337_v21 = vadd.f32 %v4336_v53, %v4288_v41  ;;  %v9823_v53 = vld [vmem:[#allocation31_spill] sm:$0xff] }
 0x56f   :  { %v4001_v32 = vadd.f32 %v9822_v30, %v3952_v37 }
 0x570   :  { %4466 = vst.msk [vmem:[%s9412_s3 + $0x8] sm:$0xff] %vm4464_vm1, %v4427_v29  ;;  %v4241_v42 = vadd.f32 %v9151_v12, %v4192_v19 }
 0x571   :  { %v4050_v58 = vadd.f32 %v9823_v53, %v4001_v32 }
 0x573   :  { %v4289_v11 = vpop.f32.mrf.mxu2 }
 0x574   :  { %v4338_v10 = vpop.f32.mrf.mxu3  ;;  %v4290_v0 = vadd.f32 %v4289_v11, %v4241_v42 }
 0x575   :  { %v4382_v14 = vpop.f32.mrf.mxu0  ;;  %v4429_v56 = vpop.f32.mrf.mxu1 }
 0x576   :  { %v4430_v55 = vadd.f32 %v4429_v56, %v4381_v27  ;;  %v4383_v8 = vadd.f32 %v4382_v14, %v4334_v23  ;;  %v4339_v33 = vadd.f32 %v4338_v10, %v4290_v0  ;;  %v4099_v27 = vadd.f32 %v9824_v17, %v4050_v58 }
 0x578   :  { %4467 = vst.msk [vmem:[%s9412_s3 + $0x10] sm:$0xff] %vm4464_vm1, %v4430_v55  ;;  %v4148_v56 = vadd.f32 %v9046_v9, %v4099_v27 }
 0x57a   :  { %v4197_v10 = vadd.f32 %v9143_v1, %v4148_v56 }
 0x57b   :  { %v4292_v54 = vpop.f32.mrf.mxu2 }
 0x57c   :  { %v4341_v62 = vpop.f32.mrf.mxu3  ;;  %v4293_v11 = vadd.f32 %v4292_v54, %v9167_v63  ;;  %v4246_v2 = vadd.f32 %v9190_v39, %v4197_v10 }
 0x57d   :  { %v4385_v34 = vpop.f32.mrf.mxu0  ;;  %v4431_v47 = vpop.f32.mrf.mxu1 }
 0x57e   :  { %v4432_v22 = vadd.f32 %v4431_v47, %v4383_v8  ;;  %v4386_v7 = vadd.f32 %v4385_v34, %v4337_v21  ;;  %v4342_v24 = vadd.f32 %v4341_v62, %v4293_v11 }
 0x580   :  { %4468 = vst.msk [vmem:[%s9412_s3 + $0x18] sm:$0xff] %vm4464_vm1, %v4432_v22 }
 0x583   :  { %v4294_v51 = vpop.f32.mrf.mxu2 }
 0x584   :  { %v4343_v16 = vpop.f32.mrf.mxu3  ;;  %v4295_v23 = vadd.f32 %v4294_v51, %v4246_v2 }
 0x585   :  { %v4387_v43 = vpop.f32.mrf.mxu0  ;;  %v4434_v57 = vpop.f32.mrf.mxu1 }
 0x586   :  { %v4435_v29 = vadd.f32 %v4434_v57, %v4386_v7  ;;  %v4388_v36 = vadd.f32 %v4387_v43, %v4339_v33  ;;  %v4344_v9 = vadd.f32 %v4343_v16, %v4295_v23 }
 0x588   :  { %4469 = vst.msk [vmem:[%s9412_s3 + $0x20] sm:$0xff] %vm4464_vm1, %v4435_v29 }
 0x58b   :  { %v4297_v12 = vpop.f32.mrf.mxu2 }
 0x58c   :  { %v4346_v48 = vpop.f32.mrf.mxu3  ;;  %v4298_v1 = vadd.f32 %v4297_v12, %v9201_v35 }
 0x58d   :  { %v4390_v3 = vpop.f32.mrf.mxu0  ;;  %v4436_v13 = vpop.f32.mrf.mxu1 }
 0x58e   :  { %v4437_v14 = vadd.f32 %v4436_v13, %v4388_v36  ;;  %v4391_v55 = vadd.f32 %v4390_v3, %v4342_v24  ;;  %v4347_v47 = vadd.f32 %v4346_v48, %v4298_v1 }
 0x590   :  { %4470 = vst.msk [vmem:[%s9412_s3 + $0x28] sm:$0xff] %vm4464_vm1, %v4437_v14 }
 0x593   :  { %v4299_v46 = vpop.f32.mrf.mxu2 }
 0x594   :  { %v4348_v54 = vpop.f32.mrf.mxu3  ;;  %v4300_v59 = vadd.f32 %v4299_v46, %v9221_v26 }
 0x595   :  { %v4392_v5 = vpop.f32.mrf.mxu0  ;;  %v4439_v49 = vpop.f32.mrf.mxu1 }
 0x596   :  { %v4440_v63 = vadd.f32 %v4439_v49, %v4391_v55  ;;  %v4393_v44 = vadd.f32 %v4392_v5, %v4344_v9  ;;  %v4349_v35 = vadd.f32 %v4348_v54, %v4300_v59 }
 0x598   :  { %4471 = vst.msk [vmem:[%s9412_s3 + $0x30] sm:$0xff] %vm4464_vm1, %v4440_v63 }
 0x59b   :  { %v4302_v39 = vpop.f32.mrf.mxu2 }
 0x59c   :  { %v4351_v4 = vpop.f32.mrf.mxu3  ;;  %v4303_v25 = vadd.f32 %v4302_v39, %v9230_v50 }
 0x59d   :  { %v4395_v8 = vpop.f32.mrf.mxu0  ;;  %v4441_v34 = vpop.f32.mrf.mxu1 }
 0x59e   :  { %v4442_v62 = vadd.f32 %v4441_v34, %v4393_v44  ;;  %v4396_v28 = vadd.f32 %v4395_v8, %v4347_v47  ;;  %v4352_v26 = vadd.f32 %v4351_v4, %v4303_v25 }
 0x5a0   :  { %4472 = vst.msk [vmem:[%s9412_s3 + $0x38] sm:$0xff] %vm4464_vm1, %v4442_v62 }
 0x5a3   :  { %v4304_v22 = vpop.f32.mrf.mxu2 }
 0x5a4   :  { %v4353_v21 = vpop.f32.mrf.mxu3  ;;  %v4305_v57 = vadd.f32 %v4304_v22, %v9252_v31 }
 0x5a5   :  { %v4397_v38 = vpop.f32.mrf.mxu0  ;;  %v4444_v18 = vpop.f32.mrf.mxu1 }
 0x5a6   :  { %v4445_v41 = vadd.f32 %v4444_v18, %v4396_v28  ;;  %v4398_v40 = vadd.f32 %v4397_v38, %v4349_v35  ;;  %v4354_v37 = vadd.f32 %v4353_v21, %v4305_v57 }
 0x5a8   :  { %4473 = vst.msk [vmem:[%s9412_s3 + $0x40] sm:$0xff] %vm4464_vm1, %v4445_v41 }
 0x5ab   :  { %v4307_v51 = vpop.f32.mrf.mxu2 }
 0x5ac   :  { %v4356_v50 = vpop.f32.mrf.mxu3  ;;  %v4308_v30 = vadd.f32 %v4307_v51, %v9264_v6 }
 0x5ad   :  { %v4400_v52 = vpop.f32.mrf.mxu0  ;;  %v4446_v61 = vpop.f32.mrf.mxu1 }
 0x5ae   :  { %v4447_v19 = vadd.f32 %v4446_v61, %v4398_v40  ;;  %v4401_v42 = vadd.f32 %v4400_v52, %v4352_v26  ;;  %v4357_v31 = vadd.f32 %v4356_v50, %v4308_v30 }
 0x5b0   :  { %4474 = vst.msk [vmem:[%s9412_s3 + $0x48] sm:$0xff] %vm4464_vm1, %v4447_v19 }
 0x5b3   :  { %v4309_v33 = vpop.f32.mrf.mxu2 }
 0x5b4   :  { %v4358_v53 = vpop.f32.mrf.mxu3  ;;  %v4310_v3 = vadd.f32 %v4309_v33, %v9273_v60 }
 0x5b5   :  { %v4402_v7 = vpop.f32.mrf.mxu0  ;;  %v4449_v43 = vpop.f32.mrf.mxu1 }
 0x5b6   :  { %v4450_v45 = vadd.f32 %v4449_v43, %v4401_v42  ;;  %v4403_v0 = vadd.f32 %v4402_v7, %v4354_v37  ;;  %v4359_v17 = vadd.f32 %v4358_v53, %v4310_v3 }
 0x5b8   :  { %4475 = vst.msk [vmem:[%s9412_s3 + $0x50] sm:$0xff] %vm4464_vm1, %v4450_v45 }
 0x5bb   :  { %v4312_v6 = vpop.f32.mrf.mxu2 }
 0x5bc   :  { %v4361_v11 = vpop.f32.mrf.mxu3  ;;  %v4313_v56 = vadd.f32 %v4312_v6, %v9282_v20 }
 0x5bd   :  { %v4405_v16 = vpop.f32.mrf.mxu0  ;;  %v4451_v29 = vpop.f32.mrf.mxu1 }
 0x5be   :  { %v4452_v32 = vadd.f32 %v4451_v29, %v4403_v0  ;;  %v4406_v58 = vadd.f32 %v4405_v16, %v4357_v31  ;;  %v4362_v60 = vadd.f32 %v4361_v11, %v4313_v56 }
 0x5c0   :  { %4476 = vst.msk [vmem:[%s9412_s3 + $0x58] sm:$0xff] %vm4464_vm1, %v4452_v32 }
 0x5c3   :  { %v4314_v24 = vpop.f32.mrf.mxu2 }
 0x5c4   :  { %v4315_v5 = vadd.f32 %v4314_v24, %v9293_v15  ;;  %v4363_v23 = vpop.f32.mrf.mxu3 }
 0x5c5   :  { %v4407_v36 = vpop.f32.mrf.mxu0  ;;  %v4454_v12 = vpop.f32.mrf.mxu1 }
 0x5c6   :  { %v4455_v13 = vadd.f32 %v4454_v12, %v4406_v58  ;;  %v4408_v27 = vadd.f32 %v4407_v36, %v4359_v17  ;;  %v4364_v46 = vadd.f32 %v4363_v23, %v4315_v5 }
 0x5c8   :  { %4477 = vst.msk [vmem:[%s9412_s3 + $0x60] sm:$0xff] %vm4464_vm1, %v4455_v13 }
 0x5cd   :  { %v4456_v14 = vpop.f32.mrf.mxu1  ;;  %v4410_v10 = vpop.f32.mrf.mxu0 }
 0x5ce   :  { %v4457_v48 = vadd.f32 %v4456_v14, %v4408_v27  ;;  %v4411_v2 = vadd.f32 %v4410_v10, %v4362_v60 }
 0x5d0   :  { %4478 = vst.msk [vmem:[%s9412_s3 + $0x68] sm:$0xff] %vm4464_vm1, %v4457_v48 }
 0x5d5   :  { %v4459_v55 = vpop.f32.mrf.mxu1  ;;  %v4412_v20 = vpop.f32.mrf.mxu0 }
 0x5d6   :  { %v4460_v49 = vadd.f32 %v4459_v55, %v4411_v2  ;;  %v4413_v63 = vadd.f32 %v4412_v20, %v4364_v46 }
 0x5d8   :  { %4479 = vst.msk [vmem:[%s9412_s3 + $0x70] sm:$0xff] %vm4464_vm1, %v4460_v49 }
 0x5dd   :  { %v4461_v9 = vpop.f32.mrf.mxu1 }
 0x5de   :  { %v4462_v54 = vadd.f32 %v4461_v9, %v4413_v63 }
 0x5e0   :  { %4480 = vst.msk [vmem:[%s9412_s3 + $0x78] sm:$0xff] %vm4464_vm1, %v4462_v54 }

</bundles_post_ra>
